<compile_context>
chip_gen: v7x
topology: tpu7x:2x2x1
jax: 0.10.0
libtpu: 0.0.40
codegen_flags: <defaults>
</compile_context>

<pallas_src>
import jax
import jax.numpy as jnp
import numpy as np
from jax.experimental import pallas as pl
from jax.experimental.pallas import tpu as pltpu

# ---- problem sizes (match the PyTorch module defaults) --------------------------------
N = 2              # batch
CIN = 256          # conv in channels
COUT = 64          # conv out channels
H = W = 6          # conv input spatial (pad=1 keeps 6x6; MaxPool2d(2,2) -> 3x3)
S = 9              # pooled spatial positions (3*3)
NUM_K = 9
NUM_CLS = 10
RP_DIM = 256
EMB_DIM = 256
FLAT = COUT * S                        # 576
NP = 8                                 # batch padded to a sublane multiple (alignment)
KIN = FLAT + NUM_K + NUM_CLS + 1       # 596 lanes: [conv_flat | k | c | 1.0 bias lane]
KIN_PAD = 640                          # fused first-layer K padded to 5*128
H1 = EMB_DIM + RP_DIM                  # 512: fused first-layer width  (emb | rp)
OUT_PAD = 384                          # 3*128 >= EMB_DIM + 3: fused second-layer width


def roi_query_kernel(patches_ref, kc_ref, conv_w_ref, conv_b_ref,
                     w1_ref, w2_ref, b2_ref, out_ref, flat_ref):
    f32, bf16 = jnp.float32, jnp.bfloat16
    # Conv2d(256->64, 3x3, pad=1) as one im2col matmul (bf16 x bf16 -> f32 acc) + bias + ReLU.
    z = jnp.dot(patches_ref[...], conv_w_ref[...], preferred_element_type=f32)
    z = jnp.maximum(z + conv_b_ref[...], 0.0)                      # (4*S*NP, COUT)
    # MaxPool2d(2,2): the 4 members of every 2x2 window are contiguous, 8-aligned row blocks.
    sn = S * NP
    pooled = jnp.maximum(jnp.maximum(z[0:sn], z[sn:2 * sn]),
                         jnp.maximum(z[2 * sn:3 * sn], z[3 * sn:4 * sn]))   # (S*NP, COUT)
    # Lay [conv_flat | k | c | 1] along the lanes of one scratch row per (padded) batch
    # element so both first-layer Linears + their biases collapse into a single K=640
    # matmul (instead of many tiny M=2 MXU pushes).
    flat_ref[...] = jnp.zeros_like(flat_ref)
    for s in range(S):                                             # 9 static lane-offset stores
        flat_ref[:, s * COUT:(s + 1) * COUT] = pooled[s * NP:(s + 1) * NP, :]
    flat_ref[:, FLAT:KIN] = kc_ref[...]
    h = jnp.dot(flat_ref[...].astype(bf16), w1_ref[...], preferred_element_type=f32)
    h = jnp.maximum(h, 0.0)                                        # (NP, EMB_DIM + RP_DIM)
    # Fused second layer: output cols [0:EMB_DIM] -> roi_emb, [EMB_DIM:EMB_DIM+3] -> roi_rp.
    out = jnp.dot(h.astype(bf16), w2_ref[...], preferred_element_type=f32) + b2_ref[...]
    out_ref[...] = out.astype(out_ref.dtype)


def _im2col(x):
    """x: (n, CIN, 6, 6) NCHW -> (4*S*NP, CIN*9) bf16 patches.

    Row r = q*(S*NP) + s*NP + n  with q = hp*2+wp (position inside the 2x2 pool window),
    s = ph*3+pw (pooled spatial position), n = padded batch index; column f = ci*9+kh*3+kw
    (matches the OIHW conv-weight flatten).  Padded batch rows are zero.
    """
    n = x.shape[0]
    xb = x.astype(jnp.bfloat16)
    xp = jnp.pad(xb, ((0, 0), (0, 0), (1, 1), (1, 1)))
    cols = [xp[:, :, kh:kh + H, kw:kw + W] for kh in range(3) for kw in range(3)]
    p = jnp.stack(cols, axis=2)                      # (n, cin, kk, 6, 6)
    p = p.reshape(n, CIN, 9, 3, 2, 3, 2)             # (n, cin, kk, ph, hp, pw, wp)
    p = jnp.transpose(p, (4, 6, 3, 5, 0, 1, 2))      # (hp, wp, ph, pw, n, cin, kk)
    p = jnp.pad(p, ((0, 0),) * 4 + ((0, NP - n),) + ((0, 0),) * 2)
    return p.reshape(4 * S * NP, CIN * 9)


def prepare_params(params):
    """One-time repack of PyTorch-layout weights into fused, permuted, bf16 MXU layouts."""
    conv_w = params["W_conv"].reshape(COUT, CIN * 9).T.astype(jnp.bfloat16)   # (2304, 64)
    conv_b = params["b_conv"].reshape(1, COUT).astype(jnp.float32)
    # Kernel flat layout is (s, co) = s*64+co; PyTorch flatten of (N,64,3,3) is co*9+s.
    idx = (np.arange(COUT)[None, :] * S + np.arange(S)[:, None]).reshape(-1)  # idx[s*64+co]=co*9+s
    W_rp1 = np.asarray(params["W_rp1"], np.float32)      # (RP_DIM, 576+9)
    W_emb1 = np.asarray(params["W_emb1"], np.float32)    # (EMB_DIM, 576+10)
    w1 = np.zeros((KIN_PAD, H1), np.float32)             # cols [0:EMB_DIM]=emb, [EMB_DIM:]=rp
    w1[:FLAT, :EMB_DIM] = W_emb1[:, :FLAT].T[idx]
    w1[:FLAT, EMB_DIM:] = W_rp1[:, :FLAT].T[idx]
    w1[FLAT:FLAT + NUM_K, EMB_DIM:] = W_rp1[:, FLAT:].T                      # k -> rp branch
    w1[FLAT + NUM_K:FLAT + NUM_K + NUM_CLS, :EMB_DIM] = W_emb1[:, FLAT:].T   # c -> emb branch
    w1[KIN - 1, :EMB_DIM] = np.asarray(params["b_emb1"], np.float32)         # bias via 1.0 lane
    w1[KIN - 1, EMB_DIM:] = np.asarray(params["b_rp1"], np.float32)
    w2 = np.zeros((H1, OUT_PAD), np.float32)
    w2[:EMB_DIM, :EMB_DIM] = np.asarray(params["W_emb2"], np.float32).T
    w2[EMB_DIM:, EMB_DIM:EMB_DIM + 3] = np.asarray(params["W_rp2"], np.float32).T
    b2 = np.zeros((1, OUT_PAD), np.float32)
    b2[0, :EMB_DIM] = np.asarray(params["b_emb2"], np.float32)
    b2[0, EMB_DIM:EMB_DIM + 3] = np.asarray(params["b_rp2"], np.float32)
    return dict(conv_w=conv_w, conv_b=conv_b,
                w1=jnp.asarray(w1, jnp.bfloat16),
                w2=jnp.asarray(w2, jnp.bfloat16),
                b2=jnp.asarray(b2, jnp.float32))


@jax.jit
def roi_query_generator_forward(x, k, c, kparams):
    n = x.shape[0]
    assert n <= NP
    patches = _im2col(x)
    # Tiny per-call [k | c | 1.0] block, padded to NP rows (padded rows only feed padded
    # output rows, which are dropped below).
    kc = jnp.zeros((NP, NUM_K + NUM_CLS + 1), jnp.float32)
    kc = kc.at[:n, :NUM_K].set(k.reshape(n, -1).astype(jnp.float32))
    kc = kc.at[:n, NUM_K:NUM_K + NUM_CLS].set(c.astype(jnp.float32))
    kc = kc.at[:, NUM_K + NUM_CLS].set(1.0)                       # bias lane

    vmem = pl.BlockSpec(memory_space=pltpu.MemorySpace.VMEM)      # whole array resident in VMEM
    out = pl.pallas_call(
        roi_query_kernel,
        out_shape=jax.ShapeDtypeStruct((NP, OUT_PAD), jnp.float32),
        in_specs=[vmem] * 7,
        out_specs=vmem,
        scratch_shapes=[pltpu.VMEM((NP, KIN_PAD), jnp.float32)],  # fused layer-1 input rows
    )(patches, kc, kparams["conv_w"], kparams["conv_b"],
      kparams["w1"], kparams["w2"], kparams["b2"])

    roi_emb = out[:n, :EMB_DIM]
    roi_rp = out[:n, EMB_DIM:EMB_DIM + 3]
    return roi_emb, roi_rp


def init_params(key):
    ks = jax.random.split(key, 10)
    sc = 0.02
    return dict(
        W_conv=sc * jax.random.normal(ks[0], (COUT, CIN, 3, 3), jnp.float32),
        b_conv=sc * jax.random.normal(ks[1], (COUT,), jnp.float32),
        W_rp1=sc * jax.random.normal(ks[2], (RP_DIM, FLAT + NUM_K), jnp.float32),
        b_rp1=sc * jax.random.normal(ks[3], (RP_DIM,), jnp.float32),
        W_rp2=sc * jax.random.normal(ks[4], (3, RP_DIM), jnp.float32),
        b_rp2=sc * jax.random.normal(ks[5], (3,), jnp.float32),
        W_emb1=sc * jax.random.normal(ks[6], (EMB_DIM, FLAT + NUM_CLS), jnp.float32),
        b_emb1=sc * jax.random.normal(ks[7], (EMB_DIM,), jnp.float32),
        W_emb2=sc * jax.random.normal(ks[8], (EMB_DIM, EMB_DIM), jnp.float32),
        b_emb2=sc * jax.random.normal(ks[9], (EMB_DIM,), jnp.float32),
    )


def reference_forward(x, k, c, params):
    """Pure-JAX f32 reference mirroring the PyTorch forward (NCHW)."""
    n = x.shape[0]
    hp = jax.lax.Precision.HIGHEST
    y = jax.lax.conv_general_dilated(
        x, params["W_conv"], window_strides=(1, 1), padding=((1, 1), (1, 1)),
        dimension_numbers=("NCHW", "OIHW", "NCHW"), precision=hp)
    y = jnp.maximum(y + params["b_conv"][None, :, None, None], 0.0)
    y = y.reshape(n, COUT, 3, 2, 3, 2).max(axis=(3, 5))           # MaxPool2d(2,2)
    flat = y.reshape(n, -1)                                       # channel-major flatten
    xk = jnp.concatenate([flat, k.reshape(n, -1)], axis=1)
    h_rp = jnp.maximum(jnp.dot(xk, params["W_rp1"].T, precision=hp) + params["b_rp1"], 0.0)
    roi_rp = jnp.dot(h_rp, params["W_rp2"].T, precision=hp) + params["b_rp2"]
    xc = jnp.concatenate([flat, c], axis=1)
    h_emb = jnp.maximum(jnp.dot(xc, params["W_emb1"].T, precision=hp) + params["b_emb1"], 0.0)
    roi_emb = jnp.dot(h_emb, params["W_emb2"].T, precision=hp) + params["b_emb2"]
    return roi_emb, roi_rp


if __name__ == "__main__":
    key = jax.random.PRNGKey(0)
    kx, kk, kc_key, kp = jax.random.split(key, 4)
    x = jax.random.normal(kx, (N, CIN, H, W), jnp.float32)   # NCHW conv input
    k = jax.random.normal(kk, (N, NUM_K), jnp.float32)
    c = jax.random.normal(kc_key, (N, NUM_CLS), jnp.float32)
    params = init_params(kp)

    kparams = prepare_params(params)     # one-time weight repack (hoisted out of the forward)

    roi_emb, roi_rp = roi_query_generator_forward(x, k, c, kparams)
    jax.block_until_ready((roi_emb, roi_rp))

    ref_emb, ref_rp = reference_forward(x, k, c, params)
    np.testing.assert_allclose(np.asarray(roi_emb), np.asarray(ref_emb), rtol=2e-2, atol=2e-3)
    np.testing.assert_allclose(np.asarray(roi_rp), np.asarray(ref_rp), rtol=2e-2, atol=2e-3)

    assert roi_emb.shape == (N, EMB_DIM) and roi_rp.shape == (N, 3)
    print("KERNEL_OK")
</pallas_src>

<mosaic_0001>
module attributes {stable_mosaic.version = 11 : i64} {
  func.func @roi_query_kernel(%arg0: memref<288x2304xbf16, #tpu.memory_space<vmem>>, %arg1: memref<8x20xf32, #tpu.memory_space<vmem>>, %arg2: memref<2304x64xbf16, #tpu.memory_space<vmem>>, %arg3: memref<1x64xf32, #tpu.memory_space<vmem>>, %arg4: memref<640x512xbf16, #tpu.memory_space<vmem>>, %arg5: memref<512x384xbf16, #tpu.memory_space<vmem>>, %arg6: memref<1x384xf32, #tpu.memory_space<vmem>>, %arg7: memref<8x384xf32, #tpu.memory_space<vmem>>, %arg8: memref<8x640xf32, #tpu.memory_space<vmem>>) attributes {dimension_semantics = [], scalar_prefetch = 0 : i64, scratch_operands = 1 : i64, tpu.core_type = #tpu.core_type<tc>} {
    %c0 = arith.constant 0 : index
    %c0_0 = arith.constant 0 : index
    %0 = vector.load %arg0[%c0, %c0_0] : memref<288x2304xbf16, #tpu.memory_space<vmem>>, vector<288x2304xbf16>
    %c0_1 = arith.constant 0 : index
    %c0_2 = arith.constant 0 : index
    %1 = vector.load %arg2[%c0_1, %c0_2] : memref<2304x64xbf16, #tpu.memory_space<vmem>>, vector<2304x64xbf16>
    %cst = arith.constant dense<0.000000e+00> : vector<288x64xf32>
    %2 = tpu.matmul %0, %1, %cst {dimension_numbers = #tpu.dot_dimension_numbers<[1], [0], [0], [1], [0, 0, 1, 1], [], []>} : vector<288x2304xbf16>, vector<2304x64xbf16>, vector<288x64xf32> -> vector<288x64xf32>
    %c0_3 = arith.constant 0 : index
    %c0_4 = arith.constant 0 : index
    %3 = vector.load %arg3[%c0_3, %c0_4] : memref<1x64xf32, #tpu.memory_space<vmem>>, vector<1x64xf32>
    %4 = vector.broadcast %3 : vector<1x64xf32> to vector<288x64xf32>
    %5 = arith.addf %2, %4 : vector<288x64xf32>
    %cst_5 = arith.constant 0.000000e+00 : f32
    %6 = vector.broadcast %cst_5 : f32 to vector<288x64xf32>
    %7 = arith.maximumf %5, %6 : vector<288x64xf32>
    %8 = vector.extract_strided_slice %7 {offsets = [0, 0], sizes = [72, 64], strides = [1, 1]} : vector<288x64xf32> to vector<72x64xf32>
    %9 = vector.extract_strided_slice %7 {offsets = [72, 0], sizes = [72, 64], strides = [1, 1]} : vector<288x64xf32> to vector<72x64xf32>
    %10 = arith.maximumf %8, %9 : vector<72x64xf32>
    %11 = vector.extract_strided_slice %7 {offsets = [144, 0], sizes = [72, 64], strides = [1, 1]} : vector<288x64xf32> to vector<72x64xf32>
    %12 = vector.extract_strided_slice %7 {offsets = [216, 0], sizes = [72, 64], strides = [1, 1]} : vector<288x64xf32> to vector<72x64xf32>
    %13 = arith.maximumf %11, %12 : vector<72x64xf32>
    %14 = arith.maximumf %10, %13 : vector<72x64xf32>
    %cst_6 = arith.constant 0.000000e+00 : f32
    %15 = vector.broadcast %cst_6 : f32 to vector<8x640xf32>
    %c0_7 = arith.constant 0 : index
    %c0_8 = arith.constant 0 : index
    %16 = vector.load %arg8[%c0_7, %c0_8] : memref<8x640xf32, #tpu.memory_space<vmem>>, vector<8x640xf32>
    tpu.vector_store %arg8[%c0_7, %c0_8], %15 {strides = array<i32>} : memref<8x640xf32, #tpu.memory_space<vmem>>, vector<8x640xf32>,
    %17 = vector.extract_strided_slice %14 {offsets = [0, 0], sizes = [8, 64], strides = [1, 1]} : vector<72x64xf32> to vector<8x64xf32>
    %c0_9 = arith.constant 0 : index
    %c0_10 = arith.constant 0 : index
    %18 = vector.load %arg8[%c0_9, %c0_10] : memref<8x640xf32, #tpu.memory_space<vmem>>, vector<8x64xf32>
    tpu.vector_store %arg8[%c0_9, %c0_10], %17 {strides = array<i32>} : memref<8x640xf32, #tpu.memory_space<vmem>>, vector<8x64xf32>,
    %19 = vector.extract_strided_slice %14 {offsets = [8, 0], sizes = [8, 64], strides = [1, 1]} : vector<72x64xf32> to vector<8x64xf32>
    %c0_11 = arith.constant 0 : index
    %c64 = arith.constant 64 : index
    %20 = vector.load %arg8[%c0_11, %c64] : memref<8x640xf32, #tpu.memory_space<vmem>>, vector<8x64xf32>
    tpu.vector_store %arg8[%c0_11, %c64], %19 {strides = array<i32>} : memref<8x640xf32, #tpu.memory_space<vmem>>, vector<8x64xf32>,
    %21 = vector.extract_strided_slice %14 {offsets = [16, 0], sizes = [8, 64], strides = [1, 1]} : vector<72x64xf32> to vector<8x64xf32>
    %c0_12 = arith.constant 0 : index
    %c128 = arith.constant 128 : index
    %22 = vector.load %arg8[%c0_12, %c128] : memref<8x640xf32, #tpu.memory_space<vmem>>, vector<8x64xf32>
    tpu.vector_store %arg8[%c0_12, %c128], %21 {strides = array<i32>} : memref<8x640xf32, #tpu.memory_space<vmem>>, vector<8x64xf32>,
    %23 = vector.extract_strided_slice %14 {offsets = [24, 0], sizes = [8, 64], strides = [1, 1]} : vector<72x64xf32> to vector<8x64xf32>
    %c0_13 = arith.constant 0 : index
    %c192 = arith.constant 192 : index
    %24 = vector.load %arg8[%c0_13, %c192] : memref<8x640xf32, #tpu.memory_space<vmem>>, vector<8x64xf32>
    tpu.vector_store %arg8[%c0_13, %c192], %23 {strides = array<i32>} : memref<8x640xf32, #tpu.memory_space<vmem>>, vector<8x64xf32>,
    %25 = vector.extract_strided_slice %14 {offsets = [32, 0], sizes = [8, 64], strides = [1, 1]} : vector<72x64xf32> to vector<8x64xf32>
    %c0_14 = arith.constant 0 : index
    %c256 = arith.constant 256 : index
    %26 = vector.load %arg8[%c0_14, %c256] : memref<8x640xf32, #tpu.memory_space<vmem>>, vector<8x64xf32>
    tpu.vector_store %arg8[%c0_14, %c256], %25 {strides = array<i32>} : memref<8x640xf32, #tpu.memory_space<vmem>>, vector<8x64xf32>,
    %27 = vector.extract_strided_slice %14 {offsets = [40, 0], sizes = [8, 64], strides = [1, 1]} : vector<72x64xf32> to vector<8x64xf32>
    %c0_15 = arith.constant 0 : index
    %c320 = arith.constant 320 : index
    %28 = vector.load %arg8[%c0_15, %c320] : memref<8x640xf32, #tpu.memory_space<vmem>>, vector<8x64xf32>
    tpu.vector_store %arg8[%c0_15, %c320], %27 {strides = array<i32>} : memref<8x640xf32, #tpu.memory_space<vmem>>, vector<8x64xf32>,
    %29 = vector.extract_strided_slice %14 {offsets = [48, 0], sizes = [8, 64], strides = [1, 1]} : vector<72x64xf32> to vector<8x64xf32>
    %c0_16 = arith.constant 0 : index
    %c384 = arith.constant 384 : index
    %30 = vector.load %arg8[%c0_16, %c384] : memref<8x640xf32, #tpu.memory_space<vmem>>, vector<8x64xf32>
    tpu.vector_store %arg8[%c0_16, %c384], %29 {strides = array<i32>} : memref<8x640xf32, #tpu.memory_space<vmem>>, vector<8x64xf32>,
    %31 = vector.extract_strided_slice %14 {offsets = [56, 0], sizes = [8, 64], strides = [1, 1]} : vector<72x64xf32> to vector<8x64xf32>
    %c0_17 = arith.constant 0 : index
    %c448 = arith.constant 448 : index
    %32 = vector.load %arg8[%c0_17, %c448] : memref<8x640xf32, #tpu.memory_space<vmem>>, vector<8x64xf32>
    tpu.vector_store %arg8[%c0_17, %c448], %31 {strides = array<i32>} : memref<8x640xf32, #tpu.memory_space<vmem>>, vector<8x64xf32>,
    %33 = vector.extract_strided_slice %14 {offsets = [64, 0], sizes = [8, 64], strides = [1, 1]} : vector<72x64xf32> to vector<8x64xf32>
    %c0_18 = arith.constant 0 : index
    %c512 = arith.constant 512 : index
    %34 = vector.load %arg8[%c0_18, %c512] : memref<8x640xf32, #tpu.memory_space<vmem>>, vector<8x64xf32>
    tpu.vector_store %arg8[%c0_18, %c512], %33 {strides = array<i32>} : memref<8x640xf32, #tpu.memory_space<vmem>>, vector<8x64xf32>,
    %c0_19 = arith.constant 0 : index
    %c0_20 = arith.constant 0 : index
    %35 = vector.load %arg1[%c0_19, %c0_20] : memref<8x20xf32, #tpu.memory_space<vmem>>, vector<8x20xf32>
    %c0_21 = arith.constant 0 : index
    %c576 = arith.constant 576 : index
    %36 = vector.load %arg8[%c0_21, %c576] : memref<8x640xf32, #tpu.memory_space<vmem>>, vector<8x20xf32>
    tpu.vector_store %arg8[%c0_21, %c576], %35 {strides = array<i32>} : memref<8x640xf32, #tpu.memory_space<vmem>>, vector<8x20xf32>,
    %c0_22 = arith.constant 0 : index
    %c0_23 = arith.constant 0 : index
    %37 = vector.load %arg8[%c0_22, %c0_23] : memref<8x640xf32, #tpu.memory_space<vmem>>, vector<8x640xf32>
    %38 = arith.truncf %37 : vector<8x640xf32> to vector<8x640xbf16>
    %c0_24 = arith.constant 0 : index
    %c0_25 = arith.constant 0 : index
    %39 = vector.load %arg4[%c0_24, %c0_25] : memref<640x512xbf16, #tpu.memory_space<vmem>>, vector<640x512xbf16>
    %cst_26 = arith.constant dense<0.000000e+00> : vector<8x512xf32>
    %40 = tpu.matmul %38, %39, %cst_26 {dimension_numbers = #tpu.dot_dimension_numbers<[1], [0], [0], [1], [0, 0, 1, 1], [], []>} : vector<8x640xbf16>, vector<640x512xbf16>, vector<8x512xf32> -> vector<8x512xf32>
    %cst_27 = arith.constant 0.000000e+00 : f32
    %41 = vector.broadcast %cst_27 : f32 to vector<8x512xf32>
    %42 = arith.maximumf %40, %41 : vector<8x512xf32>
    %43 = arith.truncf %42 : vector<8x512xf32> to vector<8x512xbf16>
    %c0_28 = arith.constant 0 : index
    %c0_29 = arith.constant 0 : index
    %44 = vector.load %arg5[%c0_28, %c0_29] : memref<512x384xbf16, #tpu.memory_space<vmem>>, vector<512x384xbf16>
    %cst_30 = arith.constant dense<0.000000e+00> : vector<8x384xf32>
    %45 = tpu.matmul %43, %44, %cst_30 {dimension_numbers = #tpu.dot_dimension_numbers<[1], [0], [0], [1], [0, 0, 1, 1], [], []>} : vector<8x512xbf16>, vector<512x384xbf16>, vector<8x384xf32> -> vector<8x384xf32>
    %c0_31 = arith.constant 0 : index
    %c0_32 = arith.constant 0 : index
    %46 = vector.load %arg6[%c0_31, %c0_32] : memref<1x384xf32, #tpu.memory_space<vmem>>, vector<1x384xf32>
    %47 = vector.broadcast %46 : vector<1x384xf32> to vector<8x384xf32>
    %48 = arith.addf %45, %47 : vector<8x384xf32>
    %c0_33 = arith.constant 0 : index
    %c0_34 = arith.constant 0 : index
    %49 = vector.load %arg7[%c0_33, %c0_34] : memref<8x384xf32, #tpu.memory_space<vmem>>, vector<8x384xf32>
    tpu.vector_store %arg7[%c0_33, %c0_34], %48 {strides = array<i32>} : memref<8x384xf32, #tpu.memory_space<vmem>>, vector<8x384xf32>,
    return
  }
}

</mosaic_0001>

<bundles_post_ra>
// kernel: roi_query_generator_forward.1
= control target key start
LH: loop header
LB: loop body
LE: loop exit
PB: predicated region body
PF: predicated region fallthrough
CT: control target
= control target key end

     0   :  { %v12070_v0 = vmov 0   ;;  %vm4791_vm0 = vcmask 523264   ;;  %s9243_s14 = smov 64   ;;  %vm4797_vm1 = vcmask 1048064   ;;  %vm4823_vm2 = vcmask 687616   ;;  %s12062_s2 = inlined_call_operand.vmem [shape: bf16[2304,64], index: 2, kind: input, shape index: {}]   ;;  %s12063_s0 = inlined_call_operand.vmem [shape: bf16[288,2304], index: 0, kind: input, shape index: {}]   ;;  %s12064_s3 = inlined_call_operand.vmem [shape: f32[1,64], index: 3, kind: input, shape index: {}]   ;;  %s12065_s4 = inlined_call_operand.vmem [shape: bf16[640,512], index: 4, kind: input, shape index: {}]   ;;  %s12066_s1 = inlined_call_operand.vmem [shape: f32[8,20], index: 1, kind: input, shape index: {}]   ;;  %s12067_s5 = inlined_call_operand.vmem [shape: bf16[512,384], index: 5, kind: input, shape index: {}]   ;;  %s12068_s6 = inlined_call_operand.vmem [shape: f32[1,384], index: 6, kind: input, shape index: {}]   ;;  %s12069_s7 = inlined_call_operand.vmem [shape: f32[8,384], index: 7, kind: output, shape index: {}]  }
   0x1   :  { %3484 = vmatprep.subr.bf16.mxu0 %v12070_v0  ;;  %v8243_v1 = vld [vmem:[%s12062_s2 + $0x100] sm:$0xff]   ;;  %3130 = vmatprep.subr.bf16.mxu1 %v12070_v0  ;;  %v8244_v2 = vld [vmem:[%s12062_s2 + $0x108] sm:$0xff]   ;;  %v8245_v3 = vld [vmem:[%s12062_s2 + $0x110] sm:$0xff]  }
   0x2   :  { %3485 = vmatpush1.bf16.msra.mxu0 %v8243_v1  ;;  %v8246_v4 = vld [vmem:[%s12062_s2 + $0x118] sm:$0xff]   ;;  %v8247_v5 = vld [vmem:[%s12062_s2 + $0x120] sm:$0xff]   ;;  %v8248_v7 = vld [vmem:[%s12062_s2 + $0x128] sm:$0xff]  }
   0x3   :  { %3486 = vmatprep.subr.bf16.mxu0 %v12070_v0  ;;  %v8261_v6 = vld [vmem:[%s12063_s0 + $0x14] ss:$72 sps:$4 sm:$0xff]   ;;  %v8251_v10 = vld [vmem:[%s12062_s2 + $0x140] sm:$0xff]   ;;  %v8252_v11 = vld [vmem:[%s12062_s2 + $0x148] sm:$0xff]  }
   0x4   :  { %3516 = vmatprep.mubr.bf16.mxu0 %v8261_v6  ;;  %v8249_v8 = vld [vmem:[%s12062_s2 + $0x130] sm:$0xff]   ;;  %v8250_v9 = vld [vmem:[%s12062_s2 + $0x138] sm:$0xff]   ;;  %v8255_v14 = vld [vmem:[%s12062_s2 + $0x160] sm:$0xff]  }
   0x5   :  { %v8253_v12 = vld [vmem:[%s12062_s2 + $0x150] sm:$0xff]   ;;  %v8254_v13 = vld [vmem:[%s12062_s2 + $0x158] sm:$0xff]   ;;  %v8256_v15 = vld [vmem:[%s12062_s2 + $0x168] sm:$0xff]  }
   0x6   :  { %3487 = vmatpush1.bf16.msra.mxu0 %v8244_v2  ;;  %v8257_v16 = vld [vmem:[%s12062_s2 + $0x170] sm:$0xff]   ;;  %v8258_v17 = vld [vmem:[%s12062_s2 + $0x178] sm:$0xff]   ;;  %v8262_v19 = vld [vmem:[%s12062_s2 + $0x180] sm:$0xff]  }
   0x7   :  { %3488 = vmatprep.subr.bf16.mxu0 %v12070_v0  ;;  %v8259_v18 = vld [vmem:[%s12063_s0 + $0x10] ss:$72 sps:$4 sm:$0xff]   ;;  %v8263_v20 = vld [vmem:[%s12063_s0 + $0xa4] ss:$72 sps:$4 sm:$0xff]   ;;  %v8265_v22 = vld [vmem:[%s12063_s0 + $0xa0] ss:$72 sps:$4 sm:$0xff]  }
   0x8   :  { %v8266_v21 = vld [vmem:[%s12062_s2 + $0x188] sm:$0xff]   ;;  %v8267_v23 = vld [vmem:[%s12063_s0 + $0x134] ss:$72 sps:$4 sm:$0xff]   ;;  %v8269_v26 = vld [vmem:[%s12063_s0 + $0x130] ss:$72 sps:$4 sm:$0xff]  }
   0x9   :  { %v8270_v24 = vld [vmem:[%s12062_s2 + $0x190] sm:$0xff]   ;;  %v8274_v25 = vld [vmem:[%s12062_s2 + $0x198] sm:$0xff]   ;;  %v8271_v27 = vld [vmem:[%s12063_s0 + $0x1c4] ss:$72 sps:$4 sm:$0xff]  }
   0xa   :  { %3489 = vmatpush1.bf16.msra.mxu0 %v8245_v3  ;;  %v8278_v28 = vld [vmem:[%s12062_s2 + $0x1a0] sm:$0xff]   ;;  %v8282_v29 = vld [vmem:[%s12062_s2 + $0x1a8] sm:$0xff]   ;;  %v8275_v31 = vld [vmem:[%s12063_s0 + $0x254] ss:$72 sps:$4 sm:$0xff]  }
   0xb   :  { %3490 = vmatprep.subr.bf16.mxu0 %v12070_v0  ;;  %v8273_v30 = vld [vmem:[%s12063_s0 + $0x1c0] ss:$72 sps:$4 sm:$0xff]   ;;  %v8288_v32 = vld [vmem:[%s12062_s2 + $0x1b0] sm:$0xff]   ;;  %v8293_v33 = vld [vmem:[%s12062_s2 + $0x1b8] sm:$0xff]  }
   0xc   :  { %v8277_v34 = vld [vmem:[%s12063_s0 + $0x250] ss:$72 sps:$4 sm:$0xff]   ;;  %v8279_v35 = vld [vmem:[%s12063_s0 + $0x2e4] ss:$72 sps:$4 sm:$0xff]   ;;  %v8281_v38 = vld [vmem:[%s12063_s0 + $0x2e0] ss:$72 sps:$4 sm:$0xff]  }
   0xd   :  { %v8297_v36 = vld [vmem:[%s12062_s2 + $0x1c0] sm:$0xff]   ;;  %v8301_v37 = vld [vmem:[%s12062_s2 + $0x1c8] sm:$0xff]   ;;  %v8283_v39 = vld [vmem:[%s12063_s0 + $0x374] ss:$72 sps:$4 sm:$0xff]  }
   0xe   :  { %3491 = vmatpush1.bf16.msra.mxu0 %v8246_v4  ;;  %v8305_v40 = vld [vmem:[%s12062_s2 + $0x1d0] sm:$0xff]   ;;  %v8309_v41 = vld [vmem:[%s12062_s2 + $0x1d8] sm:$0xff]   ;;  %v8286_v43 = vld [vmem:[%s12063_s0 + $0x404] ss:$72 sps:$4 sm:$0xff]  }
   0xf   :  { %3492 = vmatprep.subr.bf16.mxu0 %v12070_v0  ;;  %v8285_v42 = vld [vmem:[%s12063_s0 + $0x370] ss:$72 sps:$4 sm:$0xff]   ;;  %v8313_v44 = vld [vmem:[%s12062_s2 + $0x1e0] sm:$0xff]   ;;  %v8317_v45 = vld [vmem:[%s12062_s2 + $0x1e8] sm:$0xff]  }
  0x10   :  { %v8289_v46 = vld [vmem:[%s12063_s0 + $0x400] ss:$72 sps:$4 sm:$0xff]   ;;  %v8290_v47 = vld [vmem:[%s12063_s0 + $0x494] ss:$72 sps:$4 sm:$0xff]   ;;  %v8292_v50 = vld [vmem:[%s12063_s0 + $0x490] ss:$72 sps:$4 sm:$0xff]  }
  0x11   :  { %v8323_v48 = vld [vmem:[%s12062_s2 + $0x1f0] sm:$0xff]   ;;  %v8328_v49 = vld [vmem:[%s12062_s2 + $0x1f8] sm:$0xff]   ;;  %v8294_v51 = vld [vmem:[%s12063_s0 + $0x524] ss:$72 sps:$4 sm:$0xff]  }
  0x12   :  { %3493 = vmatpush1.bf16.msra.mxu0 %v8247_v5  ;;  %v8296_v52 = vld [vmem:[%s12063_s0 + $0x520] ss:$72 sps:$4 sm:$0xff]   ;;  %v8298_v53 = vld [vmem:[%s12063_s0 + $0x5b4] ss:$72 sps:$4 sm:$0xff]   ;;  %v8300_v54 = vld [vmem:[%s12063_s0 + $0x5b0] ss:$72 sps:$4 sm:$0xff]  }
  0x13   :  { %3494 = vmatprep.subr.bf16.mxu0 %v12070_v0  ;;  %v8302_v55 = vld [vmem:[%s12063_s0 + $0x644] ss:$72 sps:$4 sm:$0xff]   ;;  %v8304_v56 = vld [vmem:[%s12063_s0 + $0x640] ss:$72 sps:$4 sm:$0xff]   ;;  %v8306_v57 = vld [vmem:[%s12063_s0 + $0x6d4] ss:$72 sps:$4 sm:$0xff]  }
  0x14   :  { %v8308_v58 = vld [vmem:[%s12063_s0 + $0x6d0] ss:$72 sps:$4 sm:$0xff]   ;;  %v8310_v59 = vld [vmem:[%s12063_s0 + $0x764] ss:$72 sps:$4 sm:$0xff]   ;;  %v8312_v60 = vld [vmem:[%s12063_s0 + $0x760] ss:$72 sps:$4 sm:$0xff]  }
  0x15   :  { %v8314_v61 = vld [vmem:[%s12063_s0 + $0x7f4] ss:$72 sps:$4 sm:$0xff]   ;;  %v8316_v62 = vld [vmem:[%s12063_s0 + $0x7f0] ss:$72 sps:$4 sm:$0xff]   ;;  %v8318_v63 = vld [vmem:[%s12063_s0 + $0x884] ss:$72 sps:$4 sm:$0xff]  }
  0x16   :  { %3495 = vmatpush1.bf16.msra.mxu0 %v8248_v7  ;;  %v8320_v1 = vld [vmem:[%s12063_s0 + $0x880] ss:$72 sps:$4 sm:$0xff]   ;;  %v8321_v2 = vld [vmem:[%s12063_s0 + $0x914] ss:$72 sps:$4 sm:$0xff]   ;;  %v8324_v4 = vld [vmem:[%s12063_s0 + $0x910] ss:$72 sps:$4 sm:$0xff]  }
  0x17   :  { %3496 = vmatprep.subr.bf16.mxu0 %v12070_v0  ;;  %v8383_v3 = vld [vmem:[%s12062_s2] sm:$0xff]   ;;  %v8388_v6 = vld [vmem:[%s12062_s2 + $0x8] sm:$0xff]   ;;  %v8389_v7 = vld [vmem:[%s12062_s2 + $0x10] sm:$0xff]  }
  0x18   :  { %3131 = vmatpush1.bf16.msra.mxu1 %v8383_v3  ;;  %v8325_v5 = vld [vmem:[%s12063_s0 + $0x9a4] ss:$72 sps:$4 sm:$0xff]  }
  0x19   :  { %3132 = vmatprep.subr.bf16.mxu1 %v12070_v0  ;;  %v8368_v3 = vld [vmem:[%s12063_s0 + $0x5bc] ss:$72 sps:$4 sm:$0xff]  }
  0x1a   :  { %3497 = vmatpush1.bf16.msra.mxu0 %v8249_v8  ;;  %v8327_v8 = vld [vmem:[%s12063_s0 + $0x9a0] ss:$72 sps:$4 sm:$0xff]  }
  0x1b   :  { %3498 = vmatprep.subr.bf16.mxu0 %v12070_v0 }
  0x1c   :  { %3133 = vmatpush1.bf16.msra.mxu1 %v8388_v6  ;;  %v8370_v6 = vld [vmem:[%s12063_s0 + $0x5b8] ss:$72 sps:$4 sm:$0xff]  }
  0x1d   :  { %3134 = vmatprep.subr.bf16.mxu1 %v12070_v0 }
  0x1e   :  { %3499 = vmatpush1.bf16.msra.mxu0 %v8250_v9  ;;  %v8331_v9 = vld [vmem:[%s12063_s0 + $0x1c] ss:$72 sps:$4 sm:$0xff]  }
  0x1f   :  { %3500 = vmatprep.subr.bf16.mxu0 %v12070_v0 }
  0x20   :  { %3135 = vmatpush1.bf16.msra.mxu1 %v8389_v7  ;;  %v8372_v7 = vld [vmem:[%s12063_s0 + $0x64c] ss:$72 sps:$4 sm:$0xff]  }
  0x21   :  { %3136 = vmatprep.subr.bf16.mxu1 %v12070_v0 }
  0x22   :  { %3501 = vmatpush1.bf16.msra.mxu0 %v8251_v10  ;;  %v8394_v10 = vld [vmem:[%s12062_s2 + $0x18] sm:$0xff]  }
  0x23   :  { %3502 = vmatprep.subr.bf16.mxu0 %v12070_v0 }
  0x24   :  { %3137 = vmatpush1.bf16.msra.mxu1 %v8394_v10  ;;  %v8374_v10 = vld [vmem:[%s12063_s0 + $0x648] ss:$72 sps:$4 sm:$0xff]  }
  0x25   :  { %3138 = vmatprep.subr.bf16.mxu1 %v12070_v0 }
  0x26   :  { %3503 = vmatpush1.bf16.msra.mxu0 %v8252_v11  ;;  %v8395_v11 = vld [vmem:[%s12062_s2 + $0x20] sm:$0xff]  }
  0x27   :  { %3504 = vmatprep.subr.bf16.mxu0 %v12070_v0 }
  0x28   :  { %3139 = vmatpush1.bf16.msra.mxu1 %v8395_v11  ;;  %v8376_v11 = vld [vmem:[%s12063_s0 + $0x6dc] ss:$72 sps:$4 sm:$0xff]  }
  0x29   :  { %3140 = vmatprep.subr.bf16.mxu1 %v12070_v0 }
  0x2a   :  { %3505 = vmatpush1.bf16.msra.mxu0 %v8253_v12  ;;  %v8329_v12 = vld [vmem:[%s12063_s0 + $0x18] ss:$72 sps:$4 sm:$0xff]  }
  0x2b   :  { %3506 = vmatprep.subr.bf16.mxu0 %v12070_v0 }
  0x2e   :  { %3507 = vmatpush1.bf16.msra.mxu0 %v8254_v13  ;;  %v8332_v13 = vld [vmem:[%s12062_s2 + $0x200] sm:$0xff]  }
  0x2f   :  { %3508 = vmatprep.subr.bf16.mxu0 %v12070_v0 }
  0x32   :  { %3509 = vmatpush1.bf16.msra.mxu0 %v8255_v14  ;;  %v8333_v14 = vld [vmem:[%s12063_s0 + $0xac] ss:$72 sps:$4 sm:$0xff]  }
  0x33   :  { %3510 = vmatprep.subr.bf16.mxu0 %v12070_v0 }
  0x36   :  { %3511 = vmatpush1.bf16.msra.mxu0 %v8256_v15  ;;  %v8400_v15 = vld [vmem:[%s12062_s2 + $0x28] sm:$0xff]  }
  0x37   :  { %3512 = vmatprep.subr.bf16.mxu0 %v12070_v0  ;;  %3141 = vmatpush1.bf16.msra.mxu1 %v8400_v15  ;;  %v8380_v15 = vld [vmem:[%s12063_s0 + $0x76c] ss:$72 sps:$4 sm:$0xff]  }
  0x38   :  { %3142 = vmatprep.subr.bf16.mxu1 %v12070_v0 }
  0x3a   :  { %3513 = vmatpush1.bf16.msra.mxu0 %v8257_v16  ;;  %v8401_v16 = vld [vmem:[%s12062_s2 + $0x30] sm:$0xff]  }
  0x3b   :  { %3514 = vmatprep.subr.bf16.mxu0 %v12070_v0  ;;  %3143 = vmatpush1.bf16.msra.mxu1 %v8401_v16  ;;  %v8479_v16 = vld [vmem:[%s12063_s0 + $0x3f4] ss:$72 sps:$4 sm:$0xff]  }
  0x3c   :  { %3144 = vmatprep.subr.bf16.mxu1 %v12070_v0 }
  0x3e   :  { %3515 = vmatpush1.bf16.msra.mxu0 %v8258_v17  ;;  %v8336_v17 = vld [vmem:[%s12062_s2 + $0x208] sm:$0xff]  }
  0x3f   :  { %3661 = vmatprep.subr.bf16.mxu0 %v12070_v0 }
  0x41   :  { %3517 = vmatmul.mubr.bf16.vlgmr.msra.gmra.mrb[0].mxu0 %v8259_v18  ;;  %v8335_v18 = vld [vmem:[%s12063_s0 + $0xa8] ss:$72 sps:$4 sm:$0xff]  }
  0x42   :  { %3662 = vmatpush1.bf16.msra.mxu0 %v8262_v19  ;;  %3524 = vmatprep.mubr.bf16.mxu0 %v8263_v20  ;;  %v8337_v19 = vld [vmem:[%s12063_s0 + $0x13c] ss:$72 sps:$4 sm:$0xff]   ;;  %v8340_v20 = vld [vmem:[%s12062_s2 + $0x210] sm:$0xff]  }
  0x43   :  { %3663 = vmatprep.subr.bf16.mxu0 %v12070_v0 }
  0x46   :  { %3664 = vmatpush1.bf16.msra.mxu0 %v8266_v21  ;;  %v8406_v21 = vld [vmem:[%s12062_s2 + $0x38] sm:$0xff]  }
  0x47   :  { %3665 = vmatprep.subr.bf16.mxu0 %v12070_v0  ;;  %3145 = vmatpush1.bf16.msra.mxu1 %v8406_v21  ;;  %v8488_v21 = vld [vmem:[%s12063_s0 + $0x480] ss:$72 sps:$4 sm:$0xff]  }
  0x48   :  { %3146 = vmatprep.subr.bf16.mxu1 %v12070_v0 }
  0x49   :  { %3525 = vmatmul.mubr.bf16.gmra.mrb[4].mxu0 %v8265_v22  ;;  %v8407_v22 = vld [vmem:[%s12062_s2 + $0x40] sm:$0xff]  }
  0x4a   :  { %3532 = vmatprep.mubr.bf16.mxu0 %v8267_v23  ;;  %3666 = vmatpush1.bf16.msra.mxu0 %v8270_v24  ;;  %v8344_v23 = vld [vmem:[%s12062_s2 + $0x218] sm:$0xff]  }
  0x4b   :  { %3667 = vmatprep.subr.bf16.mxu0 %v12070_v0  ;;  %v8339_v24 = vld [vmem:[%s12063_s0 + $0x138] ss:$72 sps:$4 sm:$0xff]   ;;  %3147 = vmatpush1.bf16.msra.mxu1 %v8407_v22 }
  0x4c   :  { %3148 = vmatprep.subr.bf16.mxu1 %v12070_v0  ;;  %v8387_v22 = vld [vmem:[%s12063_s0 + $0x7f8] ss:$72 sps:$4 sm:$0xff]  }
  0x4e   :  { %3668 = vmatpush1.bf16.msra.mxu0 %v8274_v25  ;;  %v8341_v25 = vld [vmem:[%s12063_s0 + $0x1cc] ss:$72 sps:$4 sm:$0xff]  }
  0x4f   :  { %3669 = vmatprep.subr.bf16.mxu0 %v12070_v0 }
  0x51   :  { %3533 = vmatmul.mubr.bf16.gmra.mrb[8].mxu0 %v8269_v26  ;;  %v8348_v26 = vld [vmem:[%s12062_s2 + $0x220] sm:$0xff]  }
  0x52   :  { %3540 = vmatprep.mubr.bf16.mxu0 %v8271_v27  ;;  %3670 = vmatpush1.bf16.msra.mxu0 %v8278_v28  ;;  %v8411_v27 = vld [vmem:[%s12062_s2 + $0x48] sm:$0xff]  }
  0x53   :  { %3671 = vmatprep.subr.bf16.mxu0 %v12070_v0  ;;  %3149 = vmatpush1.bf16.msra.mxu1 %v8411_v27  ;;  %v8352_v28 = vld [vmem:[%s12062_s2 + $0x228] sm:$0xff]   ;;  %v8396_v27 = vld [vmem:[%s12063_s0 + $0x91c] ss:$72 sps:$4 sm:$0xff]  }
  0x54   :  { %3150 = vmatprep.subr.bf16.mxu1 %v12070_v0 }
  0x56   :  { %3672 = vmatpush1.bf16.msra.mxu0 %v8282_v29  ;;  %v8413_v29 = vld [vmem:[%s12062_s2 + $0x50] sm:$0xff]  }
  0x57   :  { %3673 = vmatprep.subr.bf16.mxu0 %v12070_v0  ;;  %3151 = vmatpush1.bf16.msra.mxu1 %v8413_v29  ;;  %v8501_v29 = vld [vmem:[%s12063_s0 + $0x5a0] ss:$72 sps:$4 sm:$0xff]  }
  0x58   :  { %3152 = vmatprep.subr.bf16.mxu1 %v12070_v0 }
  0x59   :  { %3541 = vmatmul.mubr.bf16.gmra.mrb[12].mxu0 %v8273_v30  ;;  %v8343_v30 = vld [vmem:[%s12063_s0 + $0x1c8] ss:$72 sps:$4 sm:$0xff]  }
  0x5a   :  { %3548 = vmatprep.mubr.bf16.mxu0 %v8275_v31  ;;  %3674 = vmatpush1.bf16.msra.mxu0 %v8288_v32  ;;  %v8345_v31 = vld [vmem:[%s12063_s0 + $0x25c] ss:$72 sps:$4 sm:$0xff]   ;;  %v8358_v32 = vld [vmem:[%s12062_s2 + $0x230] sm:$0xff]  }
  0x5b   :  { %3675 = vmatprep.subr.bf16.mxu0 %v12070_v0 }
  0x5e   :  { %3676 = vmatpush1.bf16.msra.mxu0 %v8293_v33  ;;  %v8417_v33 = vld [vmem:[%s12062_s2 + $0x58] sm:$0xff]  }
  0x5f   :  { %3677 = vmatprep.subr.bf16.mxu0 %v12070_v0  ;;  %3153 = vmatpush1.bf16.msra.mxu1 %v8417_v33  ;;  %v8507_v33 = vld [vmem:[%s12062_s2 + $0x88] sm:$0xff]  }
  0x60   :  { %3154 = vmatprep.subr.bf16.mxu1 %v12070_v0 }
  0x61   :  { %3549 = vmatmul.mubr.bf16.gmra.mrb[16].mxu0 %v8277_v34  ;;  %v8419_v34 = vld [vmem:[%s12062_s2 + $0x60] sm:$0xff]  }
  0x62   :  { %3556 = vmatprep.mubr.bf16.mxu0 %v8279_v35  ;;  %3678 = vmatpush1.bf16.msra.mxu0 %v8297_v36  ;;  %v8363_v35 = vld [vmem:[%s12062_s2 + $0x238] sm:$0xff]  }
  0x63   :  { %3679 = vmatprep.subr.bf16.mxu0 %v12070_v0  ;;  %v8347_v36 = vld [vmem:[%s12063_s0 + $0x258] ss:$72 sps:$4 sm:$0xff]   ;;  %3155 = vmatpush1.bf16.msra.mxu1 %v8419_v34  ;;  %v8508_v34 = vld [vmem:[%s12063_s0 + $0x634] ss:$72 sps:$4 sm:$0xff]  }
  0x64   :  { %3156 = vmatprep.subr.bf16.mxu1 %v12070_v0 }
  0x66   :  { %3680 = vmatpush1.bf16.msra.mxu0 %v8301_v37  ;;  %v8349_v37 = vld [vmem:[%s12063_s0 + $0x2ec] ss:$72 sps:$4 sm:$0xff]  }
  0x67   :  { %3681 = vmatprep.subr.bf16.mxu0 %v12070_v0 }
  0x69   :  { %3557 = vmatmul.mubr.bf16.gmra.mrb[20].mxu0 %v8281_v38  ;;  %v8367_v38 = vld [vmem:[%s12062_s2 + $0x240] sm:$0xff]  }
  0x6a   :  { %3564 = vmatprep.mubr.bf16.mxu0 %v8283_v39  ;;  %3682 = vmatpush1.bf16.msra.mxu0 %v8305_v40  ;;  %v8423_v39 = vld [vmem:[%s12062_s2 + $0x68] sm:$0xff]   ;;  %v8425_v40 = vld [vmem:[%s12062_s2 + $0x70] sm:$0xff]  }
  0x6b   :  { %3683 = vmatprep.subr.bf16.mxu0 %v12070_v0  ;;  %3157 = vmatpush1.bf16.msra.mxu1 %v8423_v39  ;;  %v8516_v39 = vld [vmem:[%s12062_s2 + $0x98] sm:$0xff]  }
  0x6c   :  { %3158 = vmatprep.subr.bf16.mxu1 %v12070_v0 }
  0x6e   :  { %3684 = vmatpush1.bf16.msra.mxu0 %v8309_v41  ;;  %v8371_v41 = vld [vmem:[%s12062_s2 + $0x248] sm:$0xff]  }
  0x6f   :  { %3685 = vmatprep.subr.bf16.mxu0 %v12070_v0  ;;  %3159 = vmatpush1.bf16.msra.mxu1 %v8425_v40  ;;  %v8517_v40 = vld [vmem:[%s12063_s0 + $0x6c4] ss:$72 sps:$4 sm:$0xff]  }
  0x70   :  { %3160 = vmatprep.subr.bf16.mxu1 %v12070_v0 }
  0x71   :  { %3565 = vmatmul.mubr.bf16.gmra.mrb[24].mxu0 %v8285_v42  ;;  %v8351_v42 = vld [vmem:[%s12063_s0 + $0x2e8] ss:$72 sps:$4 sm:$0xff]  }
  0x72   :  { %3572 = vmatprep.mubr.bf16.mxu0 %v8286_v43  ;;  %3686 = vmatpush1.bf16.msra.mxu0 %v8313_v44  ;;  %v8353_v43 = vld [vmem:[%s12063_s0 + $0x37c] ss:$72 sps:$4 sm:$0xff]   ;;  %v8375_v44 = vld [vmem:[%s12062_s2 + $0x250] sm:$0xff]  }
  0x73   :  { %3687 = vmatprep.subr.bf16.mxu0 %v12070_v0 }
  0x76   :  { %3688 = vmatpush1.bf16.msra.mxu0 %v8317_v45  ;;  %v8429_v45 = vld [vmem:[%s12062_s2 + $0x78] sm:$0xff]  }
  0x77   :  { %3689 = vmatprep.subr.bf16.mxu0 %v12070_v0  ;;  %3161 = vmatpush1.bf16.msra.mxu1 %v8429_v45  ;;  %v8414_v45 = vld [vmem:[%s12063_s0 + $0xb4] ss:$72 sps:$4 sm:$0xff]  }
  0x78   :  { %3307 = vmatprep.subr.bf16.mxu1 %v12070_v0 }
  0x79   :  { %3573 = vmatmul.mubr.bf16.gmra.mrb[28].mxu0 %v8289_v46  ;;  %v8430_v46 = vld [vmem:[%s12063_s0] ss:$72 sps:$4 sm:$0xff]  }
  0x7a   :  { %3580 = vmatprep.mubr.bf16.mxu0 %v8290_v47  ;;  %3690 = vmatpush1.bf16.msra.mxu0 %v8323_v48  ;;  %v8432_v47 = vld [vmem:[%s12063_s0 + $0x4] ss:$72 sps:$4 sm:$0xff]   ;;  %v8379_v48 = vld [vmem:[%s12062_s2 + $0x258] sm:$0xff]  }
  0x7b   :  { %3691 = vmatprep.subr.bf16.mxu0 %v12070_v0  ;;  %3162 = vmatprep.mubr.bf16.mxu1 %v8432_v47  ;;  %v8526_v47 = vld [vmem:[%s12063_s0 + $0x754] ss:$72 sps:$4 sm:$0xff]  }
  0x7c   :  { %3163 = vmatmul.mubr.bf16.vlgmr.msra.gmra.mrb[0].mxu1 %v8430_v46  ;;  %v8525_v46 = vld [vmem:[%s12062_s2 + $0xa8] sm:$0xff]  }
  0x7e   :  { %3692 = vmatpush1.bf16.msra.mxu0 %v8328_v49  ;;  %v8355_v49 = vld [vmem:[%s12063_s0 + $0x378] ss:$72 sps:$4 sm:$0xff]  }
  0x7f   :  { %3838 = vmatprep.subr.bf16.mxu0 %v12070_v0 }
  0x81   :  { %3581 = vmatmul.mubr.bf16.gmra.mrb[32].mxu0 %v8292_v50  ;;  %v8356_v50 = vld [vmem:[%s12063_s0 + $0x40c] ss:$72 sps:$4 sm:$0xff]  }
  0x82   :  { %3588 = vmatprep.mubr.bf16.mxu0 %v8294_v51  ;;  %v8384_v51 = vld [vmem:[%s12062_s2 + $0x260] sm:$0xff]  }
  0x89   :  { %3589 = vmatmul.mubr.bf16.gmra.mrb[36].mxu0 %v8296_v52  ;;  %v8437_v52 = vld [vmem:[%s12063_s0 + $0x94] ss:$72 sps:$4 sm:$0xff]  }
  0x8a   :  { %3596 = vmatprep.mubr.bf16.mxu0 %v8298_v53  ;;  %v8439_v53 = vld [vmem:[%s12063_s0 + $0x90] ss:$72 sps:$4 sm:$0xff]   ;;  %3170 = vmatprep.mubr.bf16.mxu1 %v8437_v52  ;;  %v8420_v52 = vld [vmem:[%s12063_s0 + $0x144] ss:$72 sps:$4 sm:$0xff]  }
  0x8b   :  { %3171 = vmatmul.mubr.bf16.gmra.mrb[4].mxu1 %v8439_v53  ;;  %v8424_v53 = vld [vmem:[%s12062_s2 + $0x290] sm:$0xff]  }
  0x91   :  { %3597 = vmatmul.mubr.bf16.gmra.mrb[40].mxu0 %v8300_v54  ;;  %v8390_v54 = vld [vmem:[%s12062_s2 + $0x268] sm:$0xff]  }
  0x92   :  { %3604 = vmatprep.mubr.bf16.mxu0 %v8302_v55  ;;  %v8359_v55 = vld [vmem:[%s12063_s0 + $0x408] ss:$72 sps:$4 sm:$0xff]  }
  0x99   :  { %3605 = vmatmul.mubr.bf16.gmra.mrb[44].mxu0 %v8304_v56  ;;  %v8360_v56 = vld [vmem:[%s12063_s0 + $0x49c] ss:$72 sps:$4 sm:$0xff]  }
  0x9a   :  { %3612 = vmatprep.mubr.bf16.mxu0 %v8306_v57  ;;  %v8398_v57 = vld [vmem:[%s12062_s2 + $0x270] sm:$0xff]  }
  0xa1   :  { %3613 = vmatmul.mubr.bf16.gmra.mrb[48].mxu0 %v8308_v58  ;;  %v8444_v58 = vld [vmem:[%s12063_s0 + $0x124] ss:$72 sps:$4 sm:$0xff]  }
  0xa2   :  { %3620 = vmatprep.mubr.bf16.mxu0 %v8310_v59  ;;  %v8446_v59 = vld [vmem:[%s12063_s0 + $0x120] ss:$72 sps:$4 sm:$0xff]   ;;  %3178 = vmatprep.mubr.bf16.mxu1 %v8444_v58 }
  0xa3   :  { %3179 = vmatmul.mubr.bf16.gmra.mrb[8].mxu1 %v8446_v59  ;;  %v8538_v58 = vld [vmem:[%s12062_s2 + $0xc0] sm:$0xff]  }
  0xa4   :  { %v8422_v59 = vld [vmem:[%s12063_s0 + $0x140] ss:$72 sps:$4 sm:$0xff]  }
  0xa9   :  { %3621 = vmatmul.mubr.bf16.gmra.mrb[52].mxu0 %v8312_v60  ;;  %v8405_v60 = vld [vmem:[%s12062_s2 + $0x278] sm:$0xff]  }
  0xaa   :  { %3628 = vmatprep.mubr.bf16.mxu0 %v8314_v61  ;;  %v8362_v61 = vld [vmem:[%s12063_s0 + $0x498] ss:$72 sps:$4 sm:$0xff]  }
  0xb1   :  { %3629 = vmatmul.mubr.bf16.gmra.mrb[56].mxu0 %v8316_v62  ;;  %v8364_v62 = vld [vmem:[%s12063_s0 + $0x52c] ss:$72 sps:$4 sm:$0xff]  }
  0xb2   :  { %3636 = vmatprep.mubr.bf16.mxu0 %v8318_v63  ;;  %v8451_v63 = vld [vmem:[%s12063_s0 + $0x1b4] ss:$72 sps:$4 sm:$0xff]  }
  0xb3   :  { %3186 = vmatprep.mubr.bf16.mxu1 %v8451_v63  ;;  %v8544_v63 = vld [vmem:[%s12063_s0 + $0x874] ss:$72 sps:$4 sm:$0xff]  }
  0xb9   :  { %3637 = vmatmul.mubr.bf16.gmra.mrb[60].mxu0 %v8320_v1  ;;  %v8453_v1 = vld [vmem:[%s12063_s0 + $0x1b0] ss:$72 sps:$4 sm:$0xff]  }
  0xba   :  { %3644 = vmatprep.mubr.bf16.mxu0 %v8321_v2  ;;  %3187 = vmatmul.mubr.bf16.gmra.mrb[12].mxu1 %v8453_v1  ;;  %v8366_v2 = vld [vmem:[%s12063_s0 + $0x528] ss:$72 sps:$4 sm:$0xff]  }
  0xbb   :  { %v8447_v1 = vld [vmem:[%s12062_s2 + $0x2a8] sm:$0xff]  }
  0xc1   :  { %3645 = vmatmul.mubr.bf16.gmra.mrb[64].mxu0 %v8324_v4  ;;  %v8458_v4 = vld [vmem:[%s12063_s0 + $0x244] ss:$72 sps:$4 sm:$0xff]  }
  0xc2   :  { %3652 = vmatprep.mubr.bf16.mxu0 %v8325_v5  ;;  %v8460_v5 = vld [vmem:[%s12063_s0 + $0x240] ss:$72 sps:$4 sm:$0xff]   ;;  %3194 = vmatprep.mubr.bf16.mxu1 %v8458_v4  ;;  %v8428_v4 = vld [vmem:[%s12063_s0 + $0x1d0] ss:$72 sps:$4 sm:$0xff]  }
  0xc3   :  { %3195 = vmatmul.mubr.bf16.gmra.mrb[16].mxu1 %v8460_v5  ;;  %v8434_v5 = vld [vmem:[%s12063_s0 + $0x264] ss:$72 sps:$4 sm:$0xff]  }
  0xc9   :  { %3653 = vmatmul.mubr.bf16.gmra.mrb[68].mxu0 %v8327_v8  ;;  %v8465_v8 = vld [vmem:[%s12063_s0 + $0x2d4] ss:$72 sps:$4 sm:$0xff]  }
  0xca   :  { %3693 = vmatprep.mubr.bf16.mxu0 %v8331_v9  ;;  %v8467_v9 = vld [vmem:[%s12063_s0 + $0x2d0] ss:$72 sps:$4 sm:$0xff]   ;;  %3202 = vmatprep.mubr.bf16.mxu1 %v8465_v8  ;;  %v8553_v8 = vld [vmem:[%s12063_s0 + $0x904] ss:$72 sps:$4 sm:$0xff]  }
  0xcb   :  { %3203 = vmatmul.mubr.bf16.gmra.mrb[20].mxu1 %v8467_v9  ;;  %v8555_v9 = vld [vmem:[%s12063_s0 + $0x900] ss:$72 sps:$4 sm:$0xff]  }
  0xd1   :  { %3694 = vmatmul.mubr.bf16.vlgmr.msra.gmra.mrb[0].mxu0 %v8329_v12  ;;  %v8472_v12 = vld [vmem:[%s12063_s0 + $0x364] ss:$72 sps:$4 sm:$0xff]  }
  0xd2   :  { %3839 = vmatpush1.bf16.msra.mxu0 %v8332_v13  ;;  %3701 = vmatprep.mubr.bf16.mxu0 %v8333_v14  ;;  %v8474_v13 = vld [vmem:[%s12063_s0 + $0x360] ss:$72 sps:$4 sm:$0xff]  }
  0xd3   :  { %3840 = vmatprep.subr.bf16.mxu0 %v12070_v0  ;;  %3210 = vmatprep.mubr.bf16.mxu1 %v8472_v12  ;;  %v8378_v14 = vld [vmem:[%s12063_s0 + $0x6d8] ss:$72 sps:$4 sm:$0xff]  }
  0xd4   :  { %3211 = vmatmul.mubr.bf16.gmra.mrb[24].mxu1 %v8474_v13  ;;  %v8436_v12 = vld [vmem:[%s12063_s0 + $0x260] ss:$72 sps:$4 sm:$0xff]   ;;  %v8441_v13 = vld [vmem:[%s12063_s0 + $0x2f4] ss:$72 sps:$4 sm:$0xff]  }
  0xd5   :  { %3218 = vmatprep.mubr.bf16.mxu1 %v8479_v16  ;;  %v8561_v16 = vld [vmem:[%s12063_s0 + $0x994] ss:$72 sps:$4 sm:$0xff]  }
  0xd6   :  { %3841 = vmatpush1.bf16.msra.mxu0 %v8336_v17  ;;  %v8481_v17 = vld [vmem:[%s12063_s0 + $0x3f0] ss:$72 sps:$4 sm:$0xff]  }
  0xd7   :  { %3842 = vmatprep.subr.bf16.mxu0 %v12070_v0 }
  0xd9   :  { %3702 = vmatmul.mubr.bf16.gmra.mrb[4].mxu0 %v8335_v18  ;;  %v8382_v18 = vld [vmem:[%s12063_s0 + $0x768] ss:$72 sps:$4 sm:$0xff]  }
  0xda   :  { %3709 = vmatprep.mubr.bf16.mxu0 %v8337_v19  ;;  %3843 = vmatpush1.bf16.msra.mxu0 %v8340_v20  ;;  %v8385_v19 = vld [vmem:[%s12063_s0 + $0x7fc] ss:$72 sps:$4 sm:$0xff]  }
  0xdb   :  { %3844 = vmatprep.subr.bf16.mxu0 %v12070_v0  ;;  %v8485_v20 = vld [vmem:[%s12063_s0 + $0x484] ss:$72 sps:$4 sm:$0xff]  }
  0xdc   :  { %3219 = vmatmul.mubr.bf16.gmra.mrb[28].mxu1 %v8481_v17  ;;  %v8564_v17 = vld [vmem:[%s12063_s0 + $0x990] ss:$72 sps:$4 sm:$0xff]  }
  0xdd   :  { %3226 = vmatprep.mubr.bf16.mxu1 %v8485_v20  ;;  %v8443_v20 = vld [vmem:[%s12063_s0 + $0x2f0] ss:$72 sps:$4 sm:$0xff]  }
  0xde   :  { %3845 = vmatpush1.bf16.msra.mxu0 %v8344_v23  ;;  %v8391_v23 = vld [vmem:[%s12063_s0 + $0x88c] ss:$72 sps:$4 sm:$0xff]  }
  0xdf   :  { %3846 = vmatprep.subr.bf16.mxu0 %v12070_v0 }
  0xe1   :  { %3710 = vmatmul.mubr.bf16.gmra.mrb[8].mxu0 %v8339_v24  ;;  %v8492_v24 = vld [vmem:[%s12063_s0 + $0x514] ss:$72 sps:$4 sm:$0xff]  }
  0xe2   :  { %3717 = vmatprep.mubr.bf16.mxu0 %v8341_v25  ;;  %3847 = vmatpush1.bf16.msra.mxu0 %v8348_v26  ;;  %v8494_v25 = vld [vmem:[%s12063_s0 + $0x510] ss:$72 sps:$4 sm:$0xff]  }
  0xe3   :  { %3848 = vmatprep.subr.bf16.mxu0 %v12070_v0  ;;  %v8393_v26 = vld [vmem:[%s12063_s0 + $0x888] ss:$72 sps:$4 sm:$0xff]  }
  0xe4   :  { %3227 = vmatmul.mubr.bf16.gmra.mrb[32].mxu1 %v8488_v21  ;;  %v8448_v21 = vld [vmem:[%s12063_s0 + $0x384] ss:$72 sps:$4 sm:$0xff]  }
  0xe5   :  { %3234 = vmatprep.mubr.bf16.mxu1 %v8492_v24  ;;  %v8570_v24 = vld [vmem:[%s12063_s0 + $0x8] ss:$72 sps:$4 sm:$0xff]  }
  0xe6   :  { %3849 = vmatpush1.bf16.msra.mxu0 %v8352_v28  ;;  %v8499_v28 = vld [vmem:[%s12063_s0 + $0x5a4] ss:$72 sps:$4 sm:$0xff]  }
  0xe7   :  { %3850 = vmatprep.subr.bf16.mxu0 %v12070_v0 }
  0xe9   :  { %3718 = vmatmul.mubr.bf16.gmra.mrb[12].mxu0 %v8343_v30  ;;  %v8502_v30 = vld [vmem:[%s12062_s2 + $0x80] sm:$0xff]  }
  0xea   :  { %3725 = vmatprep.mubr.bf16.mxu0 %v8345_v31  ;;  %3851 = vmatpush1.bf16.msra.mxu0 %v8358_v32  ;;  %v8399_v31 = vld [vmem:[%s12063_s0 + $0x918] ss:$72 sps:$4 sm:$0xff]   ;;  %v8402_v32 = vld [vmem:[%s12063_s0 + $0x9ac] ss:$72 sps:$4 sm:$0xff]  }
  0xeb   :  { %3852 = vmatprep.subr.bf16.mxu0 %v12070_v0  ;;  %3308 = vmatpush1.bf16.msra.mxu1 %v8502_v30  ;;  %v8577_v30 = vld [vmem:[%s12063_s0 + $0x9c] ss:$72 sps:$4 sm:$0xff]  }
  0xec   :  { %3235 = vmatmul.mubr.bf16.gmra.mrb[36].mxu1 %v8494_v25  ;;  %3309 = vmatprep.subr.bf16.mxu1 %v12070_v0  ;;  %v8572_v25 = vld [vmem:[%s12063_s0 + $0xc] ss:$72 sps:$4 sm:$0xff]  }
  0xed   :  { %3242 = vmatprep.mubr.bf16.mxu1 %v8499_v28  ;;  %v8454_v28 = vld [vmem:[%s12063_s0 + $0x414] ss:$72 sps:$4 sm:$0xff]  }
  0xee   :  { %3853 = vmatpush1.bf16.msra.mxu0 %v8363_v35  ;;  %v8510_v35 = vld [vmem:[%s12063_s0 + $0x630] ss:$72 sps:$4 sm:$0xff]  }
  0xef   :  { %3854 = vmatprep.subr.bf16.mxu0 %v12070_v0  ;;  %3310 = vmatpush1.bf16.msra.mxu1 %v8507_v33  ;;  %v8457_v33 = vld [vmem:[%s12063_s0 + $0x410] ss:$72 sps:$4 sm:$0xff]  }
  0xf0   :  { %3311 = vmatprep.subr.bf16.mxu1 %v12070_v0 }
  0xf1   :  { %3726 = vmatmul.mubr.bf16.gmra.mrb[16].mxu0 %v8347_v36  ;;  %v8511_v36 = vld [vmem:[%s12062_s2 + $0x90] sm:$0xff]  }
  0xf2   :  { %3733 = vmatprep.mubr.bf16.mxu0 %v8349_v37  ;;  %3855 = vmatpush1.bf16.msra.mxu0 %v8367_v38  ;;  %v8404_v37 = vld [vmem:[%s12063_s0 + $0x9a8] ss:$72 sps:$4 sm:$0xff]   ;;  %v8410_v38 = vld [vmem:[%s12063_s0 + $0x24] ss:$72 sps:$4 sm:$0xff]  }
  0xf3   :  { %3856 = vmatprep.subr.bf16.mxu0 %v12070_v0  ;;  %3312 = vmatpush1.bf16.msra.mxu1 %v8511_v36  ;;  %v8584_v36 = vld [vmem:[%s12063_s0 + $0x12c] ss:$72 sps:$4 sm:$0xff]  }
  0xf4   :  { %3243 = vmatmul.mubr.bf16.gmra.mrb[40].mxu1 %v8501_v29  ;;  %3313 = vmatprep.subr.bf16.mxu1 %v12070_v0  ;;  %v8503_v29 = vld [vmem:[%s12062_s2 + $0x2e0] sm:$0xff]  }
  0xf5   :  { %3250 = vmatprep.mubr.bf16.mxu1 %v8508_v34  ;;  %v8461_v34 = vld [vmem:[%s12063_s0 + $0x4a4] ss:$72 sps:$4 sm:$0xff]  }
  0xf6   :  { %3857 = vmatpush1.bf16.msra.mxu0 %v8371_v41  ;;  %v8519_v41 = vld [vmem:[%s12063_s0 + $0x6c0] ss:$72 sps:$4 sm:$0xff]  }
  0xf7   :  { %3858 = vmatprep.subr.bf16.mxu0 %v12070_v0  ;;  %3314 = vmatpush1.bf16.msra.mxu1 %v8516_v39  ;;  %v8463_v39 = vld [vmem:[%s12063_s0 + $0x4a0] ss:$72 sps:$4 sm:$0xff]  }
  0xf8   :  { %3315 = vmatprep.subr.bf16.mxu1 %v12070_v0 }
  0xf9   :  { %3734 = vmatmul.mubr.bf16.gmra.mrb[20].mxu0 %v8351_v42  ;;  %v8520_v42 = vld [vmem:[%s12062_s2 + $0xa0] sm:$0xff]  }
  0xfa   :  { %3741 = vmatprep.mubr.bf16.mxu0 %v8353_v43  ;;  %3859 = vmatpush1.bf16.msra.mxu0 %v8375_v44  ;;  %v8408_v43 = vld [vmem:[%s12063_s0 + $0x20] ss:$72 sps:$4 sm:$0xff]  }
  0xfb   :  { %3860 = vmatprep.subr.bf16.mxu0 %v12070_v0  ;;  %3316 = vmatpush1.bf16.msra.mxu1 %v8520_v42  ;;  %v8412_v44 = vld [vmem:[%s12062_s2 + $0x280] sm:$0xff]  }
  0xfc   :  { %3251 = vmatmul.mubr.bf16.gmra.mrb[44].mxu1 %v8510_v35  ;;  %3317 = vmatprep.subr.bf16.mxu1 %v12070_v0  ;;  %v8523_v35 = vld [vmem:[%s12062_s2 + $0x2f0] sm:$0xff]   ;;  %v8593_v42 = vld [vmem:[%s12063_s0 + $0x1b8] ss:$72 sps:$4 sm:$0xff]  }
  0xfd   :  { %3258 = vmatprep.mubr.bf16.mxu1 %v8517_v40  ;;  %v8468_v40 = vld [vmem:[%s12063_s0 + $0x534] ss:$72 sps:$4 sm:$0xff]  }
  0xfe   :  { %3861 = vmatpush1.bf16.msra.mxu0 %v8379_v48  ;;  %v8528_v48 = vld [vmem:[%s12063_s0 + $0x750] ss:$72 sps:$4 sm:$0xff]  }
  0xff   :  { %3862 = vmatprep.subr.bf16.mxu0 %v12070_v0  ;;  %3318 = vmatpush1.bf16.msra.mxu1 %v8525_v46  ;;  %v8600_v46 = vld [vmem:[%s12063_s0 + $0x248] ss:$72 sps:$4 sm:$0xff]  }
 0x100   :  { %3319 = vmatprep.subr.bf16.mxu1 %v12070_v0 }
 0x101   :  { %3742 = vmatmul.mubr.bf16.gmra.mrb[24].mxu0 %v8355_v49  ;;  %v8529_v49 = vld [vmem:[%s12062_s2 + $0xb0] sm:$0xff]  }
 0x102   :  { %3749 = vmatprep.mubr.bf16.mxu0 %v8356_v50  ;;  %3863 = vmatpush1.bf16.msra.mxu0 %v8384_v51  ;;  %v8418_v50 = vld [vmem:[%s12062_s2 + $0x288] sm:$0xff]   ;;  %v8416_v51 = vld [vmem:[%s12063_s0 + $0xb0] ss:$72 sps:$4 sm:$0xff]  }
 0x103   :  { %3864 = vmatprep.subr.bf16.mxu0 %v12070_v0  ;;  %3320 = vmatpush1.bf16.msra.mxu1 %v8529_v49  ;;  %v8605_v49 = vld [vmem:[%s12063_s0 + $0x2dc] ss:$72 sps:$4 sm:$0xff]  }
 0x104   :  { %3259 = vmatmul.mubr.bf16.gmra.mrb[48].mxu1 %v8519_v41  ;;  %3321 = vmatprep.subr.bf16.mxu1 %v12070_v0  ;;  %v8591_v41 = vld [vmem:[%s12063_s0 + $0x1bc] ss:$72 sps:$4 sm:$0xff]  }
 0x105   :  { %3266 = vmatprep.mubr.bf16.mxu1 %v8526_v47  ;;  %v8477_v47 = vld [vmem:[%s12063_s0 + $0x5c0] ss:$72 sps:$4 sm:$0xff]  }
 0x106   :  { %3865 = vmatpush1.bf16.msra.mxu0 %v8390_v54  ;;  %v8534_v54 = vld [vmem:[%s12062_s2 + $0xb8] sm:$0xff]  }
 0x107   :  { %3866 = vmatprep.subr.bf16.mxu0 %v12070_v0  ;;  %3322 = vmatpush1.bf16.msra.mxu1 %v8534_v54  ;;  %v8614_v54 = vld [vmem:[%s12063_s0 + $0x368] ss:$72 sps:$4 sm:$0xff]  }
 0x108   :  { %3323 = vmatprep.subr.bf16.mxu1 %v12070_v0 }
 0x109   :  { %3750 = vmatmul.mubr.bf16.gmra.mrb[28].mxu0 %v8359_v55  ;;  %v8535_v55 = vld [vmem:[%s12063_s0 + $0x7e4] ss:$72 sps:$4 sm:$0xff]  }
 0x10a   :  { %3757 = vmatprep.mubr.bf16.mxu0 %v8360_v56  ;;  %3867 = vmatpush1.bf16.msra.mxu0 %v8398_v57  ;;  %v8537_v56 = vld [vmem:[%s12063_s0 + $0x7e0] ss:$72 sps:$4 sm:$0xff]   ;;  %v8433_v57 = vld [vmem:[%s12062_s2 + $0x298] sm:$0xff]  }
 0x10b   :  { %3868 = vmatprep.subr.bf16.mxu0 %v12070_v0  ;;  %3324 = vmatpush1.bf16.msra.mxu1 %v8538_v58  ;;  %v8621_v58 = vld [vmem:[%s12063_s0 + $0x3f8] ss:$72 sps:$4 sm:$0xff]  }
 0x10c   :  { %3267 = vmatmul.mubr.bf16.gmra.mrb[52].mxu1 %v8528_v48  ;;  %3325 = vmatprep.subr.bf16.mxu1 %v12070_v0  ;;  %v8482_v48 = vld [vmem:[%s12063_s0 + $0x654] ss:$72 sps:$4 sm:$0xff]  }
 0x10d   :  { %3274 = vmatprep.mubr.bf16.mxu1 %v8535_v55  ;;  %v8491_v55 = vld [vmem:[%s12063_s0 + $0x6e0] ss:$72 sps:$4 sm:$0xff]  }
 0x10e   :  { %3869 = vmatpush1.bf16.msra.mxu0 %v8405_v60  ;;  %v8426_v60 = vld [vmem:[%s12063_s0 + $0x1d4] ss:$72 sps:$4 sm:$0xff]  }
 0x10f   :  { %4015 = vmatprep.subr.bf16.mxu0 %v12070_v0 }
 0x111   :  { %3758 = vmatmul.mubr.bf16.gmra.mrb[32].mxu0 %v8362_v61  ;;  %v8440_v61 = vld [vmem:[%s12062_s2 + $0x2a0] sm:$0xff]  }
 0x112   :  { %3765 = vmatprep.mubr.bf16.mxu0 %v8364_v62  ;;  %v8542_v62 = vld [vmem:[%s12062_s2 + $0xc8] sm:$0xff]  }
 0x113   :  { %3326 = vmatpush1.bf16.msra.mxu1 %v8542_v62  ;;  %v8628_v62 = vld [vmem:[%s12063_s0 + $0x488] ss:$72 sps:$4 sm:$0xff]  }
 0x114   :  { %3275 = vmatmul.mubr.bf16.gmra.mrb[56].mxu1 %v8537_v56  ;;  %3327 = vmatprep.subr.bf16.mxu1 %v12070_v0  ;;  %v8496_v56 = vld [vmem:[%s12063_s0 + $0x774] ss:$72 sps:$4 sm:$0xff]  }
 0x115   :  { %3282 = vmatprep.mubr.bf16.mxu1 %v8544_v63  ;;  %v8506_v63 = vld [vmem:[%s12063_s0 + $0x800] ss:$72 sps:$4 sm:$0xff]  }
 0x119   :  { %3766 = vmatmul.mubr.bf16.gmra.mrb[36].mxu0 %v8366_v2  ;;  %v8546_v2 = vld [vmem:[%s12063_s0 + $0x870] ss:$72 sps:$4 sm:$0xff]  }
 0x11a   :  { %3773 = vmatprep.mubr.bf16.mxu0 %v8368_v3  ;;  %v8547_v3 = vld [vmem:[%s12062_s2 + $0xd0] sm:$0xff]  }
 0x11b   :  { %3328 = vmatpush1.bf16.msra.mxu1 %v8547_v3  ;;  %v8634_v3 = vld [vmem:[%s12063_s0 + $0x518] ss:$72 sps:$4 sm:$0xff]  }
 0x11c   :  { %3283 = vmatmul.mubr.bf16.gmra.mrb[60].mxu1 %v8546_v2  ;;  %3329 = vmatprep.subr.bf16.mxu1 %v12070_v0  ;;  %v8632_v2 = vld [vmem:[%s12063_s0 + $0x51c] ss:$72 sps:$4 sm:$0xff]  }
 0x11d   :  { %3290 = vmatprep.mubr.bf16.mxu1 %v8553_v8  ;;  %v8524_v8 = vld [vmem:[%s12063_s0 + $0x920] ss:$72 sps:$4 sm:$0xff]  }
 0x121   :  { %3774 = vmatmul.mubr.bf16.gmra.mrb[40].mxu0 %v8370_v6  ;;  %v8456_v6 = vld [vmem:[%s12062_s2 + $0x2b0] sm:$0xff]  }
 0x122   :  { %3781 = vmatprep.mubr.bf16.mxu0 %v8372_v7  ;;  %v8551_v7 = vld [vmem:[%s12062_s2 + $0xd8] sm:$0xff]  }
 0x123   :  { %3330 = vmatpush1.bf16.msra.mxu1 %v8551_v7  ;;  %v8641_v7 = vld [vmem:[%s12063_s0 + $0x5a8] ss:$72 sps:$4 sm:$0xff]  }
 0x124   :  { %3291 = vmatmul.mubr.bf16.gmra.mrb[64].mxu1 %v8555_v9  ;;  %3331 = vmatprep.subr.bf16.mxu1 %v12070_v0  ;;  %v8530_v9 = vld [vmem:[%s12063_s0 + $0x9b4] ss:$72 sps:$4 sm:$0xff]  }
 0x125   :  { %3298 = vmatprep.mubr.bf16.mxu1 %v8561_v16  ;;  %v8539_v16 = vld [vmem:[%s12063_s0 + $0x28] ss:$72 sps:$4 sm:$0xff]  }
 0x129   :  { %3782 = vmatmul.mubr.bf16.gmra.mrb[44].mxu0 %v8374_v10  ;;  %v8464_v10 = vld [vmem:[%s12062_s2 + $0x2b8] sm:$0xff]  }
 0x12a   :  { %3789 = vmatprep.mubr.bf16.mxu0 %v8376_v11  ;;  %v8556_v11 = vld [vmem:[%s12062_s2 + $0xe0] sm:$0xff]  }
 0x12b   :  { %3332 = vmatpush1.bf16.msra.mxu1 %v8556_v11  ;;  %v8648_v11 = vld [vmem:[%s12063_s0 + $0x638] ss:$72 sps:$4 sm:$0xff]  }
 0x12c   :  { %3333 = vmatprep.subr.bf16.mxu1 %v12070_v0  ;;  %3299 = vmatmul.mubr.bf16.gmra.mrb[68].mxu1 %v8564_v17  ;;  %v8543_v17 = vld [vmem:[%s12062_s2 + $0x300] sm:$0xff]  }
 0x12d   :  { %3339 = vmatprep.mubr.bf16.mxu1 %v8572_v25  ;;  %v8667_v25 = vld [vmem:[%s12063_s0 + $0x7ec] ss:$72 sps:$4 sm:$0xff]  }
 0x131   :  { %3790 = vmatmul.mubr.bf16.gmra.mrb[48].mxu0 %v8378_v14  ;;  %v8471_v14 = vld [vmem:[%s12062_s2 + $0x2c0] sm:$0xff]  }
 0x132   :  { %3797 = vmatprep.mubr.bf16.mxu0 %v8380_v15  ;;  %v8560_v15 = vld [vmem:[%s12062_s2 + $0xe8] sm:$0xff]  }
 0x133   :  { %3334 = vmatpush1.bf16.msra.mxu1 %v8560_v15  ;;  %v8655_v15 = vld [vmem:[%s12063_s0 + $0x6c8] ss:$72 sps:$4 sm:$0xff]  }
 0x134   :  { %3335 = vmatprep.subr.bf16.mxu1 %v12070_v0 }
 0x139   :  { %3798 = vmatmul.mubr.bf16.gmra.mrb[52].mxu0 %v8382_v18  ;;  %v8478_v18 = vld [vmem:[%s12062_s2 + $0x2c8] sm:$0xff]  }
 0x13a   :  { %3805 = vmatprep.mubr.bf16.mxu0 %v8385_v19  ;;  %v8565_v19 = vld [vmem:[%s12062_s2 + $0xf0] sm:$0xff]  }
 0x13b   :  { %3336 = vmatpush1.bf16.msra.mxu1 %v8565_v19  ;;  %v8660_v19 = vld [vmem:[%s12063_s0 + $0x75c] ss:$72 sps:$4 sm:$0xff]  }
 0x13c   :  { %3337 = vmatprep.subr.bf16.mxu1 %v12070_v0 }
 0x141   :  { %3806 = vmatmul.mubr.bf16.gmra.mrb[56].mxu0 %v8387_v22  ;;  %v8487_v22 = vld [vmem:[%s12062_s2 + $0x2d0] sm:$0xff]  }
 0x142   :  { %3813 = vmatprep.mubr.bf16.mxu0 %v8391_v23  ;;  %v8569_v23 = vld [vmem:[%s12062_s2 + $0xf8] sm:$0xff]  }
 0x143   :  { %3338 = vmatpush1.bf16.msra.mxu1 %v8569_v23  ;;  %v8557_v23 = vld [vmem:[%s12063_s0 + $0x14c] ss:$72 sps:$4 sm:$0xff]  }
 0x144   :  { %7644 = vmatprep.subr.bf16.mxu1 %v12070_v0 }
 0x146   :  { %3340 = vmatmul.mubr.bf16.vlgmr.msra.gmra.mrb[0].mxu1 %v8570_v24  ;;  %v8563_v24 = vld [vmem:[%s12062_s2 + $0x310] sm:$0xff]  }
 0x147   :  { %3347 = vmatprep.mubr.bf16.mxu1 %v8577_v30  ;;  %v8580_v30 = vld [vmem:[%s12062_s2 + $0x320] sm:$0xff]  }
 0x149   :  { %3814 = vmatmul.mubr.bf16.gmra.mrb[60].mxu0 %v8393_v26  ;;  %v8495_v26 = vld [vmem:[%s12062_s2 + $0x2d8] sm:$0xff]  }
 0x14a   :  { %3821 = vmatprep.mubr.bf16.mxu0 %v8396_v27  ;;  %v8450_v27 = vld [vmem:[%s12063_s0 + $0x380] ss:$72 sps:$4 sm:$0xff]  }
 0x151   :  { %3822 = vmatmul.mubr.bf16.gmra.mrb[64].mxu0 %v8399_v31  ;;  %v8579_v31 = vld [vmem:[%s12063_s0 + $0x98] ss:$72 sps:$4 sm:$0xff]  }
 0x152   :  { %3829 = vmatprep.mubr.bf16.mxu0 %v8402_v32  ;;  %v8512_v32 = vld [vmem:[%s12062_s2 + $0x2e8] sm:$0xff]   ;;  %3348 = vmatmul.mubr.bf16.gmra.mrb[4].mxu1 %v8579_v31  ;;  %v8674_v31 = vld [vmem:[%s12063_s0 + $0x87c] ss:$72 sps:$4 sm:$0xff]  }
 0x153   :  { %3355 = vmatprep.mubr.bf16.mxu1 %v8584_v36  ;;  %v8596_v36 = vld [vmem:[%s12062_s2 + $0x330] sm:$0xff]  }
 0x159   :  { %3830 = vmatmul.mubr.bf16.gmra.mrb[68].mxu0 %v8404_v37  ;;  %v8586_v37 = vld [vmem:[%s12063_s0 + $0x128] ss:$72 sps:$4 sm:$0xff]  }
 0x15a   :  { %3870 = vmatprep.mubr.bf16.mxu0 %v8410_v38  ;;  %v8533_v38 = vld [vmem:[%s12062_s2 + $0x2f8] sm:$0xff]   ;;  %3356 = vmatmul.mubr.bf16.gmra.mrb[8].mxu1 %v8586_v37  ;;  %v8681_v37 = vld [vmem:[%s12063_s0 + $0x90c] ss:$72 sps:$4 sm:$0xff]  }
 0x15b   :  { %3363 = vmatprep.mubr.bf16.mxu1 %v8591_v41  ;;  %v8581_v41 = vld [vmem:[%s12063_s0 + $0x2fc] ss:$72 sps:$4 sm:$0xff]  }
 0x161   :  { %3871 = vmatmul.mubr.bf16.vlgmr.msra.gmra.mrb[0].mxu0 %v8408_v43  ;;  %v8470_v43 = vld [vmem:[%s12063_s0 + $0x530] ss:$72 sps:$4 sm:$0xff]  }
 0x162   :  { %4016 = vmatpush1.bf16.msra.mxu0 %v8412_v44  ;;  %3878 = vmatprep.mubr.bf16.mxu0 %v8414_v45  ;;  %v8475_v44 = vld [vmem:[%s12063_s0 + $0x5c4] ss:$72 sps:$4 sm:$0xff]  }
 0x163   :  { %4017 = vmatprep.subr.bf16.mxu0 %v12070_v0  ;;  %3364 = vmatmul.mubr.bf16.gmra.mrb[12].mxu1 %v8593_v42  ;;  %v8598_v45 = vld [vmem:[%s12063_s0 + $0x24c] ss:$72 sps:$4 sm:$0xff]   ;;  %v8611_v42 = vld [vmem:[%s12062_s2 + $0x340] sm:$0xff]  }
 0x164   :  { %3371 = vmatprep.mubr.bf16.mxu1 %v8598_v45  ;;  %v8618_v45 = vld [vmem:[%s12062_s2 + $0x348] sm:$0xff]  }
 0x166   :  { %4018 = vmatpush1.bf16.msra.mxu0 %v8418_v50  ;;  %v8607_v50 = vld [vmem:[%s12063_s0 + $0x2d8] ss:$72 sps:$4 sm:$0xff]  }
 0x167   :  { %4019 = vmatprep.subr.bf16.mxu0 %v12070_v0 }
 0x169   :  { %3879 = vmatmul.mubr.bf16.gmra.mrb[4].mxu0 %v8416_v51  ;;  %v8484_v51 = vld [vmem:[%s12063_s0 + $0x650] ss:$72 sps:$4 sm:$0xff]  }
 0x16a   :  { %3886 = vmatprep.mubr.bf16.mxu0 %v8420_v52  ;;  %4020 = vmatpush1.bf16.msra.mxu0 %v8424_v53  ;;  %v8489_v52 = vld [vmem:[%s12063_s0 + $0x6e4] ss:$72 sps:$4 sm:$0xff]  }
 0x16b   :  { %4021 = vmatprep.subr.bf16.mxu0 %v12070_v0  ;;  %3372 = vmatmul.mubr.bf16.gmra.mrb[16].mxu1 %v8600_v46  ;;  %v8612_v53 = vld [vmem:[%s12063_s0 + $0x36c] ss:$72 sps:$4 sm:$0xff]   ;;  %v8583_v46 = vld [vmem:[%s12063_s0 + $0x2f8] ss:$72 sps:$4 sm:$0xff]  }
 0x16c   :  { %3379 = vmatprep.mubr.bf16.mxu1 %v8605_v49  ;;  %v8635_v49 = vld [vmem:[%s12062_s2 + $0x358] sm:$0xff]  }
 0x16e   :  { %4022 = vmatpush1.bf16.msra.mxu0 %v8433_v57  ;;  %v8619_v57 = vld [vmem:[%s12063_s0 + $0x3fc] ss:$72 sps:$4 sm:$0xff]  }
 0x16f   :  { %4023 = vmatprep.subr.bf16.mxu0 %v12070_v0 }
 0x171   :  { %3887 = vmatmul.mubr.bf16.gmra.mrb[8].mxu0 %v8422_v59  ;;  %v8498_v59 = vld [vmem:[%s12063_s0 + $0x770] ss:$72 sps:$4 sm:$0xff]  }
 0x172   :  { %3894 = vmatprep.mubr.bf16.mxu0 %v8426_v60  ;;  %4024 = vmatpush1.bf16.msra.mxu0 %v8440_v61  ;;  %v8504_v60 = vld [vmem:[%s12063_s0 + $0x804] ss:$72 sps:$4 sm:$0xff]  }
 0x173   :  { %4025 = vmatprep.subr.bf16.mxu0 %v12070_v0  ;;  %3380 = vmatmul.mubr.bf16.gmra.mrb[20].mxu1 %v8607_v50  ;;  %v8625_v61 = vld [vmem:[%s12063_s0 + $0x48c] ss:$72 sps:$4 sm:$0xff]   ;;  %v10298_v50 = vld [vmem:[%s12062_s2 + $0x400] sm:$0xff]  }
 0x174   :  { %3387 = vmatprep.mubr.bf16.mxu1 %v8612_v53  ;;  %7660 = vmatpush1.bf16.msra.mxu1 %v10298_v50  ;;  %v8642_v53 = vld [vmem:[%s12062_s2 + $0x360] sm:$0xff]  }
 0x175   :  { %7645 = vmatprep.subr.bf16.mxu1 %v12070_v0 }
 0x176   :  { %4026 = vmatpush1.bf16.msra.mxu0 %v8447_v1  ;;  %v8513_v1 = vld [vmem:[%s12063_s0 + $0x894] ss:$72 sps:$4 sm:$0xff]  }
 0x177   :  { %4027 = vmatprep.subr.bf16.mxu0 %v12070_v0 }
 0x179   :  { %3895 = vmatmul.mubr.bf16.gmra.mrb[12].mxu0 %v8428_v4  ;;  %v8515_v4 = vld [vmem:[%s12063_s0 + $0x890] ss:$72 sps:$4 sm:$0xff]  }
 0x17a   :  { %3902 = vmatprep.mubr.bf16.mxu0 %v8434_v5  ;;  %4028 = vmatpush1.bf16.msra.mxu0 %v8456_v6  ;;  %v8521_v5 = vld [vmem:[%s12063_s0 + $0x924] ss:$72 sps:$4 sm:$0xff]  }
 0x17b   :  { %4029 = vmatprep.subr.bf16.mxu0 %v12070_v0  ;;  %3388 = vmatmul.mubr.bf16.gmra.mrb[24].mxu1 %v8614_v54  ;;  %v8639_v6 = vld [vmem:[%s12063_s0 + $0x5ac] ss:$72 sps:$4 sm:$0xff]  }
 0x17c   :  { %3395 = vmatprep.mubr.bf16.mxu1 %v8619_v57  ;;  %v8649_v54 = vld [vmem:[%s12062_s2 + $0x368] sm:$0xff]   ;;  %v8658_v57 = vld [vmem:[%s12062_s2 + $0x370] sm:$0xff]  }
 0x17e   :  { %4030 = vmatpush1.bf16.msra.mxu0 %v8464_v10  ;;  %v8646_v10 = vld [vmem:[%s12063_s0 + $0x63c] ss:$72 sps:$4 sm:$0xff]  }
 0x17f   :  { %4031 = vmatprep.subr.bf16.mxu0 %v12070_v0 }
 0x181   :  { %3903 = vmatmul.mubr.bf16.gmra.mrb[16].mxu0 %v8436_v12  ;;  %v8532_v12 = vld [vmem:[%s12063_s0 + $0x9b0] ss:$72 sps:$4 sm:$0xff]  }
 0x182   :  { %3910 = vmatprep.mubr.bf16.mxu0 %v8441_v13  ;;  %4032 = vmatpush1.bf16.msra.mxu0 %v8471_v14  ;;  %v8541_v13 = vld [vmem:[%s12063_s0 + $0x2c] ss:$72 sps:$4 sm:$0xff]  }
 0x183   :  { %4033 = vmatprep.subr.bf16.mxu0 %v12070_v0  ;;  %3396 = vmatmul.mubr.bf16.gmra.mrb[28].mxu1 %v8621_v58  ;;  %v8653_v14 = vld [vmem:[%s12063_s0 + $0x6cc] ss:$72 sps:$4 sm:$0xff]  }
 0x184   :  { %3403 = vmatprep.mubr.bf16.mxu1 %v8625_v61  ;;  %v10330_v58 = vld [vmem:[%s12062_s2 + $0x408] sm:$0xff]   ;;  %v8608_v61 = vld [vmem:[%s12063_s0 + $0x53c] ss:$72 sps:$4 sm:$0xff]  }
 0x185   :  { %7661 = vmatpush1.bf16.msra.mxu1 %v10330_v58 }
 0x186   :  { %4034 = vmatpush1.bf16.msra.mxu0 %v8478_v18  ;;  %v8548_v18 = vld [vmem:[%s12063_s0 + $0xbc] ss:$72 sps:$4 sm:$0xff]   ;;  %7646 = vmatprep.subr.bf16.mxu1 %v12070_v0 }
 0x187   :  { %4035 = vmatprep.subr.bf16.mxu0 %v12070_v0 }
 0x189   :  { %3911 = vmatmul.mubr.bf16.gmra.mrb[20].mxu0 %v8443_v20  ;;  %v8662_v20 = vld [vmem:[%s12063_s0 + $0x758] ss:$72 sps:$4 sm:$0xff]  }
 0x18a   :  { %3918 = vmatprep.mubr.bf16.mxu0 %v8448_v21  ;;  %4036 = vmatpush1.bf16.msra.mxu0 %v8487_v22  ;;  %v8552_v21 = vld [vmem:[%s12062_s2 + $0x308] sm:$0xff]   ;;  %v8550_v22 = vld [vmem:[%s12063_s0 + $0xb8] ss:$72 sps:$4 sm:$0xff]  }
 0x18b   :  { %4037 = vmatprep.subr.bf16.mxu0 %v12070_v0  ;;  %3404 = vmatmul.mubr.bf16.gmra.mrb[32].mxu1 %v8628_v62  ;;  %v10348_v62 = vld [vmem:[%s12062_s2 + $0x410] sm:$0xff]  }
 0x18c   :  { %3411 = vmatprep.mubr.bf16.mxu1 %v8632_v2  ;;  %7662 = vmatpush1.bf16.msra.mxu1 %v10348_v62  ;;  %v10361_v2 = vld [vmem:[%s12062_s2 + $0x418] sm:$0xff]  }
 0x18d   :  { %7647 = vmatprep.subr.bf16.mxu1 %v12070_v0 }
 0x18e   :  { %4038 = vmatpush1.bf16.msra.mxu0 %v8495_v26  ;;  %v8669_v26 = vld [vmem:[%s12063_s0 + $0x7e8] ss:$72 sps:$4 sm:$0xff]  }
 0x18f   :  { %4039 = vmatprep.subr.bf16.mxu0 %v12070_v0 }
 0x190   :  { %7663 = vmatpush1.bf16.msra.mxu1 %v10361_v2 }
 0x191   :  { %3919 = vmatmul.mubr.bf16.gmra.mrb[24].mxu0 %v8450_v27  ;;  %v8573_v27 = vld [vmem:[%s12062_s2 + $0x318] sm:$0xff]   ;;  %7648 = vmatprep.subr.bf16.mxu1 %v12070_v0 }
 0x192   :  { %3926 = vmatprep.mubr.bf16.mxu0 %v8454_v28  ;;  %4040 = vmatpush1.bf16.msra.mxu0 %v8503_v29  ;;  %v8559_v28 = vld [vmem:[%s12063_s0 + $0x148] ss:$72 sps:$4 sm:$0xff]   ;;  %v8566_v29 = vld [vmem:[%s12063_s0 + $0x1dc] ss:$72 sps:$4 sm:$0xff]  }
 0x193   :  { %4041 = vmatprep.subr.bf16.mxu0 %v12070_v0  ;;  %3412 = vmatmul.mubr.bf16.gmra.mrb[36].mxu1 %v8634_v3  ;;  %v8617_v3 = vld [vmem:[%s12063_s0 + $0x5c8] ss:$72 sps:$4 sm:$0xff]  }
 0x194   :  { %3419 = vmatprep.mubr.bf16.mxu1 %v8639_v6  ;;  %v8624_v6 = vld [vmem:[%s12063_s0 + $0x658] ss:$72 sps:$4 sm:$0xff]  }
 0x196   :  { %4042 = vmatpush1.bf16.msra.mxu0 %v8512_v32  ;;  %v8587_v32 = vld [vmem:[%s12062_s2 + $0x328] sm:$0xff]  }
 0x197   :  { %4043 = vmatprep.subr.bf16.mxu0 %v12070_v0 }
 0x199   :  { %3927 = vmatmul.mubr.bf16.gmra.mrb[28].mxu0 %v8457_v33  ;;  %v8676_v33 = vld [vmem:[%s12063_s0 + $0x878] ss:$72 sps:$4 sm:$0xff]  }
 0x19a   :  { %3934 = vmatprep.mubr.bf16.mxu0 %v8461_v34  ;;  %4044 = vmatpush1.bf16.msra.mxu0 %v8523_v35  ;;  %v8568_v34 = vld [vmem:[%s12063_s0 + $0x1d8] ss:$72 sps:$4 sm:$0xff]   ;;  %v8574_v35 = vld [vmem:[%s12063_s0 + $0x26c] ss:$72 sps:$4 sm:$0xff]  }
 0x19b   :  { %4045 = vmatprep.subr.bf16.mxu0 %v12070_v0  ;;  %3420 = vmatmul.mubr.bf16.gmra.mrb[40].mxu1 %v8641_v7  ;;  %v8629_v7 = vld [vmem:[%s12063_s0 + $0x6ec] ss:$72 sps:$4 sm:$0xff]  }
 0x19c   :  { %3427 = vmatprep.mubr.bf16.mxu1 %v8646_v10  ;;  %v8636_v10 = vld [vmem:[%s12063_s0 + $0x77c] ss:$72 sps:$4 sm:$0xff]  }
 0x19e   :  { %4046 = vmatpush1.bf16.msra.mxu0 %v8533_v38  ;;  %v8683_v38 = vld [vmem:[%s12063_s0 + $0x908] ss:$72 sps:$4 sm:$0xff]  }
 0x19f   :  { %4192 = vmatprep.subr.bf16.mxu0 %v12070_v0 }
 0x1a1   :  { %3935 = vmatmul.mubr.bf16.gmra.mrb[32].mxu0 %v8463_v39  ;;  %v8604_v39 = vld [vmem:[%s12062_s2 + $0x338] sm:$0xff]  }
 0x1a2   :  { %3942 = vmatprep.mubr.bf16.mxu0 %v8468_v40  ;;  %v8576_v40 = vld [vmem:[%s12063_s0 + $0x268] ss:$72 sps:$4 sm:$0xff]  }
 0x1a3   :  { %3428 = vmatmul.mubr.bf16.gmra.mrb[44].mxu1 %v8648_v11  ;;  %v10400_v11 = vld [vmem:[%s12062_s2 + $0x430] sm:$0xff]  }
 0x1a4   :  { %3435 = vmatprep.mubr.bf16.mxu1 %v8653_v14  ;;  %v10413_v14 = vld [vmem:[%s12062_s2 + $0x438] sm:$0xff]  }
 0x1a9   :  { %3943 = vmatmul.mubr.bf16.gmra.mrb[36].mxu0 %v8470_v43  ;;  %v8687_v43 = vld [vmem:[%s12063_s0 + $0x99c] ss:$72 sps:$4 sm:$0xff]  }
 0x1aa   :  { %3950 = vmatprep.mubr.bf16.mxu0 %v8475_v44  ;;  %v8690_v44 = vld [vmem:[%s12063_s0 + $0x998] ss:$72 sps:$4 sm:$0xff]  }
 0x1ab   :  { %3436 = vmatmul.mubr.bf16.gmra.mrb[48].mxu1 %v8655_v15  ;;  %v8645_v15 = vld [vmem:[%s12063_s0 + $0x808] ss:$72 sps:$4 sm:$0xff]  }
 0x1ac   :  { %3443 = vmatprep.mubr.bf16.mxu1 %v8660_v19 }
 0x1b1   :  { %3951 = vmatmul.mubr.bf16.gmra.mrb[40].mxu0 %v8477_v47  ;;  %v8588_v47 = vld [vmem:[%s12063_s0 + $0x38c] ss:$72 sps:$4 sm:$0xff]  }
 0x1b2   :  { %3958 = vmatprep.mubr.bf16.mxu0 %v8482_v48  ;;  %v8627_v48 = vld [vmem:[%s12062_s2 + $0x350] sm:$0xff]  }
 0x1b3   :  { %3444 = vmatmul.mubr.bf16.gmra.mrb[52].mxu1 %v8662_v20 }
 0x1b4   :  { %3451 = vmatprep.mubr.bf16.mxu1 %v8667_v25 }
 0x1b9   :  { %3959 = vmatmul.mubr.bf16.gmra.mrb[44].mxu0 %v8484_v51  ;;  %v8590_v51 = vld [vmem:[%s12063_s0 + $0x388] ss:$72 sps:$4 sm:$0xff]  }
 0x1ba   :  { %3966 = vmatprep.mubr.bf16.mxu0 %v8489_v52  ;;  %v8594_v52 = vld [vmem:[%s12063_s0 + $0x41c] ss:$72 sps:$4 sm:$0xff]  }
 0x1bb   :  { %3452 = vmatmul.mubr.bf16.gmra.mrb[56].mxu1 %v8669_v26 }
 0x1bc   :  { %3459 = vmatprep.mubr.bf16.mxu1 %v8674_v31 }
 0x1c1   :  { %3967 = vmatmul.mubr.bf16.gmra.mrb[48].mxu0 %v8491_v55  ;;  %v8597_v55 = vld [vmem:[%s12063_s0 + $0x418] ss:$72 sps:$4 sm:$0xff]  }
 0x1c2   :  { %3974 = vmatprep.mubr.bf16.mxu0 %v8496_v56  ;;  %v8601_v56 = vld [vmem:[%s12063_s0 + $0x4ac] ss:$72 sps:$4 sm:$0xff]  }
 0x1c3   :  { %3460 = vmatmul.mubr.bf16.gmra.mrb[60].mxu1 %v8676_v33 }
 0x1c4   :  { %3467 = vmatprep.mubr.bf16.mxu1 %v8681_v37 }
 0x1c9   :  { %3975 = vmatmul.mubr.bf16.gmra.mrb[52].mxu0 %v8498_v59  ;;  %v8666_v59 = vld [vmem:[%s12062_s2 + $0x378] sm:$0xff]  }
 0x1ca   :  { %3982 = vmatprep.mubr.bf16.mxu0 %v8504_v60  ;;  %v8603_v60 = vld [vmem:[%s12063_s0 + $0x4a8] ss:$72 sps:$4 sm:$0xff]  }
 0x1cb   :  { %3468 = vmatmul.mubr.bf16.gmra.mrb[64].mxu1 %v8683_v38 }
 0x1cc   :  { %3475 = vmatprep.mubr.bf16.mxu1 %v8687_v43  ;;  %v8673_v43 = vld [vmem:[%s12062_s2 + $0x380] sm:$0xff]  }
 0x1d1   :  { %3983 = vmatmul.mubr.bf16.gmra.mrb[56].mxu0 %v8506_v63  ;;  %v8610_v63 = vld [vmem:[%s12063_s0 + $0x538] ss:$72 sps:$4 sm:$0xff]  }
 0x1d2   :  { %3990 = vmatprep.mubr.bf16.mxu0 %v8513_v1  ;;  %v8615_v1 = vld [vmem:[%s12063_s0 + $0x5cc] ss:$72 sps:$4 sm:$0xff]  }
 0x1d3   :  { %3476 = vmatmul.mubr.bf16.gmra.mrb[68].mxu1 %v8690_v44  ;;  %v8677_v44 = vld [vmem:[%s12063_s0 + $0xc4] ss:$72 sps:$4 sm:$0xff]  }
 0x1d9   :  { %3991 = vmatmul.mubr.bf16.gmra.mrb[60].mxu0 %v8515_v4  ;;  %v8622_v4 = vld [vmem:[%s12063_s0 + $0x65c] ss:$72 sps:$4 sm:$0xff]  }
 0x1da   :  { %3998 = vmatprep.mubr.bf16.mxu0 %v8521_v5  ;;  %v10374_v5 = vld [vmem:[%s12062_s2 + $0x420] sm:$0xff]  }
 0x1db   :  { %7664 = vmatpush1.bf16.msra.mxu1 %v10374_v5 }
 0x1dc   :  { %7649 = vmatprep.subr.bf16.mxu1 %v12070_v0 }
 0x1e1   :  { %3999 = vmatmul.mubr.bf16.gmra.mrb[64].mxu0 %v8524_v8  ;;  %v10387_v8 = vld [vmem:[%s12062_s2 + $0x428] sm:$0xff]  }
 0x1e2   :  { %4006 = vmatprep.mubr.bf16.mxu0 %v8530_v9  ;;  %7665 = vmatpush1.bf16.msra.mxu1 %v10387_v8  ;;  %v8631_v9 = vld [vmem:[%s12063_s0 + $0x6e8] ss:$72 sps:$4 sm:$0xff]  }
 0x1e3   :  { %7650 = vmatprep.subr.bf16.mxu1 %v12070_v0 }
 0x1e6   :  { %7666 = vmatpush1.bf16.msra.mxu1 %v10400_v11 }
 0x1e7   :  { %7651 = vmatprep.subr.bf16.mxu1 %v12070_v0 }
 0x1e9   :  { %4007 = vmatmul.mubr.bf16.gmra.mrb[68].mxu0 %v8532_v12  ;;  %v8638_v12 = vld [vmem:[%s12063_s0 + $0x778] ss:$72 sps:$4 sm:$0xff]  }
 0x1ea   :  { %4047 = vmatprep.mubr.bf16.mxu0 %v8541_v13  ;;  %v8643_v13 = vld [vmem:[%s12063_s0 + $0x80c] ss:$72 sps:$4 sm:$0xff]   ;;  %7667 = vmatpush1.bf16.msra.mxu1 %v10413_v14 }
 0x1eb   :  { %7652 = vmatprep.subr.bf16.mxu1 %v12070_v0 }
 0x1f1   :  { %4048 = vmatmul.mubr.bf16.vlgmr.msra.gmra.mrb[0].mxu0 %v8539_v16  ;;  %v8650_v16 = vld [vmem:[%s12063_s0 + $0x89c] ss:$72 sps:$4 sm:$0xff]  }
 0x1f2   :  { %4193 = vmatpush1.bf16.msra.mxu0 %v8543_v17  ;;  %4055 = vmatprep.mubr.bf16.mxu0 %v8548_v18 }
 0x1f3   :  { %4194 = vmatprep.subr.bf16.mxu0 %v12070_v0 }
 0x1f6   :  { %4195 = vmatpush1.bf16.msra.mxu0 %v8552_v21  ;;  %v10430_v21 = vld [vmem:[%s12062_s2 + $0x440] sm:$0xff]  }
 0x1f7   :  { %4196 = vmatprep.subr.bf16.mxu0 %v12070_v0  ;;  %7668 = vmatpush1.bf16.msra.mxu1 %v10430_v21 }
 0x1f8   :  { %7653 = vmatprep.subr.bf16.mxu1 %v12070_v0 }
 0x1f9   :  { %4056 = vmatmul.mubr.bf16.gmra.mrb[4].mxu0 %v8550_v22  ;;  %v8652_v22 = vld [vmem:[%s12063_s0 + $0x898] ss:$72 sps:$4 sm:$0xff]  }
 0x1fa   :  { %4063 = vmatprep.mubr.bf16.mxu0 %v8557_v23  ;;  %4197 = vmatpush1.bf16.msra.mxu0 %v8563_v24  ;;  %v8656_v23 = vld [vmem:[%s12063_s0 + $0x92c] ss:$72 sps:$4 sm:$0xff]  }
 0x1fb   :  { %4198 = vmatprep.subr.bf16.mxu0 %v12070_v0 }
 0x1fe   :  { %4199 = vmatpush1.bf16.msra.mxu0 %v8573_v27 }
 0x1ff   :  { %4200 = vmatprep.subr.bf16.mxu0 %v12070_v0 }
 0x201   :  { %4064 = vmatmul.mubr.bf16.gmra.mrb[8].mxu0 %v8559_v28  ;;  %v8659_v28 = vld [vmem:[%s12063_s0 + $0x928] ss:$72 sps:$4 sm:$0xff]  }
 0x202   :  { %4071 = vmatprep.mubr.bf16.mxu0 %v8566_v29  ;;  %4201 = vmatpush1.bf16.msra.mxu0 %v8580_v30  ;;  %v8663_v29 = vld [vmem:[%s12063_s0 + $0x9bc] ss:$72 sps:$4 sm:$0xff]  }
 0x203   :  { %4202 = vmatprep.subr.bf16.mxu0 %v12070_v0 }
 0x206   :  { %4203 = vmatpush1.bf16.msra.mxu0 %v8587_v32  ;;  %v10455_v32 = vld [vmem:[%s12062_s2 + $0x448] sm:$0xff]  }
 0x207   :  { %4204 = vmatprep.subr.bf16.mxu0 %v12070_v0  ;;  %7669 = vmatpush1.bf16.msra.mxu1 %v10455_v32 }
 0x208   :  { %7654 = vmatprep.subr.bf16.mxu1 %v12070_v0 }
 0x209   :  { %4072 = vmatmul.mubr.bf16.gmra.mrb[12].mxu0 %v8568_v34 }
 0x20a   :  { %4079 = vmatprep.mubr.bf16.mxu0 %v8574_v35  ;;  %4205 = vmatpush1.bf16.msra.mxu0 %v8596_v36  ;;  %v8665_v35 = vld [vmem:[%s12063_s0 + $0x9b8] ss:$72 sps:$4 sm:$0xff]   ;;  %v8672_v36 = vld [vmem:[%s12063_s0 + $0x34] ss:$72 sps:$4 sm:$0xff]  }
 0x20b   :  { %4206 = vmatprep.subr.bf16.mxu0 %v12070_v0 }
 0x20e   :  { %4207 = vmatpush1.bf16.msra.mxu0 %v8604_v39 }
 0x20f   :  { %4208 = vmatprep.subr.bf16.mxu0 %v12070_v0 }
 0x211   :  { %4080 = vmatmul.mubr.bf16.gmra.mrb[16].mxu0 %v8576_v40  ;;  %v10474_v40 = vld [vmem:[%s12062_s2 + $0x450] sm:$0xff]  }
 0x212   :  { %4087 = vmatprep.mubr.bf16.mxu0 %v8581_v41  ;;  %4209 = vmatpush1.bf16.msra.mxu0 %v8611_v42  ;;  %v8670_v42 = vld [vmem:[%s12063_s0 + $0x30] ss:$72 sps:$4 sm:$0xff]  }
 0x213   :  { %4210 = vmatprep.subr.bf16.mxu0 %v12070_v0  ;;  %7670 = vmatpush1.bf16.msra.mxu1 %v10474_v40 }
 0x214   :  { %7655 = vmatprep.subr.bf16.mxu1 %v12070_v0 }
 0x216   :  { %4211 = vmatpush1.bf16.msra.mxu0 %v8618_v45 }
 0x217   :  { %4212 = vmatprep.subr.bf16.mxu0 %v12070_v0 }
 0x219   :  { %4088 = vmatmul.mubr.bf16.gmra.mrb[20].mxu0 %v8583_v46  ;;  %v10423_v17 = vpop.f32.mrb[0].mxu1 }
 0x21a   :  { %4095 = vmatprep.mubr.bf16.mxu0 %v8588_v47  ;;  %4213 = vmatpush1.bf16.msra.mxu0 %v8627_v48  ;;  %12072 = vst [vmem:[#allocation3_spill] sm:$0xff] %v10423_v17  ;;  %v3343_v18 = vpop.f32.mrb[1].mxu1  ;;  %v10494_v48 = vld [vmem:[%s12062_s2 + $0x458] sm:$0xff]  }
 0x21b   :  { %4214 = vmatprep.subr.bf16.mxu0 %v12070_v0  ;;  %v10425_v19 = vpop.f32.mrb[2].mxu1  ;;  %7671 = vmatpush1.bf16.msra.mxu1 %v10494_v48  ;;  %v8695_v18 = vld [vmem:[%s12063_s0 + $0x274] ss:$72 sps:$4 sm:$0xff]  }
 0x21c   :  { %12073 = vst [vmem:[#allocation4_spill] sm:$0xff] %v10425_v19  ;;  %v3346_v20 = vpop.f32.mrb[3].mxu1  ;;  %7656 = vmatprep.subr.bf16.mxu1 %v12070_v0 }
 0x21d   :  { %v8711_v20 = vld [vmem:[%s12062_s2 + $0x3b0] sm:$0xff]  }
 0x21e   :  { %4215 = vmatpush1.bf16.msra.mxu0 %v8635_v49  ;;  %v8680_v49 = vld [vmem:[%s12062_s2 + $0x388] sm:$0xff]  }
 0x21f   :  { %4216 = vmatprep.subr.bf16.mxu0 %v12070_v0 }
 0x221   :  { %4096 = vmatmul.mubr.bf16.gmra.mrb[24].mxu0 %v8590_v51 }
 0x222   :  { %4103 = vmatprep.mubr.bf16.mxu0 %v8594_v52  ;;  %4217 = vmatpush1.bf16.msra.mxu0 %v8642_v53  ;;  %v8679_v52 = vld [vmem:[%s12063_s0 + $0xc0] ss:$72 sps:$4 sm:$0xff]   ;;  %v8684_v53 = vld [vmem:[%s12063_s0 + $0x154] ss:$72 sps:$4 sm:$0xff]  }
 0x223   :  { %4218 = vmatprep.subr.bf16.mxu0 %v12070_v0 }
 0x225   :  { %v10440_v24 = vpop.f32.mrb[4].mxu1 }
 0x226   :  { %4219 = vmatpush1.bf16.msra.mxu0 %v8649_v54  ;;  %v3351_v25 = vpop.f32.mrb[5].mxu1  ;;  %v8689_v54 = vld [vmem:[%s12062_s2 + $0x390] sm:$0xff]  }
 0x227   :  { %4220 = vmatprep.subr.bf16.mxu0 %v12070_v0  ;;  %v10442_v26 = vpop.f32.mrb[6].mxu1  ;;  %v8773_v25 = vld [vmem:[%s12063_s0 + $0xd4] ss:$72 sps:$4 sm:$0xff]  }
 0x228   :  { %v3354_v27 = vpop.f32.mrb[7].mxu1  ;;  %4586 = vmatprep.mubr.bf16.mxu1 %v8773_v25  ;;  %v8791_v25 = vld [vmem:[%s12063_s0 + $0x280] ss:$72 sps:$4 sm:$0xff]  }
 0x229   :  { %4104 = vmatmul.mubr.bf16.gmra.mrb[28].mxu0 %v8597_v55 }
 0x22a   :  { %4111 = vmatprep.mubr.bf16.mxu0 %v8601_v56  ;;  %4221 = vmatpush1.bf16.msra.mxu0 %v8658_v57 }
 0x22b   :  { %4222 = vmatprep.subr.bf16.mxu0 %v12070_v0 }
 0x22d   :  { %v10450_v30 = vpop.f32.mrb[8].mxu1 }
 0x22e   :  { %4223 = vmatpush1.bf16.msra.mxu0 %v8666_v59  ;;  %v3359_v31 = vpop.f32.mrb[9].mxu1  ;;  %v10519_v59 = vld [vmem:[%s12062_s2 + $0x460] sm:$0xff]  }
 0x22f   :  { %4369 = vmatprep.subr.bf16.mxu0 %v12070_v0  ;;  %v10457_v33 = vpop.f32.mrb[10].mxu1  ;;  %7672 = vmatpush1.bf16.msra.mxu1 %v10519_v59 }
 0x230   :  { %v3362_v34 = vpop.f32.mrb[11].mxu1  ;;  %7657 = vmatprep.subr.bf16.mxu1 %v12070_v0 }
 0x231   :  { %4112 = vmatmul.mubr.bf16.gmra.mrb[32].mxu0 %v8603_v60  ;;  %v8694_v60 = vld [vmem:[%s12062_s2 + $0x398] sm:$0xff]  }
 0x232   :  { %4119 = vmatprep.mubr.bf16.mxu0 %v8608_v61  ;;  %v8698_v34 = vld [vmem:[%s12063_s0 + $0x270] ss:$72 sps:$4 sm:$0xff]  }
 0x236   :  { %v10467_v37 = vpop.f32.mrb[12].mxu1 }
 0x237   :  { %v3367_v38 = vpop.f32.mrb[13].mxu1 }
 0x238   :  { %v10469_v39 = vpop.f32.mrb[14].mxu1 }
 0x239   :  { %4120 = vmatmul.mubr.bf16.gmra.mrb[36].mxu0 %v8610_v63  ;;  %v3370_v41 = vpop.f32.mrb[15].mxu1  ;;  %v10529_v63 = vld [vmem:[%s12062_s2 + $0x468] sm:$0xff]  }
 0x23a   :  { %4127 = vmatprep.mubr.bf16.mxu0 %v8615_v1  ;;  %v8686_v1 = vld [vmem:[%s12063_s0 + $0x150] ss:$72 sps:$4 sm:$0xff]   ;;  %7673 = vmatpush1.bf16.msra.mxu1 %v10529_v63 }
 0x23b   :  { %7658 = vmatprep.subr.bf16.mxu1 %v12070_v0 }
 0x23e   :  { %v10487_v45 = vpop.f32.mrb[16].mxu1 }
 0x23f   :  { %v3375_v46 = vpop.f32.mrb[17].mxu1 }
 0x240   :  { %v10489_v47 = vpop.f32.mrb[18].mxu1  ;;  %v8727_v46 = vld [vmem:[%s12062_s2 + $0x3c8] sm:$0xff]  }
 0x241   :  { %4128 = vmatmul.mubr.bf16.gmra.mrb[40].mxu0 %v8617_v3  ;;  %v3378_v51 = vpop.f32.mrb[19].mxu1  ;;  %v8691_v3 = vld [vmem:[%s12063_s0 + $0x1e4] ss:$72 sps:$4 sm:$0xff]  }
 0x242   :  { %4135 = vmatprep.mubr.bf16.mxu0 %v8622_v4  ;;  %v8699_v4 = vld [vmem:[%s12062_s2 + $0x3a0] sm:$0xff]  }
 0x243   :  { %v8702_v51 = vld [vmem:[%s12063_s0 + $0x300] ss:$72 sps:$4 sm:$0xff]  }
 0x246   :  { %v10512_v55 = vpop.f32.mrb[20].mxu1 }
 0x247   :  { %v3383_v56 = vpop.f32.mrb[21].mxu1 }
 0x248   :  { %v10514_v57 = vpop.f32.mrb[22].mxu1 }
 0x249   :  { %4136 = vmatmul.mubr.bf16.gmra.mrb[44].mxu0 %v8624_v6  ;;  %v3386_v61 = vpop.f32.mrb[23].mxu1 }
 0x24a   :  { %4143 = vmatprep.mubr.bf16.mxu0 %v8629_v7 }
 0x24e   :  { %v10542_v6 = vpop.f32.mrb[24].mxu1 }
 0x24f   :  { %v3391_v7 = vpop.f32.mrb[25].mxu1 }
 0x250   :  { %v8707_v7 = vld [vmem:[%s12063_s0 + $0x390] ss:$72 sps:$4 sm:$0xff]  }
 0x251   :  { %4144 = vmatmul.mubr.bf16.gmra.mrb[48].mxu0 %v8631_v9  ;;  %v10546_v9 = vpop.f32.mrb[26].mxu1 }
 0x252   :  { %4151 = vmatprep.mubr.bf16.mxu0 %v8636_v10  ;;  %v8704_v10 = vld [vmem:[%s12062_s2 + $0x3a8] sm:$0xff]  }
 0x259   :  { %4152 = vmatmul.mubr.bf16.gmra.mrb[52].mxu0 %v8638_v12  ;;  %v3394_v12 = vpop.f32.mrb[27].mxu1 }
 0x25a   :  { %4159 = vmatprep.mubr.bf16.mxu0 %v8643_v13  ;;  %v10554_v13 = vld [vmem:[%s12062_s2 + $0x470] sm:$0xff]   ;;  %v8742_v12 = vld [vmem:[%s12062_s2 + $0x3e0] sm:$0xff]  }
 0x25b   :  { %7674 = vmatpush1.bf16.msra.mxu1 %v10554_v13 }
 0x25c   :  { %7659 = vmatprep.subr.bf16.mxu1 %v12070_v0 }
 0x261   :  { %4160 = vmatmul.mubr.bf16.gmra.mrb[56].mxu0 %v8645_v15  ;;  %v10561_v15 = vld [vmem:[%s12062_s2 + $0x478] sm:$0xff]  }
 0x262   :  { %4167 = vmatprep.mubr.bf16.mxu0 %v8650_v16  ;;  %v8693_v16 = vld [vmem:[%s12063_s0 + $0x1e0] ss:$72 sps:$4 sm:$0xff]   ;;  %7675 = vmatpush1.bf16.msra.mxu1 %v10561_v15 }
 0x269   :  { %4168 = vmatmul.mubr.bf16.gmra.mrb[60].mxu0 %v8652_v22  ;;  %v10574_v22 = vpop.f32.mrb[28].mxu1 }
 0x26a   :  { %4175 = vmatprep.mubr.bf16.mxu0 %v8656_v23  ;;  %v3399_v23 = vpop.f32.mrb[29].mxu1 }
 0x26b   :  { %v10580_v27 = vpop.f32.mrb[30].mxu1 }
 0x26c   :  { %v3402_v31 = vpop.f32.mrb[31].mxu1 }
 0x26d   :  { %v10599_v38 = vpop.f32.mrb[32].mxu1  ;;  %v8712_v31 = vld [vmem:[%s12063_s0 + $0x420] ss:$72 sps:$4 sm:$0xff]  }
 0x26e   :  { %v3407_v41 = vpop.f32.mrb[33].mxu1 }
 0x271   :  { %4176 = vmatmul.mubr.bf16.gmra.mrb[64].mxu0 %v8659_v28  ;;  %v8771_v28 = vld [vmem:[%s12063_s0 + $0xd0] ss:$72 sps:$4 sm:$0xff]  }
 0x272   :  { %4183 = vmatprep.mubr.bf16.mxu0 %v8663_v29  ;;  %v8717_v29 = vld [vmem:[%s12062_s2 + $0x3b8] sm:$0xff]   ;;  %4587 = vmatmul.mubr.bf16.vlgmr.msra.gmra.mrb[72].mxu1 %v8771_v28  ;;  %v8747_v28 = vld [vmem:[%s12062_s2 + $0x3e8] sm:$0xff]  }
 0x279   :  { %4184 = vmatmul.mubr.bf16.gmra.mrb[68].mxu0 %v8665_v35  ;;  %v8700_v35 = vld [vmem:[%s12063_s0 + $0x304] ss:$72 sps:$4 sm:$0xff]  }
 0x27a   :  { %4224 = vmatprep.mubr.bf16.mxu0 %v8672_v36  ;;  %v8722_v36 = vld [vmem:[%s12062_s2 + $0x3c0] sm:$0xff]  }
 0x281   :  { %4225 = vmatmul.mubr.bf16.vlgmr.msra.gmra.mrb[0].mxu0 %v8670_v42  ;;  %v8777_v42 = vld [vmem:[%s12063_s0 + $0x164] ss:$72 sps:$4 sm:$0xff]  }
 0x282   :  { %4370 = vmatpush1.bf16.msra.mxu0 %v8673_v43  ;;  %4232 = vmatprep.mubr.bf16.mxu0 %v8677_v44  ;;  %v10604_v43 = vpop.f32.mrb[34].mxu1  ;;  %v8779_v44 = vld [vmem:[%s12063_s0 + $0x160] ss:$72 sps:$4 sm:$0xff]  }
 0x283   :  { %4371 = vmatprep.subr.bf16.mxu0 %v12070_v0  ;;  %4594 = vmatprep.mubr.bf16.mxu1 %v8777_v42  ;;  %v8795_v42 = vld [vmem:[%s12063_s0 + $0x314] ss:$72 sps:$4 sm:$0xff]  }
 0x284   :  { %4595 = vmatmul.mubr.bf16.gmra.mrb[76].mxu1 %v8779_v44 }
 0x286   :  { %4372 = vmatpush1.bf16.msra.mxu0 %v8680_v49  ;;  %v3410_v49 = vpop.f32.mrb[35].mxu1 }
 0x287   :  { %4373 = vmatprep.subr.bf16.mxu0 %v12070_v0  ;;  %v8760_v49 = vld [vmem:[%s12062_s2 + $0x3f8] sm:$0xff]  }
 0x289   :  { %4233 = vmatmul.mubr.bf16.gmra.mrb[4].mxu0 %v8679_v52  ;;  %v8705_v52 = vld [vmem:[%s12063_s0 + $0x394] ss:$72 sps:$4 sm:$0xff]  }
 0x28a   :  { %4240 = vmatprep.mubr.bf16.mxu0 %v8684_v53  ;;  %4374 = vmatpush1.bf16.msra.mxu0 %v8689_v54  ;;  %v8732_v53 = vld [vmem:[%s12062_s2 + $0x3d0] sm:$0xff]   ;;  %v10623_v54 = vpop.f32.mrb[36].mxu1 }
 0x28b   :  { %4375 = vmatprep.subr.bf16.mxu0 %v12070_v0  ;;  %v3415_v56 = vpop.f32.mrb[37].mxu1 }
 0x28c   :  { %v10628_v61 = vpop.f32.mrb[38].mxu1 }
 0x28e   :  { %4376 = vmatpush1.bf16.msra.mxu0 %v8694_v60  ;;  %v8783_v60 = vld [vmem:[%s12063_s0 + $0x1f4] ss:$72 sps:$4 sm:$0xff]  }
 0x28f   :  { %4377 = vmatprep.subr.bf16.mxu0 %v12070_v0  ;;  %4602 = vmatprep.mubr.bf16.mxu1 %v8783_v60 }
 0x291   :  { %4241 = vmatmul.mubr.bf16.gmra.mrb[8].mxu0 %v8686_v1  ;;  %v8785_v1 = vld [vmem:[%s12063_s0 + $0x1f0] ss:$72 sps:$4 sm:$0xff]  }
 0x292   :  { %4248 = vmatprep.mubr.bf16.mxu0 %v8691_v3  ;;  %4378 = vmatpush1.bf16.msra.mxu0 %v8699_v4  ;;  %v8737_v3 = vld [vmem:[%s12062_s2 + $0x3d8] sm:$0xff]   ;;  %v3418_v4 = vpop.f32.mrb[39].mxu1 }
 0x293   :  { %4379 = vmatprep.subr.bf16.mxu0 %v12070_v0  ;;  %4603 = vmatmul.mubr.bf16.gmra.mrb[80].mxu1 %v8785_v1  ;;  %v8801_v1 = vld [vmem:[%s12063_s0 + $0x3a4] ss:$72 sps:$4 sm:$0xff]   ;;  %v8803_v4 = vld [vmem:[%s12063_s0 + $0x3a0] ss:$72 sps:$4 sm:$0xff]  }
 0x296   :  { %4380 = vmatpush1.bf16.msra.mxu0 %v8704_v10  ;;  %v8709_v10 = vld [vmem:[%s12063_s0 + $0x424] ss:$72 sps:$4 sm:$0xff]  }
 0x297   :  { %4381 = vmatprep.subr.bf16.mxu0 %v12070_v0 }
 0x299   :  { %4249 = vmatmul.mubr.bf16.gmra.mrb[12].mxu0 %v8693_v16  ;;  %v10647_v16 = vpop.f32.mrb[40].mxu1 }
 0x29a   :  { %4256 = vmatprep.mubr.bf16.mxu0 %v8695_v18  ;;  %4382 = vmatpush1.bf16.msra.mxu0 %v8711_v20  ;;  %v3423_v18 = vpop.f32.mrb[41].mxu1  ;;  %v8789_v20 = vld [vmem:[%s12063_s0 + $0x284] ss:$72 sps:$4 sm:$0xff]  }
 0x29b   :  { %4383 = vmatprep.subr.bf16.mxu0 %v12070_v0  ;;  %v10652_v23 = vpop.f32.mrb[42].mxu1  ;;  %4610 = vmatprep.mubr.bf16.mxu1 %v8789_v20 }
 0x29c   :  { %4611 = vmatmul.mubr.bf16.gmra.mrb[84].mxu1 %v8791_v25  ;;  %v8807_v25 = vld [vmem:[%s12063_s0 + $0x434] ss:$72 sps:$4 sm:$0xff]  }
 0x29d   :  { %4618 = vmatprep.mubr.bf16.mxu1 %v8795_v42 }
 0x29e   :  { %4384 = vmatpush1.bf16.msra.mxu0 %v8717_v29  ;;  %v3426_v29 = vpop.f32.mrb[43].mxu1 }
 0x29f   :  { %4385 = vmatprep.subr.bf16.mxu0 %v12070_v0  ;;  %v8809_v29 = vld [vmem:[%s12063_s0 + $0x430] ss:$72 sps:$4 sm:$0xff]  }
 0x2a1   :  { %4257 = vmatmul.mubr.bf16.gmra.mrb[16].mxu0 %v8698_v34  ;;  %v8714_v34 = vld [vmem:[%s12063_s0 + $0x4b4] ss:$72 sps:$4 sm:$0xff]  }
 0x2a2   :  { %4264 = vmatprep.mubr.bf16.mxu0 %v8700_v35  ;;  %4386 = vmatpush1.bf16.msra.mxu0 %v8722_v36  ;;  %v8754_v35 = vld [vmem:[%s12062_s2 + $0x3f0] sm:$0xff]   ;;  %v10671_v36 = vpop.f32.mrb[44].mxu1 }
 0x2a3   :  { %4387 = vmatprep.subr.bf16.mxu0 %v12070_v0  ;;  %v3431_v41 = vpop.f32.mrb[45].mxu1 }
 0x2a4   :  { %v10676_v44 = vpop.f32.mrb[46].mxu1 }
 0x2a6   :  { %4388 = vmatpush1.bf16.msra.mxu0 %v8727_v46  ;;  %v8797_v46 = vld [vmem:[%s12063_s0 + $0x310] ss:$72 sps:$4 sm:$0xff]  }
 0x2a7   :  { %4389 = vmatprep.subr.bf16.mxu0 %v12070_v0  ;;  %4619 = vmatmul.mubr.bf16.gmra.mrb[88].mxu1 %v8797_v46  ;;  %v8813_v46 = vld [vmem:[%s12063_s0 + $0x4c4] ss:$72 sps:$4 sm:$0xff]  }
 0x2a8   :  { %4626 = vmatprep.mubr.bf16.mxu1 %v8801_v1 }
 0x2a9   :  { %4265 = vmatmul.mubr.bf16.gmra.mrb[20].mxu0 %v8702_v51  ;;  %v3434_v51 = vpop.f32.mrb[47].mxu1 }
 0x2aa   :  { %4272 = vmatprep.mubr.bf16.mxu0 %v8705_v52  ;;  %4390 = vmatpush1.bf16.msra.mxu0 %v8732_v53  ;;  %v8716_v52 = vld [vmem:[%s12063_s0 + $0x4b0] ss:$72 sps:$4 sm:$0xff]   ;;  %v8719_v53 = vld [vmem:[%s12063_s0 + $0x544] ss:$72 sps:$4 sm:$0xff]   ;;  %v10692_v56 = vpop.f32.mrb[48].mxu1 }
 0x2ab   :  { %4391 = vmatprep.subr.bf16.mxu0 %v12070_v0  ;;  %v3439_v60 = vpop.f32.mrb[49].mxu1  ;;  %v8815_v51 = vld [vmem:[%s12063_s0 + $0x4c0] ss:$72 sps:$4 sm:$0xff]  }
 0x2ac   :  { %v8734_v60 = vld [vmem:[%s12063_s0 + $0x6f4] ss:$72 sps:$4 sm:$0xff]  }
 0x2ae   :  { %4392 = vmatpush1.bf16.msra.mxu0 %v8737_v3  ;;  %v10697_v3 = vpop.f32.mrb[50].mxu1 }
 0x2af   :  { %4393 = vmatprep.subr.bf16.mxu0 %v12070_v0  ;;  %4627 = vmatmul.mubr.bf16.gmra.mrb[92].mxu1 %v8803_v4 }
 0x2b0   :  { %4634 = vmatprep.mubr.bf16.mxu1 %v8807_v25  ;;  %v8736_v25 = vld [vmem:[%s12063_s0 + $0x6f0] ss:$72 sps:$4 sm:$0xff]  }
 0x2b1   :  { %4273 = vmatmul.mubr.bf16.gmra.mrb[24].mxu0 %v8707_v7  ;;  %v3442_v7 = vpop.f32.mrb[51].mxu1 }
 0x2b2   :  { %4280 = vmatprep.mubr.bf16.mxu0 %v8709_v10  ;;  %4394 = vmatpush1.bf16.msra.mxu0 %v8742_v12  ;;  %v8721_v10 = vld [vmem:[%s12063_s0 + $0x540] ss:$72 sps:$4 sm:$0xff]   ;;  %v8724_v12 = vld [vmem:[%s12063_s0 + $0x5d4] ss:$72 sps:$4 sm:$0xff]   ;;  %v10708_v18 = vpop.f32.mrb[52].mxu1 }
 0x2b3   :  { %4395 = vmatprep.subr.bf16.mxu0 %v12070_v0  ;;  %v3447_v20 = vpop.f32.mrb[53].mxu1  ;;  %v8819_v7 = vld [vmem:[%s12063_s0 + $0x554] ss:$72 sps:$4 sm:$0xff]  }
 0x2b6   :  { %4396 = vmatpush1.bf16.msra.mxu0 %v8747_v28  ;;  %v10713_v28 = vpop.f32.mrb[54].mxu1 }
 0x2b7   :  { %4397 = vmatprep.subr.bf16.mxu0 %v12070_v0  ;;  %4635 = vmatmul.mubr.bf16.gmra.mrb[96].mxu1 %v8809_v29  ;;  %v8738_v29 = vld [vmem:[%s12063_s0 + $0x784] ss:$72 sps:$4 sm:$0xff]  }
 0x2b8   :  { %4642 = vmatprep.mubr.bf16.mxu1 %v8813_v46  ;;  %v8827_v46 = vld [vmem:[%s12063_s0 + $0x5e0] ss:$72 sps:$4 sm:$0xff]  }
 0x2b9   :  { %4281 = vmatmul.mubr.bf16.gmra.mrb[28].mxu0 %v8712_v31  ;;  %v3450_v31 = vpop.f32.mrb[55].mxu1 }
 0x2ba   :  { %4288 = vmatprep.mubr.bf16.mxu0 %v8714_v34  ;;  %4398 = vmatpush1.bf16.msra.mxu0 %v8754_v35  ;;  %v8726_v34 = vld [vmem:[%s12063_s0 + $0x5d0] ss:$72 sps:$4 sm:$0xff]   ;;  %v8729_v35 = vld [vmem:[%s12063_s0 + $0x664] ss:$72 sps:$4 sm:$0xff]   ;;  %v10724_v41 = vpop.f32.mrb[56].mxu1 }
 0x2bb   :  { %4399 = vmatprep.subr.bf16.mxu0 %v12070_v0  ;;  %12074 = vst [vmem:[#allocation5_spill] sm:$0xff] %v10724_v41  ;;  %v3455_v42 = vpop.f32.mrb[57].mxu1 }
 0x2be   :  { %4400 = vmatpush1.bf16.msra.mxu0 %v8760_v49  ;;  %v10729_v49 = vpop.f32.mrb[58].mxu1 }
 0x2bf   :  { %4546 = vmatprep.subr.bf16.mxu0 %v12070_v0  ;;  %12075 = vst [vmem:[#allocation6_spill] sm:$0xff] %v10729_v49  ;;  %4643 = vmatmul.mubr.bf16.gmra.mrb[100].mxu1 %v8815_v51  ;;  %v9242_v49 = vmov 0.0  }
 0x2c0   :  { %4650 = vmatprep.mubr.bf16.mxu1 %v8819_v7  ;;  %v8831_v7 = vld [vmem:[%s12063_s0 + $0x674] ss:$72 sps:$4 sm:$0xff]   ;;  %4787 = vst [vmem:[#allocation2 + $0x8] sm:$0xff] %v9242_v49  ;;  %4786 = vst [vmem:[#allocation2] sm:$0xff] %v9242_v49 }
 0x2c1   :  { %4289 = vmatmul.mubr.bf16.gmra.mrb[32].mxu0 %v8716_v52  ;;  %v3458_v52 = vpop.f32.mrb[59].mxu1  ;;  %4788 = vst [vmem:[#allocation2 + $0x10] sm:$0xff] %v9242_v49  ;;  %4789 = vst [vmem:[#allocation2 + $0x18] sm:$0xff] %v9242_v49 }
 0x2c2   :  { %4296 = vmatprep.mubr.bf16.mxu0 %v8719_v53  ;;  %v8731_v53 = vld [vmem:[%s12063_s0 + $0x660] ss:$72 sps:$4 sm:$0xff]   ;;  %v10740_v1 = vpop.f32.mrb[60].mxu1  ;;  %4790 = vst [vmem:[#allocation2 + $0x20] sm:$0xff] %v9242_v49 }
 0x2c3   :  { %12076 = vst [vmem:[#allocation7_spill] sm:$0xff] %v10740_v1  ;;  %v3463_v4 = vpop.f32.mrb[61].mxu1  ;;  %v8741_v52 = vld [vmem:[%s12063_s0 + $0x780] ss:$72 sps:$4 sm:$0xff]  }
 0x2c9   :  { %4297 = vmatmul.mubr.bf16.gmra.mrb[36].mxu0 %v8721_v10  ;;  %v10745_v10 = vpop.f32.mrb[62].mxu1 }
 0x2ca   :  { %4304 = vmatprep.mubr.bf16.mxu0 %v8724_v12  ;;  %12077 = vst [vmem:[#allocation8_spill] sm:$0xff] %v10745_v10  ;;  %v8821_v12 = vld [vmem:[%s12063_s0 + $0x550] ss:$72 sps:$4 sm:$0xff]   ;;  %v3466_v20 = vpop.f32.mrb[63].mxu1 }
 0x2cb   :  { %4651 = vmatmul.mubr.bf16.gmra.mrb[104].mxu1 %v8821_v12  ;;  %v10756_v31 = vpop.f32.mrb[64].mxu1  ;;  %v8833_v20 = vld [vmem:[%s12063_s0 + $0x670] ss:$72 sps:$4 sm:$0xff]  }
 0x2cc   :  { %12078 = vst [vmem:[#allocation9_spill] sm:$0xff] %v10756_v31 }
 0x2d1   :  { %4305 = vmatmul.mubr.bf16.gmra.mrb[40].mxu0 %v8726_v34  ;;  %v3471_v34 = vpop.f32.mrb[65].mxu1 }
 0x2d2   :  { %4312 = vmatprep.mubr.bf16.mxu0 %v8729_v35  ;;  %v8825_v35 = vld [vmem:[%s12063_s0 + $0x5e4] ss:$72 sps:$4 sm:$0xff]   ;;  %v10761_v42 = vpop.f32.mrb[66].mxu1 }
 0x2d3   :  { %12079 = vst [vmem:[#allocation10_spill] sm:$0xff] %v10761_v42  ;;  %4658 = vmatprep.mubr.bf16.mxu1 %v8825_v35  ;;  %v3474_v51 = vpop.f32.mrb[67].mxu1  ;;  %v8748_v34 = vld [vmem:[%s12063_s0 + $0x8a4] ss:$72 sps:$4 sm:$0xff]  }
 0x2d4   :  { %4659 = vmatmul.mubr.bf16.gmra.mrb[108].mxu1 %v8827_v46  ;;  %v8837_v35 = vld [vmem:[%s12063_s0 + $0x704] ss:$72 sps:$4 sm:$0xff]   ;;  %v8839_v46 = vld [vmem:[%s12063_s0 + $0x700] ss:$72 sps:$4 sm:$0xff]  }
 0x2d5   :  { %4666 = vmatprep.mubr.bf16.mxu1 %v8831_v7  ;;  %v8750_v51 = vld [vmem:[%s12063_s0 + $0x8a0] ss:$72 sps:$4 sm:$0xff]   ;;  %v8755_v7 = vld [vmem:[%s12063_s0 + $0x930] ss:$72 sps:$4 sm:$0xff]  }
 0x2d9   :  { %4313 = vmatmul.mubr.bf16.gmra.mrb[44].mxu0 %v8731_v53  ;;  %v8743_v53 = vld [vmem:[%s12063_s0 + $0x814] ss:$72 sps:$4 sm:$0xff]  }
 0x2da   :  { %4320 = vmatprep.mubr.bf16.mxu0 %v8734_v60  ;;  %v10772_v60 = vpop.f32.mrb[68].mxu1 }
 0x2db   :  { %12080 = vst [vmem:[#allocation11_spill] sm:$0xff] %v10772_v60  ;;  %v3479_v4 = vpop.f32.mrb[69].mxu1 }
 0x2dc   :  { %v10777_v12 = vpop.f32.mrb[70].mxu1  ;;  %4667 = vmatmul.mubr.bf16.gmra.mrb[112].mxu1 %v8833_v20  ;;  %v8845_v4 = vld [vmem:[%s12063_s0 + $0x790] ss:$72 sps:$4 sm:$0xff]   ;;  %v8757_v20 = vld [vmem:[%s12063_s0 + $0x9c4] ss:$72 sps:$4 sm:$0xff]  }
 0x2dd   :  { %12081 = vst [vmem:[#allocation12_spill] sm:$0xff] %v10777_v12  ;;  %4674 = vmatprep.mubr.bf16.mxu1 %v8837_v35  ;;  %v8764_v35 = vld [vmem:[%s12063_s0 + $0x3c] ss:$72 sps:$4 sm:$0xff]  }
 0x2e1   :  { %4321 = vmatmul.mubr.bf16.gmra.mrb[48].mxu0 %v8736_v25  ;;  %v3482_v25 = vpop.f32.mrb[71].mxu1 }
 0x2e2   :  { %4328 = vmatprep.mubr.bf16.mxu0 %v8738_v29  ;;  %v8745_v29 = vld [vmem:[%s12063_s0 + $0x810] ss:$72 sps:$4 sm:$0xff]   ;;  %v8849_v25 = vld [vmem:[%s12063_s0 + $0x824] ss:$72 sps:$4 sm:$0xff]  }
 0x2e4   :  { %4675 = vmatmul.mubr.bf16.gmra.mrb[116].mxu1 %v8839_v46  ;;  %v8855_v46 = vld [vmem:[%s12063_s0 + $0x8b4] ss:$72 sps:$4 sm:$0xff]  }
 0x2e9   :  { %4329 = vmatmul.mubr.bf16.gmra.mrb[52].mxu0 %v8741_v52  ;;  %v8752_v52 = vld [vmem:[%s12063_s0 + $0x934] ss:$72 sps:$4 sm:$0xff]  }
 0x2ea   :  { %4336 = vmatprep.mubr.bf16.mxu0 %v8743_v53  ;;  %v8843_v53 = vld [vmem:[%s12063_s0 + $0x794] ss:$72 sps:$4 sm:$0xff]  }
 0x2eb   :  { %4682 = vmatprep.mubr.bf16.mxu1 %v8843_v53  ;;  %v8767_v53 = vld [vmem:[%s12063_s0 + $0xcc] ss:$72 sps:$4 sm:$0xff]  }
 0x2ec   :  { %4683 = vmatmul.mubr.bf16.gmra.mrb[120].mxu1 %v8845_v4  ;;  %v8861_v4 = vld [vmem:[%s12063_s0 + $0x944] ss:$72 sps:$4 sm:$0xff]  }
 0x2ed   :  { %4690 = vmatprep.mubr.bf16.mxu1 %v8849_v25  ;;  %v8774_v25 = vld [vmem:[%s12063_s0 + $0x15c] ss:$72 sps:$4 sm:$0xff]  }
 0x2f1   :  { %4337 = vmatmul.mubr.bf16.gmra.mrb[56].mxu0 %v8745_v29  ;;  %v8851_v29 = vld [vmem:[%s12063_s0 + $0x820] ss:$72 sps:$4 sm:$0xff]  }
 0x2f2   :  { %4344 = vmatprep.mubr.bf16.mxu0 %v8748_v34  ;;  %v8759_v34 = vld [vmem:[%s12063_s0 + $0x9c0] ss:$72 sps:$4 sm:$0xff]  }
 0x2f4   :  { %4691 = vmatmul.mubr.bf16.gmra.mrb[124].mxu1 %v8851_v29  ;;  %v8869_v29 = vld [vmem:[%s12063_s0 + $0x9d0] ss:$72 sps:$4 sm:$0xff]  }
 0x2f5   :  { %4698 = vmatprep.mubr.bf16.mxu1 %v8855_v46  ;;  %v8824_v46 = vld [vmem:[%s12063_s0 + $0x5d8] ss:$72 sps:$4 sm:$0xff]  }
 0x2f9   :  { %4345 = vmatmul.mubr.bf16.gmra.mrb[60].mxu0 %v8750_v51  ;;  %v8857_v51 = vld [vmem:[%s12063_s0 + $0x8b0] ss:$72 sps:$4 sm:$0xff]  }
 0x2fa   :  { %4352 = vmatprep.mubr.bf16.mxu0 %v8752_v52  ;;  %v8762_v52 = vld [vmem:[%s12063_s0 + $0x38] ss:$72 sps:$4 sm:$0xff]  }
 0x2fc   :  { %4699 = vmatmul.mubr.bf16.gmra.mrb[128].mxu1 %v8857_v51  ;;  %v8830_v51 = vld [vmem:[%s12063_s0 + $0x668] ss:$72 sps:$4 sm:$0xff]  }
 0x2fd   :  { %4706 = vmatprep.mubr.bf16.mxu1 %v8861_v4  ;;  %v8840_v4 = vld [vmem:[%s12063_s0 + $0x78c] ss:$72 sps:$4 sm:$0xff]  }
 0x301   :  { %4353 = vmatmul.mubr.bf16.gmra.mrb[64].mxu0 %v8755_v7  ;;  %v8863_v7 = vld [vmem:[%s12063_s0 + $0x940] ss:$72 sps:$4 sm:$0xff]  }
 0x302   :  { %4360 = vmatprep.mubr.bf16.mxu0 %v8757_v20  ;;  %v8770_v20 = vld [vmem:[%s12063_s0 + $0xc8] ss:$72 sps:$4 sm:$0xff]  }
 0x304   :  { %4707 = vmatmul.mubr.bf16.gmra.mrb[132].mxu1 %v8863_v7 }
 0x309   :  { %4361 = vmatmul.mubr.bf16.gmra.mrb[68].mxu0 %v8759_v34  ;;  %v8780_v34 = vld [vmem:[%s12063_s0 + $0x1ec] ss:$72 sps:$4 sm:$0xff]  }
 0x30a   :  { %4401 = vmatprep.mubr.bf16.mxu0 %v8764_v35  ;;  %v8786_v35 = vld [vmem:[%s12063_s0 + $0x27c] ss:$72 sps:$4 sm:$0xff]  }
 0x311   :  { %4402 = vmatmul.mubr.bf16.vlgmr.msra.gmra.mrb[0].mxu0 %v8762_v52  ;;  %v8834_v52 = vld [vmem:[%s12063_s0 + $0x6fc] ss:$72 sps:$4 sm:$0xff]  }
 0x312   :  { %4547 = vmatpush1.bf16.msra.mxu0 %v10298_v50  ;;  %4409 = vmatprep.mubr.bf16.mxu0 %v8767_v53  ;;  %v8867_v50 = vld [vmem:[%s12063_s0 + $0x9d4] ss:$72 sps:$4 sm:$0xff]   ;;  %v8836_v53 = vld [vmem:[%s12063_s0 + $0x6f8] ss:$72 sps:$4 sm:$0xff]  }
 0x313   :  { %4548 = vmatprep.subr.bf16.mxu0 %v12070_v0  ;;  %4714 = vmatprep.mubr.bf16.mxu1 %v8867_v50 }
 0x314   :  { %4715 = vmatmul.mubr.bf16.gmra.mrb[136].mxu1 %v8869_v29  ;;  %v8842_v29 = vld [vmem:[%s12063_s0 + $0x788] ss:$72 sps:$4 sm:$0xff]  }
 0x316   :  { %4549 = vmatpush1.bf16.msra.mxu0 %v10330_v58  ;;  %v8776_v58 = vld [vmem:[%s12063_s0 + $0x158] ss:$72 sps:$4 sm:$0xff]  }
 0x317   :  { %4550 = vmatprep.subr.bf16.mxu0 %v12070_v0 }
 0x319   :  { %4410 = vmatmul.mubr.bf16.gmra.mrb[4].mxu0 %v8770_v20 }
 0x31a   :  { %4417 = vmatprep.mubr.bf16.mxu0 %v8774_v25  ;;  %4551 = vmatpush1.bf16.msra.mxu0 %v10348_v62  ;;  %v8782_v62 = vld [vmem:[%s12063_s0 + $0x1e8] ss:$72 sps:$4 sm:$0xff]  }
 0x31b   :  { %4552 = vmatprep.subr.bf16.mxu0 %v12070_v0 }
 0x31e   :  { %4553 = vmatpush1.bf16.msra.mxu0 %v10361_v2  ;;  %v8788_v2 = vld [vmem:[%s12063_s0 + $0x278] ss:$72 sps:$4 sm:$0xff]  }
 0x31f   :  { %4554 = vmatprep.subr.bf16.mxu0 %v12070_v0 }
 0x321   :  { %4418 = vmatmul.mubr.bf16.gmra.mrb[8].mxu0 %v8776_v58  ;;  %v8846_v58 = vld [vmem:[%s12063_s0 + $0x81c] ss:$72 sps:$4 sm:$0xff]  }
 0x322   :  { %4425 = vmatprep.mubr.bf16.mxu0 %v8780_v34  ;;  %4555 = vmatpush1.bf16.msra.mxu0 %v10374_v5  ;;  %v8792_v5 = vld [vmem:[%s12063_s0 + $0x30c] ss:$72 sps:$4 sm:$0xff]  }
 0x323   :  { %4556 = vmatprep.subr.bf16.mxu0 %v12070_v0 }
 0x326   :  { %4557 = vmatpush1.bf16.msra.mxu0 %v10387_v8  ;;  %v8794_v8 = vld [vmem:[%s12063_s0 + $0x308] ss:$72 sps:$4 sm:$0xff]  }
 0x327   :  { %4558 = vmatprep.subr.bf16.mxu0 %v12070_v0 }
 0x329   :  { %4426 = vmatmul.mubr.bf16.gmra.mrb[12].mxu0 %v8782_v62 }
 0x32a   :  { %4433 = vmatprep.mubr.bf16.mxu0 %v8786_v35  ;;  %4559 = vmatpush1.bf16.msra.mxu0 %v10400_v11  ;;  %v8798_v11 = vld [vmem:[%s12063_s0 + $0x39c] ss:$72 sps:$4 sm:$0xff]  }
 0x32b   :  { %4560 = vmatprep.subr.bf16.mxu0 %v12070_v0 }
 0x32e   :  { %4561 = vmatpush1.bf16.msra.mxu0 %v10413_v14  ;;  %v8800_v14 = vld [vmem:[%s12063_s0 + $0x398] ss:$72 sps:$4 sm:$0xff]  }
 0x32f   :  { %4562 = vmatprep.subr.bf16.mxu0 %v12070_v0 }
 0x331   :  { %4434 = vmatmul.mubr.bf16.gmra.mrb[16].mxu0 %v8788_v2 }
 0x332   :  { %4441 = vmatprep.mubr.bf16.mxu0 %v8792_v5  ;;  %4563 = vmatpush1.bf16.msra.mxu0 %v10430_v21  ;;  %v8804_v21 = vld [vmem:[%s12063_s0 + $0x42c] ss:$72 sps:$4 sm:$0xff]   ;;  %v8848_v5 = vld [vmem:[%s12063_s0 + $0x818] ss:$72 sps:$4 sm:$0xff]  }
 0x333   :  { %4564 = vmatprep.subr.bf16.mxu0 %v12070_v0 }
 0x336   :  { %4565 = vmatpush1.bf16.msra.mxu0 %v10455_v32  ;;  %v8806_v32 = vld [vmem:[%s12063_s0 + $0x428] ss:$72 sps:$4 sm:$0xff]  }
 0x337   :  { %4566 = vmatprep.subr.bf16.mxu0 %v12070_v0 }
 0x339   :  { %4442 = vmatmul.mubr.bf16.gmra.mrb[20].mxu0 %v8794_v8  ;;  %v8852_v8 = vld [vmem:[%s12063_s0 + $0x8ac] ss:$72 sps:$4 sm:$0xff]  }
 0x33a   :  { %4449 = vmatprep.mubr.bf16.mxu0 %v8798_v11  ;;  %4567 = vmatpush1.bf16.msra.mxu0 %v10474_v40  ;;  %v8810_v40 = vld [vmem:[%s12063_s0 + $0x4bc] ss:$72 sps:$4 sm:$0xff]  }
 0x33b   :  { %4568 = vmatprep.subr.bf16.mxu0 %v12070_v0 }
 0x33e   :  { %4569 = vmatpush1.bf16.msra.mxu0 %v10494_v48  ;;  %v8812_v48 = vld [vmem:[%s12063_s0 + $0x4b8] ss:$72 sps:$4 sm:$0xff]  }
 0x33f   :  { %4570 = vmatprep.subr.bf16.mxu0 %v12070_v0 }
 0x341   :  { %4450 = vmatmul.mubr.bf16.gmra.mrb[24].mxu0 %v8800_v14 }
 0x342   :  { %4457 = vmatprep.mubr.bf16.mxu0 %v8804_v21  ;;  %4571 = vmatpush1.bf16.msra.mxu0 %v10519_v59  ;;  %v8816_v59 = vld [vmem:[%s12063_s0 + $0x54c] ss:$72 sps:$4 sm:$0xff]  }
 0x343   :  { %4572 = vmatprep.subr.bf16.mxu0 %v12070_v0 }
 0x345   :  { %v10951_v7 = vpop.f32.mrb[72].mxu1 }
 0x346   :  { %4573 = vmatpush1.bf16.msra.mxu0 %v10529_v63  ;;  %v8818_v63 = vld [vmem:[%s12063_s0 + $0x548] ss:$72 sps:$4 sm:$0xff]   ;;  %v4590_v20 = vpop.f32.mrb[73].mxu1 }
 0x347   :  { %4574 = vmatprep.subr.bf16.mxu0 %v12070_v0  ;;  %v10953_v25 = vpop.f32.mrb[74].mxu1 }
 0x348   :  { %v4593_v50 = vpop.f32.mrb[75].mxu1 }
 0x349   :  { %4458 = vmatmul.mubr.bf16.gmra.mrb[28].mxu0 %v8806_v32  ;;  %v8866_v50 = vld [vmem:[%s12063_s0 + $0x9c8] ss:$72 sps:$4 sm:$0xff]  }
 0x34a   :  { %4465 = vmatprep.mubr.bf16.mxu0 %v8810_v40  ;;  %4575 = vmatpush1.bf16.msra.mxu0 %v10554_v13  ;;  %v8822_v13 = vld [vmem:[%s12063_s0 + $0x5dc] ss:$72 sps:$4 sm:$0xff]   ;;  %v8854_v40 = vld [vmem:[%s12063_s0 + $0x8a8] ss:$72 sps:$4 sm:$0xff]  }
 0x34b   :  { %4576 = vmatprep.subr.bf16.mxu0 %v12070_v0 }
 0x34e   :  { %4577 = vmatpush1.bf16.msra.mxu0 %v10561_v15  ;;  %v8828_v15 = vld [vmem:[%s12063_s0 + $0x66c] ss:$72 sps:$4 sm:$0xff]  }
 0x351   :  { %4466 = vmatmul.mubr.bf16.gmra.mrb[32].mxu0 %v8812_v48  ;;  %v8858_v48 = vld [vmem:[%s12063_s0 + $0x93c] ss:$72 sps:$4 sm:$0xff]  }
 0x352   :  { %4473 = vmatprep.mubr.bf16.mxu0 %v8816_v59 }
 0x357   :  { %v10961_v34 = vpop.f32.mrb[76].mxu1 }
 0x358   :  { %v4598_v62 = vpop.f32.mrb[77].mxu1 }
 0x359   :  { %4474 = vmatmul.mubr.bf16.gmra.mrb[36].mxu0 %v8818_v63  ;;  %v10963_v35 = vpop.f32.mrb[78].mxu1 }
 0x35a   :  { %4481 = vmatprep.mubr.bf16.mxu0 %v8822_v13  ;;  %v4601_v2 = vpop.f32.mrb[79].mxu1 }
 0x361   :  { %4482 = vmatmul.mubr.bf16.gmra.mrb[40].mxu0 %v8824_v46 }
 0x362   :  { %4489 = vmatprep.mubr.bf16.mxu0 %v8828_v15  ;;  %v8860_v15 = vld [vmem:[%s12063_s0 + $0x938] ss:$72 sps:$4 sm:$0xff]  }
 0x366   :  { %v10971_v11 = vpop.f32.mrb[80].mxu1 }
 0x367   :  { %v4606_v14 = vpop.f32.mrb[81].mxu1 }
 0x368   :  { %v10973_v21 = vpop.f32.mrb[82].mxu1 }
 0x369   :  { %4490 = vmatmul.mubr.bf16.gmra.mrb[44].mxu0 %v8830_v51  ;;  %v4609_v32 = vpop.f32.mrb[83].mxu1  ;;  %v8864_v51 = vld [vmem:[%s12063_s0 + $0x9cc] ss:$72 sps:$4 sm:$0xff]  }
 0x36a   :  { %4497 = vmatprep.mubr.bf16.mxu0 %v8834_v52 }
 0x36f   :  { %v10981_v59 = vpop.f32.mrb[84].mxu1 }
 0x370   :  { %v4614_v63 = vpop.f32.mrb[85].mxu1 }
 0x371   :  { %4498 = vmatmul.mubr.bf16.gmra.mrb[48].mxu0 %v8836_v53  ;;  %v10983_v13 = vpop.f32.mrb[86].mxu1 }
 0x372   :  { %4505 = vmatprep.mubr.bf16.mxu0 %v8840_v4  ;;  %v4617_v46 = vpop.f32.mrb[87].mxu1 }
 0x379   :  { %4506 = vmatmul.mubr.bf16.gmra.mrb[52].mxu0 %v8842_v29  ;;  %v8872_v29 = vld [vmem:[%s12063_s0 + $0x44] ss:$72 sps:$4 sm:$0xff]  }
 0x37a   :  { %4513 = vmatprep.mubr.bf16.mxu0 %v8846_v58  ;;  %v10991_v52 = vpop.f32.mrb[88].mxu1 }
 0x37b   :  { %v4622_v53 = vpop.f32.mrb[89].mxu1 }
 0x37c   :  { %v10993_v4 = vpop.f32.mrb[90].mxu1 }
 0x37d   :  { %v4625_v20 = vpop.f32.mrb[91].mxu1 }
 0x381   :  { %4514 = vmatmul.mubr.bf16.gmra.mrb[56].mxu0 %v8848_v5 }
 0x382   :  { %4521 = vmatprep.mubr.bf16.mxu0 %v8852_v8  ;;  %v11001_v58 = vpop.f32.mrb[92].mxu1  ;;  %v8870_v8 = vld [vmem:[%s12063_s0 + $0x40] ss:$72 sps:$4 sm:$0xff]  }
 0x383   :  { %v4630_v62 = vpop.f32.mrb[93].mxu1 }
 0x384   :  { %v11003_v2 = vpop.f32.mrb[94].mxu1 }
 0x385   :  { %v4633_v5 = vpop.f32.mrb[95].mxu1 }
 0x389   :  { %4522 = vmatmul.mubr.bf16.gmra.mrb[60].mxu0 %v8854_v40 }
 0x38a   :  { %4529 = vmatprep.mubr.bf16.mxu0 %v8858_v48  ;;  %v11008_v14 = vpop.f32.mrb[96].mxu1 }
 0x38b   :  { %v4638_v32 = vpop.f32.mrb[97].mxu1 }
 0x38c   :  { %v11010_v40 = vpop.f32.mrb[98].mxu1 }
 0x38d   :  { %v4641_v48 = vpop.f32.mrb[99].mxu1 }
 0x391   :  { %4530 = vmatmul.mubr.bf16.gmra.mrb[64].mxu0 %v8860_v15 }
 0x392   :  { %4537 = vmatprep.mubr.bf16.mxu0 %v8864_v51  ;;  %v11012_v63 = vpop.f32.mrb[100].mxu1 }
 0x393   :  { %v4646_v46 = vpop.f32.mrb[101].mxu1 }
 0x394   :  { %v11014_v15 = vpop.f32.mrb[102].mxu1 }
 0x395   :  { %v4649_v51 = vpop.f32.mrb[103].mxu1 }
 0x399   :  { %4538 = vmatmul.mubr.bf16.gmra.mrb[68].mxu0 %v8866_v50 }
 0x39a   :  { %4578 = vmatprep.mubr.bf16.mxu0 %v8872_v29 }
 0x39e   :  { %v11016_v53 = vpop.f32.mrb[104].mxu1 }
 0x39f   :  { %v4654_v20 = vpop.f32.mrb[105].mxu1 }
 0x3a0   :  { %v11018_v50 = vpop.f32.mrb[106].mxu1 }
 0x3a1   :  { %4579 = vmatmul.mubr.bf16.vlgmr.msra.gmra.mrb[0].mxu0 %v8870_v8  ;;  %v4657_v29 = vpop.f32.mrb[107].mxu1 }
 0x3a7   :  { %v11020_v62 = vpop.f32.mrb[108].mxu1 }
 0x3a8   :  { %v4662_v5 = vpop.f32.mrb[109].mxu1 }
 0x3a9   :  { %v11022_v32 = vpop.f32.mrb[110].mxu1 }
 0x3aa   :  { %v4665_v8 = vpop.f32.mrb[111].mxu1 }
 0x3af   :  { %v11024_v0 = vpop.f32.mrb[112].mxu1 }
 0x3b0   :  { %v4670_v48 = vpop.f32.mrb[113].mxu1 }
 0x3b1   :  { %v11026_v19 = vpop.f32.mrb[114].mxu1 }
 0x3b2   :  { %v4673_v46 = vpop.f32.mrb[115].mxu1 }
 0x3b7   :  { %v11028_v17 = vpop.f32.mrb[116].mxu1 }
 0x3b8   :  { %v4678_v51 = vpop.f32.mrb[117].mxu1 }
 0x3b9   :  { %v11030_v12 = vpop.f32.mrb[118].mxu1 }
 0x3ba   :  { %v4681_v20 = vpop.f32.mrb[119].mxu1 }
 0x3bf   :  { %v11032_v60 = vpop.f32.mrb[120].mxu1 }
 0x3c0   :  { %12082 = vst [vmem:[#allocation13_spill] sm:$0xff] %v11032_v60  ;;  %v4686_v29 = vpop.f32.mrb[121].mxu1 }
 0x3c1   :  { %v11034_v42 = vpop.f32.mrb[122].mxu1 }
 0x3c2   :  { %12083 = vst [vmem:[#allocation14_spill] sm:$0xff] %v11034_v42  ;;  %v4689_v5 = vpop.f32.mrb[123].mxu1 }
 0x3c7   :  { %v11036_v31 = vpop.f32.mrb[124].mxu1 }
 0x3c8   :  { %12084 = vst [vmem:[#allocation15_spill] sm:$0xff] %v11036_v31  ;;  %v4694_v8 = vpop.f32.mrb[125].mxu1 }
 0x3c9   :  { %v11038_v10 = vpop.f32.mrb[126].mxu1  ;;  %v11051_v8 = vld [vmem:[%s12064_s3] ss:$0 sm:$0xff] }
 0x3ca   :  { %12085 = vst [vmem:[#allocation16_spill] sm:$0xff] %v11038_v10  ;;  %v4697_v48 = vpop.f32.mrb[127].mxu1  ;;  %v7683_v49 = vadd.f32 %v11051_v8, %v10442_v26  ;;  %v7686_v26 = vadd.f32 %v11051_v8, %v10450_v30  ;;  %v8873_v30 = vld [vmem:[%s12065_s4] ss:$16 sps:$4 sm:$0xff]  }
 0x3cf   :  { %v11040_v1 = vpop.f32.mrb[128].mxu1 }
 0x3d0   :  { %12086 = vst [vmem:[#allocation17_spill] sm:$0xff] %v11040_v1  ;;  %v4702_v46 = vpop.f32.mrb[129].mxu1 }
 0x3d1   :  { %v11042_v51 = vpop.f32.mrb[130].mxu1  ;;  %v7680_v46 = vadd.f32 %v11051_v8, %v10440_v24 }
 0x3d2   :  { %12087 = vst [vmem:[#allocation18_spill] sm:$0xff] %v11042_v51  ;;  %v4705_v20 = vpop.f32.mrb[131].mxu1 }
 0x3d7   :  { %v11044_v29 = vpop.f32.mrb[132].mxu1 }
 0x3d8   :  { %12088 = vst [vmem:[#allocation19_spill] sm:$0xff] %v11044_v29  ;;  %v4710_v5 = vpop.f32.mrb[133].mxu1 }
 0x3d9   :  { %v11046_v31 = vpop.f32.mrb[134].mxu1 }
 0x3da   :  { %12089 = vst [vmem:[#allocation20_spill] sm:$0xff] %v11046_v31  ;;  %v4713_v48 = vpop.f32.mrb[135].mxu1 }
 0x3e7   :  { %v11060_v41 = vpop.f32.mrb[136].mxu1 }
 0x3e8   :  { %v4718_v42 = vpop.f32.mrb[137].mxu1 }
 0x3e9   :  { %v11065_v60 = vpop.f32.mrb[138].mxu1 }
 0x3ea   :  { %v4721_v24 = vpop.f32.mrb[139].mxu1 }
 0x3ec   :  { %v4411_v1 = vpop.f32.mrb[4].mxu0 }
 0x3ed   :  { %v7681_v51 = vadd.f32 %v7680_v46, %v4411_v1  ;;  %v4413_v20 = vpop.f32.mrb[5].mxu0 }
 0x3ee   :  { %v4414_v10 = vpop.f32.mrb[6].mxu0 }
 0x3ef   :  { %v7684_v29 = vadd.f32 %v7683_v49, %v4414_v10  ;;  %v11058_v5 = vadd.f32 %v7681_v51, %v10951_v7  ;;  %v4416_v31 = vpop.f32.mrb[7].mxu0  ;;  %v7689_v10 = vadd.f32 %v11051_v8, %v10457_v33  ;;  %v7695_v33 = vadd.f32 %v11051_v8, %v10469_v39  ;;  %v8876_v39 = vld [vmem:[%s12065_s4 + $0x20] ss:$16 sps:$4 sm:$0xff]  }
 0x3f1   :  { %v11063_v48 = vadd.f32 %v7684_v29, %v10953_v25  ;;  %v7692_v29 = vadd.f32 %v11051_v8, %v10467_v37 }
 0x3f4   :  { %v4419_v1 = vpop.f32.mrb[8].mxu0 }
 0x3f5   :  { %v7687_v46 = vadd.f32 %v7686_v26, %v4419_v1  ;;  %v4421_v7 = vpop.f32.mrb[9].mxu0 }
 0x3f6   :  { %v4422_v51 = vpop.f32.mrb[10].mxu0 }
 0x3f7   :  { %v7690_v31 = vadd.f32 %v7689_v10, %v4422_v51  ;;  %v11072_v49 = vadd.f32 %v7687_v46, %v10961_v34  ;;  %v4424_v42 = vpop.f32.mrb[11].mxu0  ;;  %v8875_v34 = vld [vmem:[%s12065_s4 + $0x4] ss:$16 sps:$4 sm:$0xff]  }
 0x3f8   :  { %5795 = vmatprep.subr.bf16.mxu1 %v8875_v34  ;;  %v8881_v51 = vld [vmem:[%s12065_s4 + $0x44] ss:$16 sps:$4 sm:$0xff]   ;;  %v8879_v42 = vld [vmem:[%s12065_s4 + $0x40] ss:$16 sps:$4 sm:$0xff]  }
 0x3f9   :  { %v11075_v25 = vadd.f32 %v7690_v31, %v10963_v35  ;;  %v8878_v35 = vld [vmem:[%s12065_s4 + $0x24] ss:$16 sps:$4 sm:$0xff]   ;;  %5796 = vmatpush1.bf16.msra.mxu1 %v8873_v30  ;;  %v7698_v31 = vadd.f32 %v11051_v8, %v10487_v45  ;;  %v8882_v34 = vld [vmem:[%s12065_s4 + $0x60] ss:$16 sps:$4 sm:$0xff]  }
 0x3fa   :  { %5797 = vmatprep.subr.bf16.mxu1 %v8878_v35  ;;  %v8884_v30 = vld [vmem:[%s12065_s4 + $0x64] ss:$16 sps:$4 sm:$0xff]   ;;  %v7704_v35 = vadd.f32 %v11051_v8, %v10512_v55  ;;  %v8888_v55 = vld [vmem:[%s12065_s4 + $0xa0] ss:$16 sps:$4 sm:$0xff]  }
 0x3fc   :  { %v4427_v20 = vpop.f32.mrb[12].mxu0 }
 0x3fd   :  { %v7693_v24 = vadd.f32 %v7692_v29, %v4427_v20  ;;  %v4429_v26 = vpop.f32.mrb[13].mxu0  ;;  %5798 = vmatpush1.bf16.msra.mxu1 %v8876_v39  ;;  %v7701_v29 = vadd.f32 %v11051_v8, %v10489_v47 }
 0x3fe   :  { %v4430_v1 = vpop.f32.mrb[14].mxu0  ;;  %5799 = vmatprep.subr.bf16.mxu1 %v8881_v51 }
 0x3ff   :  { %v7696_v37 = vadd.f32 %v7695_v33, %v4430_v1  ;;  %v11091_v10 = vadd.f32 %v7693_v24, %v10971_v11  ;;  %v4432_v46 = vpop.f32.mrb[15].mxu0  ;;  %v8887_v1 = vld [vmem:[%s12065_s4 + $0x84] ss:$16 sps:$4 sm:$0xff]  }
 0x401   :  { %v11097_v7 = vadd.f32 %v7696_v37, %v10973_v21  ;;  %5800 = vmatpush1.bf16.msra.mxu1 %v8879_v42  ;;  %v8890_v37 = vld [vmem:[%s12065_s4 + $0xa4] ss:$16 sps:$4 sm:$0xff]  }
 0x402   :  { %5801 = vmatprep.subr.bf16.mxu1 %v8884_v30  ;;  %v7710_v30 = vadd.f32 %v11051_v8, %v10542_v6  ;;  %v8894_v6 = vld [vmem:[%s12065_s4 + $0xe0] ss:$16 sps:$4 sm:$0xff]  }
 0x404   :  { %v4435_v11 = vpop.f32.mrb[16].mxu0 }
 0x405   :  { %v7699_v20 = vadd.f32 %v7698_v31, %v4435_v11  ;;  %v4437_v21 = vpop.f32.mrb[17].mxu0  ;;  %5802 = vmatpush1.bf16.msra.mxu1 %v8882_v34 }
 0x406   :  { %v4438_v33 = vpop.f32.mrb[18].mxu0  ;;  %5803 = vmatprep.subr.bf16.mxu1 %v8887_v1  ;;  %v8891_v21 = vld [vmem:[%s12065_s4 + $0xc0] ss:$16 sps:$4 sm:$0xff]  }
 0x407   :  { %v7702_v24 = vadd.f32 %v7701_v29, %v4438_v33  ;;  %v11113_v45 = vadd.f32 %v7699_v20, %v10981_v59  ;;  %v4440_v26 = vpop.f32.mrb[19].mxu0  ;;  %v8885_v59 = vld [vmem:[%s12065_s4 + $0x80] ss:$16 sps:$4 sm:$0xff]   ;;  %v8893_v20 = vld [vmem:[%s12065_s4 + $0xc4] ss:$16 sps:$4 sm:$0xff]   ;;  %v4725_v33 = vmax.f32 %v11058_v5, 0.0 }
 0x409   :  { %v11119_v47 = vadd.f32 %v7702_v24, %v10983_v13  ;;  %v7707_v13 = vadd.f32 %v11051_v8, %v10514_v57  ;;  %5804 = vmatpush1.bf16.msra.mxu1 %v8885_v59  ;;  %v8896_v24 = vld [vmem:[%s12065_s4 + $0xe4] ss:$16 sps:$4 sm:$0xff]  }
 0x40a   :  { %5805 = vmatprep.subr.bf16.mxu1 %v8890_v37 }
 0x40c   :  { %v4443_v46 = vpop.f32.mrb[20].mxu0 }
 0x40d   :  { %v7705_v39 = vadd.f32 %v7704_v35, %v4443_v46  ;;  %v4445_v51 = vpop.f32.mrb[21].mxu0  ;;  %5806 = vmatpush1.bf16.msra.mxu1 %v8888_v55  ;;  %v7716_v55 = vadd.f32 %v11051_v8, %v10574_v22 }
 0x40e   :  { %v4446_v31 = vpop.f32.mrb[22].mxu0  ;;  %5807 = vmatprep.subr.bf16.mxu1 %v8893_v20 }
 0x40f   :  { %v7708_v11 = vadd.f32 %v7707_v13, %v4446_v31  ;;  %v11138_v42 = vadd.f32 %v7705_v39, %v10991_v52  ;;  %v4448_v29 = vpop.f32.mrb[23].mxu0  ;;  %v8899_v13 = vld [vmem:[%s12065_s4 + $0x104] ss:$16 sps:$4 sm:$0xff]   ;;  %v8897_v31 = vld [vmem:[%s12065_s4 + $0x100] ss:$16 sps:$4 sm:$0xff]  }
 0x411   :  { %v7709_v57 = vadd.f32 %v7708_v11, %v10993_v4  ;;  %v7713_v4 = vadd.f32 %v11051_v8, %v10546_v9  ;;  %5808 = vmatpush1.bf16.msra.mxu1 %v8891_v21  ;;  %v4726_v9 = vmax.f32 %v11063_v48, 0.0  ;;  %v8902_v48 = vld [vmem:[%s12065_s4 + $0x124] ss:$16 sps:$4 sm:$0xff]  }
 0x412   :  { %5809 = vmatprep.subr.bf16.mxu1 %v8896_v24 }
 0x413   :  { %v4734_v52 = vmax.f32 %v7709_v57, 0.0 }
 0x414   :  { %v4451_v26 = vpop.f32.mrb[24].mxu0 }
 0x415   :  { %v11155_v34 = vmax.f32 %v4725_v33, %v4734_v52  ;;  %v7711_v1 = vadd.f32 %v7710_v30, %v4451_v26  ;;  %v4453_v35 = vpop.f32.mrb[25].mxu0  ;;  %5810 = vmatpush1.bf16.msra.mxu1 %v8894_v6  ;;  %v8905_v26 = vld [vmem:[%s12065_s4 + $0x144] ss:$16 sps:$4 sm:$0xff]  }
 0x416   :  { %v4454_v59 = vpop.f32.mrb[26].mxu0  ;;  %5811 = vmatprep.subr.bf16.mxu1 %v8899_v13  ;;  %v8903_v35 = vld [vmem:[%s12065_s4 + $0x140] ss:$16 sps:$4 sm:$0xff]  }
 0x417   :  { %v7714_v5 = vadd.f32 %v7713_v4, %v4454_v59  ;;  %v7712_v37 = vadd.f32 %v7711_v1, %v11001_v58  ;;  %v4456_v46 = vpop.f32.mrb[27].mxu0  ;;  %v4727_v58 = vmax.f32 %v11072_v49, 0.0  ;;  %v8900_v49 = vld [vmem:[%s12065_s4 + $0x120] ss:$16 sps:$4 sm:$0xff]   ;;  %v7722_v59 = vadd.f32 %v11051_v8, %v10599_v38 }
 0x419   :  { %v4735_v39 = vmax.f32 %v7712_v37, 0.0  ;;  %v7715_v51 = vadd.f32 %v7714_v5, %v11003_v2  ;;  %v7719_v2 = vadd.f32 %v11051_v8, %v10580_v27  ;;  %5812 = vmatpush1.bf16.msra.mxu1 %v8897_v31  ;;  %v4728_v27 = vmax.f32 %v11075_v25, 0.0  ;;  %v8908_v25 = vld [vmem:[%s12065_s4 + $0x164] ss:$16 sps:$4 sm:$0xff]  }
 0x41a   :  { %5813 = vmatprep.subr.bf16.mxu1 %v8902_v48  ;;  %v4731_v48 = vmax.f32 %v11113_v45, 0.0  ;;  %v7734_v45 = vadd.f32 %v11051_v8, %v10647_v16  ;;  %v7743_v16 = vadd.f32 %v11051_v8, %v10676_v44 }
 0x41b   :  { %v11172_v11 = vmax.f32 %v4726_v9, %v4735_v39  ;;  %v4736_v29 = vmax.f32 %v7715_v51, 0.0 }
 0x41c   :  { %v4459_v20 = vpop.f32.mrb[28].mxu0 }
 0x41d   :  { %v11179_v57 = vmax.f32 %v4727_v58, %v4736_v29  ;;  %v7717_v21 = vadd.f32 %v7716_v55, %v4459_v20  ;;  %v4461_v30 = vpop.f32.mrb[29].mxu0  ;;  %5814 = vmatpush1.bf16.msra.mxu1 %v8900_v49  ;;  %v4730_v55 = vmax.f32 %v11097_v7, 0.0  ;;  %v7728_v29 = vadd.f32 %v11051_v8, %v10623_v54 }
 0x41e   :  { %v4462_v22 = vpop.f32.mrb[30].mxu0  ;;  %5815 = vmatprep.subr.bf16.mxu1 %v8905_v26  ;;  %v7737_v26 = vadd.f32 %v11051_v8, %v10652_v23 }
 0x41f   :  { %v7720_v33 = vadd.f32 %v7719_v2, %v4462_v22  ;;  %v7718_v52 = vadd.f32 %v7717_v21, %v11008_v14  ;;  %v4464_v24 = vpop.f32.mrb[31].mxu0  ;;  %v4729_v14 = vmax.f32 %v11091_v10, 0.0  ;;  %v8906_v10 = vld [vmem:[%s12065_s4 + $0x160] ss:$16 sps:$4 sm:$0xff]  }
 0x421   :  { %v4737_v4 = vmax.f32 %v7718_v52, 0.0  ;;  %v7721_v1 = vadd.f32 %v7720_v33, %v11010_v40  ;;  %v7725_v40 = vadd.f32 %v11051_v8, %v10604_v43  ;;  %5816 = vmatpush1.bf16.msra.mxu1 %v8903_v35 }
 0x422   :  { %5817 = vmatprep.subr.bf16.mxu1 %v8908_v25 }
 0x423   :  { %v11196_v6 = vmax.f32 %v4728_v27, %v4737_v4  ;;  %v4738_v5 = vmax.f32 %v7721_v1, 0.0 }
 0x424   :  { %v4467_v37 = vpop.f32.mrb[32].mxu0 }
 0x425   :  { %v11203_v46 = vmax.f32 %v4729_v14, %v4738_v5  ;;  %v7723_v13 = vadd.f32 %v7722_v59, %v4467_v37  ;;  %v4469_v9 = vpop.f32.mrb[33].mxu0  ;;  %5818 = vmatpush1.bf16.msra.mxu1 %v8906_v10 }
 0x426   :  { %v4470_v38 = vpop.f32.mrb[34].mxu0 }
 0x427   :  { %v7726_v39 = vadd.f32 %v7725_v40, %v4470_v38  ;;  %v7724_v51 = vadd.f32 %v7723_v13, %v11012_v63  ;;  %v4472_v31 = vpop.f32.mrb[35].mxu0  ;;  %v7731_v63 = vadd.f32 %v11051_v8, %v10628_v61 }
 0x429   :  { %v4739_v58 = vmax.f32 %v7724_v51, 0.0  ;;  %v7727_v43 = vadd.f32 %v7726_v39, %v11014_v15 }
 0x42b   :  { %v11214_v20 = vmax.f32 %v4730_v55, %v4739_v58  ;;  %v4740_v2 = vmax.f32 %v7727_v43, 0.0 }
 0x42c   :  { %v4475_v21 = vpop.f32.mrb[36].mxu0 }
 0x42d   :  { %v11218_v30 = vmax.f32 %v4731_v48, %v4740_v2  ;;  %v7729_v7 = vadd.f32 %v7728_v29, %v4475_v21  ;;  %v4477_v22 = vpop.f32.mrb[37].mxu0  ;;  %v12090_v48 = vld [vmem:[#allocation13_spill] sm:$0xff]  ;;  %v12091_v21 = vld [vmem:[#allocation14_spill] sm:$0xff] }
 0x42e   :  { %v4478_v49 = vpop.f32.mrb[38].mxu0 }
 0x42f   :  { %v7732_v15 = vadd.f32 %v7731_v63, %v4478_v49  ;;  %v7730_v33 = vadd.f32 %v7729_v7, %v11016_v53  ;;  %v4480_v52 = vpop.f32.mrb[39].mxu0  ;;  %v7740_v53 = vadd.f32 %v11051_v8, %v10671_v36  ;;  %v7749_v36 = vadd.f32 %v11051_v8, %v10697_v3  ;;  %v12092_v7 = vld [vmem:[#allocation5_spill] sm:$0xff] }
 0x431   :  { %v7733_v54 = vadd.f32 %v7732_v15, %v11018_v50  ;;  %v4741_v22 = vmax.f32 %v7730_v33, 0.0  ;;  %v12093_v15 = vld [vmem:[#allocation6_spill] sm:$0xff] }
 0x432   :  { %v7761_v52 = vadd.f32 %v11051_v8, %v12093_v15  ;;  %v8909_v33 = vld [vmem:[%s12065_s4 + $0x180] ss:$16 sps:$4 sm:$0xff]  }
 0x434   :  { %v4483_v24 = vpop.f32.mrb[40].mxu0 }
 0x435   :  { %v7735_v27 = vadd.f32 %v7734_v45, %v4483_v24  ;;  %v4485_v61 = vpop.f32.mrb[41].mxu0 }
 0x436   :  { %v4486_v4 = vpop.f32.mrb[42].mxu0  ;;  %v12094_v61 = vld [vmem:[#allocation15_spill] sm:$0xff] }
 0x437   :  { %v7738_v1 = vadd.f32 %v7737_v26, %v4486_v4  ;;  %v7736_v35 = vadd.f32 %v7735_v27, %v11020_v62  ;;  %v4488_v59 = vpop.f32.mrb[43].mxu0 }
 0x438   :  { %v4742_v59 = vmax.f32 %v7733_v54, 0.0  ;;  %v8914_v54 = vld [vmem:[%s12065_s4 + $0x1a4] ss:$16 sps:$4 sm:$0xff]  }
 0x439   :  { %v11228_v14 = vadd.f32 %v7738_v1, %v11022_v32  ;;  %v7746_v32 = vadd.f32 %v11051_v8, %v10692_v56  ;;  %v7755_v56 = vadd.f32 %v11051_v8, %v10713_v28 }
 0x43c   :  { %v4491_v50 = vpop.f32.mrb[44].mxu0 }
 0x43d   :  { %v7741_v5 = vadd.f32 %v7740_v53, %v4491_v50  ;;  %v4493_v25 = vpop.f32.mrb[45].mxu0  ;;  %v12095_v50 = vld [vmem:[#allocation16_spill] sm:$0xff] }
 0x43e   :  { %v4494_v23 = vpop.f32.mrb[46].mxu0  ;;  %v12096_v25 = vld [vmem:[#allocation7_spill] sm:$0xff] }
 0x43f   :  { %v7744_v37 = vadd.f32 %v7743_v16, %v4494_v23  ;;  %v11235_v40 = vadd.f32 %v7741_v5, %v11024_v0  ;;  %v4496_v13 = vpop.f32.mrb[47].mxu0  ;;  %v8911_v5 = vld [vmem:[%s12065_s4 + $0x184] ss:$16 sps:$4 sm:$0xff]   ;;  %v7764_v23 = vadd.f32 %v11051_v8, %v12096_v25 }
 0x440   :  { %5819 = vmatprep.subr.bf16.mxu1 %v8911_v5 }
 0x441   :  { %v11238_v62 = vadd.f32 %v7744_v37, %v11026_v19  ;;  %v7752_v19 = vadd.f32 %v11051_v8, %v10708_v18  ;;  %v4743_v37 = vmax.f32 %v7736_v35, 0.0  ;;  %5820 = vmatpush1.bf16.msra.mxu1 %v8909_v33  ;;  %v8912_v35 = vld [vmem:[%s12065_s4 + $0x1a0] ss:$16 sps:$4 sm:$0xff]  }
 0x442   :  { %5821 = vmatprep.subr.bf16.mxu1 %v8914_v54 }
 0x444   :  { %v4499_v9 = vpop.f32.mrb[48].mxu0 }
 0x445   :  { %v7747_v38 = vadd.f32 %v7746_v32, %v4499_v9  ;;  %v4501_v44 = vpop.f32.mrb[49].mxu0  ;;  %5822 = vmatpush1.bf16.msra.mxu1 %v8912_v35 }
 0x446   :  { %v4502_v10 = vpop.f32.mrb[50].mxu0 }
 0x447   :  { %v7750_v39 = vadd.f32 %v7749_v36, %v4502_v10  ;;  %v11245_v51 = vadd.f32 %v7747_v38, %v11028_v17  ;;  %v4504_v0 = vpop.f32.mrb[51].mxu0  ;;  %v12097_v36 = vld [vmem:[#allocation8_spill] sm:$0xff] }
 0x448   :  { %v7767_v38 = vadd.f32 %v11051_v8, %v12097_v36 }
 0x449   :  { %v11248_v31 = vadd.f32 %v7750_v39, %v11030_v12  ;;  %v7758_v12 = vadd.f32 %v11051_v8, %v12092_v7  ;;  %v4745_v7 = vmax.f32 %v11235_v40, 0.0  ;;  %v4746_v40 = vmax.f32 %v11238_v62, 0.0 }
 0x44a   :  { %v4747_v5 = vmax.f32 %v11245_v51, 0.0 }
 0x44c   :  { %v4507_v55 = vpop.f32.mrb[52].mxu0 }
 0x44d   :  { %v7753_v58 = vadd.f32 %v7752_v19, %v4507_v55  ;;  %v4509_v3 = vpop.f32.mrb[53].mxu0 }
 0x44e   :  { %v4510_v43 = vpop.f32.mrb[54].mxu0 }
 0x44f   :  { %v7756_v29 = vadd.f32 %v7755_v56, %v4510_v43  ;;  %v11255_v2 = vadd.f32 %v7753_v58, %v12090_v48  ;;  %v4512_v17 = vpop.f32.mrb[55].mxu0  ;;  %v12098_v56 = vld [vmem:[#allocation17_spill] sm:$0xff]  ;;  %v4744_v43 = vmax.f32 %v11228_v14, 0.0  ;;  %v12099_v48 = vld [vmem:[#allocation18_spill] sm:$0xff] }
 0x451   :  { %v7757_v63 = vadd.f32 %v7756_v29, %v12091_v21  ;;  %v12100_v21 = vld [vmem:[#allocation9_spill] sm:$0xff] }
 0x453   :  { %v4750_v49 = vmax.f32 %v7757_v63, 0.0  ;;  %v7770_v63 = vadd.f32 %v11051_v8, %v12100_v21 }
 0x454   :  { %v4515_v18 = vpop.f32.mrb[56].mxu0 }
 0x455   :  { %v11262_v28 = vmax.f32 %v4741_v22, %v4750_v49  ;;  %v7759_v45 = vadd.f32 %v7758_v12, %v4515_v18  ;;  %v4517_v24 = vpop.f32.mrb[57].mxu0  ;;  %v12101_v49 = vld [vmem:[#allocation10_spill] sm:$0xff] }
 0x456   :  { %v4518_v26 = vpop.f32.mrb[58].mxu0  ;;  %v7773_v18 = vadd.f32 %v11051_v8, %v12101_v49 }
 0x457   :  { %v7762_v27 = vadd.f32 %v7761_v52, %v4518_v26  ;;  %v7760_v4 = vadd.f32 %v7759_v45, %v12094_v61  ;;  %v4520_v1 = vpop.f32.mrb[59].mxu0  ;;  %v12102_v61 = vld [vmem:[#allocation19_spill] sm:$0xff] }
 0x459   :  { %v4751_v53 = vmax.f32 %v7760_v4, 0.0  ;;  %v7763_v16 = vadd.f32 %v7762_v27, %v12095_v50 }
 0x45b   :  { %v11274_v13 = vmax.f32 %v4742_v59, %v4751_v53  ;;  %v4752_v32 = vmax.f32 %v7763_v16, 0.0  ;;  %v12103_v53 = vld [vmem:[#allocation20_spill] sm:$0xff]  ;;  %v12104_v16 = vld [vmem:[#allocation11_spill] sm:$0xff] }
 0x45c   :  { %v4523_v9 = vpop.f32.mrb[60].mxu0  ;;  %v7776_v33 = vadd.f32 %v11051_v8, %v12104_v16  ;;  %v8932_v16 = vld [vmem:[%s12065_s4 + $0x264] ss:$16 sps:$4 sm:$0xff]  }
 0x45d   :  { %v4770_v44 = vmax.f32 %v4743_v37, %v4752_v32  ;;  %v7765_v10 = vadd.f32 %v7764_v23, %v4523_v9  ;;  %v4525_v39 = vpop.f32.mrb[61].mxu0  ;;  %v12105_v37 = vld [vmem:[#allocation12_spill] sm:$0xff] }
 0x45e   :  { %v4526_v0 = vpop.f32.mrb[62].mxu0  ;;  %v7779_v32 = vadd.f32 %v11051_v8, %v12105_v37  ;;  %v8941_v37 = vld [vmem:[%s12065_s4 + $0x2c4] ss:$16 sps:$4 sm:$0xff]  }
 0x45f   :  { %v4779_v19 = vmax.f32 %v11155_v34, %v4770_v44  ;;  %v7768_v55 = vadd.f32 %v7767_v38, %v4526_v0  ;;  %v7766_v58 = vadd.f32 %v7765_v10, %v12098_v56  ;;  %v4528_v3 = vpop.f32.mrb[63].mxu0  ;;  %v4748_v0 = vmax.f32 %v11248_v31, 0.0  ;;  %v8918_v56 = vld [vmem:[%s12065_s4 + $0x1e0] ss:$16 sps:$4 sm:$0xff]  }
 0x461   :  { %v4753_v29 = vmax.f32 %v7766_v58, 0.0  ;;  %v7769_v17 = vadd.f32 %v7768_v55, %v12099_v48  ;;  %4799 = vst.msk [vmem:[#allocation2 + $0x8] sm:$0xff] %vm4791_vm0, %v4779_v19 }
 0x463   :  { %v4771_v12 = vmax.f32 %v4744_v43, %v4753_v29  ;;  %v4754_v22 = vmax.f32 %v7769_v17, 0.0  ;;  %v12107_v29 = vld [vmem:[#allocation4_spill] sm:$0xff] }
 0x464   :  { %v4531_v34 = vpop.f32.mrb[64].mxu0  ;;  %v7678_v48 = vadd.f32 %v11051_v8, %v12107_v29 }
 0x465   :  { %v4772_v15 = vmax.f32 %v4745_v7, %v4754_v22  ;;  %v7771_v52 = vadd.f32 %v7770_v63, %v4531_v34  ;;  %v4533_v14 = vpop.f32.mrb[65].mxu0  ;;  %v4780_v45 = vmax.f32 %v11172_v11, %v4771_v12  ;;  %v8915_v11 = vld [vmem:[%s12065_s4 + $0x1c0] ss:$16 sps:$4 sm:$0xff]  }
 0x466   :  { %v4534_v24 = vpop.f32.mrb[66].mxu0 }
 0x467   :  { %v4781_v26 = vmax.f32 %v11179_v57, %v4772_v15  ;;  %v7774_v27 = vadd.f32 %v7773_v18, %v4534_v24  ;;  %v7772_v4 = vadd.f32 %v7771_v52, %v12102_v61  ;;  %v4536_v1 = vpop.f32.mrb[67].mxu0  ;;  %4801 = vrot.lane.b32.xlu0 %v4780_v45, %s9243_s14  ;;  %v8917_v57 = vld [vmem:[%s12065_s4 + $0x1c4] ss:$16 sps:$4 sm:$0xff]   ;;  %v4733_v15 = vmax.f32 %v11138_v42, 0.0 }
 0x468   :  { %5823 = vmatprep.subr.bf16.mxu1 %v8917_v57  ;;  %v8927_v57 = vld [vmem:[%s12065_s4 + $0x240] ss:$16 sps:$4 sm:$0xff]  }
 0x469   :  { %v4755_v59 = vmax.f32 %v7772_v4, 0.0  ;;  %v7775_v50 = vadd.f32 %v7774_v27, %v12103_v53  ;;  %4805 = vst.msk [vmem:[#allocation2 + $0x10] sm:$0xff] %vm4791_vm0, %v4781_v26  ;;  %5824 = vmatpush1.bf16.msra.mxu1 %v8915_v11  ;;  %v8921_v4 = vld [vmem:[%s12065_s4 + $0x200] ss:$16 sps:$4 sm:$0xff]   ;;  %v8929_v11 = vld [vmem:[%s12065_s4 + $0x244] ss:$16 sps:$4 sm:$0xff]  }
 0x46b   :  { %v4773_v25 = vmax.f32 %v4746_v40, %v4755_v59  ;;  %v4756_v62 = vmax.f32 %v7775_v50, 0.0  ;;  %v8926_v59 = vld [vmem:[%s12065_s4 + $0x224] ss:$16 sps:$4 sm:$0xff]   ;;  %v8924_v50 = vld [vmem:[%s12065_s4 + $0x220] ss:$16 sps:$4 sm:$0xff]  }
 0x46c   :  { %v4539_v23 = vpop.f32.mrb[68].mxu0 }
 0x46d   :  { %v4774_v54 = vmax.f32 %v4747_v5, %v4756_v62  ;;  %v7777_v9 = vadd.f32 %v7776_v33, %v4539_v23  ;;  %v4541_v36 = vpop.f32.mrb[69].mxu0  ;;  %v4782_v38 = vmax.f32 %v11196_v6, %v4773_v25  ;;  %v8920_v6 = vld [vmem:[%s12065_s4 + $0x1e4] ss:$16 sps:$4 sm:$0xff]   ;;  %v8930_v33 = vld [vmem:[%s12065_s4 + $0x260] ss:$16 sps:$4 sm:$0xff]  }
 0x46e   :  { %v4542_v44 = vpop.f32.mrb[70].mxu0  ;;  %5825 = vmatprep.subr.bf16.mxu1 %v8920_v6  ;;  %v8935_v5 = vld [vmem:[%s12065_s4 + $0x284] ss:$16 sps:$4 sm:$0xff]   ;;  %v8933_v25 = vld [vmem:[%s12065_s4 + $0x280] ss:$16 sps:$4 sm:$0xff]  }
 0x46f   :  { %v4783_v10 = vmax.f32 %v11203_v46, %v4774_v54  ;;  %v7780_v39 = vadd.f32 %v7779_v32, %v4542_v44  ;;  %v7778_v35 = vadd.f32 %v7777_v9, %v11060_v41  ;;  %v4544_v51 = vpop.f32.mrb[71].mxu0  ;;  %v12106_v46 = vld [vmem:[#allocation3_spill] sm:$0xff]  ;;  %v4749_v41 = vmax.f32 %v11255_v2, 0.0  ;;  %5826 = vmatpush1.bf16.msra.mxu1 %v8918_v56  ;;  %v8938_v62 = vld [vmem:[%s12065_s4 + $0x2a4] ss:$16 sps:$4 sm:$0xff]  }
 0x470   :  { %v7676_v58 = vadd.f32 %v11051_v8, %v12106_v46  ;;  %v4732_v2 = vmax.f32 %v11119_v47, 0.0  ;;  %v8936_v23 = vld [vmem:[%s12065_s4 + $0x2a0] ss:$16 sps:$4 sm:$0xff]   ;;  %v8944_v54 = vld [vmem:[%s12065_s4 + $0x2e4] ss:$16 sps:$4 sm:$0xff]  }
 0x471   :  { %v4757_v19 = vmax.f32 %v7778_v35, 0.0  ;;  %v7781_v55 = vadd.f32 %v7780_v39, %v11065_v60  ;;  %4811 = vst.msk [vmem:[#allocation2 + $0x18] sm:$0xff] %vm4791_vm0, %v4783_v10  ;;  %v8923_v60 = vld [vmem:[%s12065_s4 + $0x204] ss:$16 sps:$4 sm:$0xff]   ;;  %v8939_v32 = vld [vmem:[%s12065_s4 + $0x2c0] ss:$16 sps:$4 sm:$0xff]  }
 0x472   :  { %5836 = vmatprep.subr.bf16.mxu1 %v8923_v60  ;;  %v8942_v9 = vld [vmem:[%s12065_s4 + $0x2e0] ss:$16 sps:$4 sm:$0xff]   ;;  %v8947_v36 = vld [vmem:[%s12065_s4 + $0x304] ss:$16 sps:$4 sm:$0xff]  }
 0x473   :  { %v4775_v3 = vmax.f32 %v4748_v0, %v4757_v19  ;;  %v4758_v31 = vmax.f32 %v7781_v55, 0.0  ;;  %v8950_v44 = vld [vmem:[%s12065_s4 + $0x324] ss:$16 sps:$4 sm:$0xff]   ;;  %v8948_v10 = vld [vmem:[%s12065_s4 + $0x320] ss:$16 sps:$4 sm:$0xff]  }
 0x474   :  { %v4580_v43 = vpop.f32.mrb[0].mxu0  ;;  %v8953_v39 = vld [vmem:[%s12065_s4 + $0x344] ss:$16 sps:$4 sm:$0xff]   ;;  %v8951_v35 = vld [vmem:[%s12065_s4 + $0x340] ss:$16 sps:$4 sm:$0xff]  }
 0x475   :  { %v4776_v17 = vmax.f32 %v4749_v41, %v4758_v31  ;;  %v7677_v21 = vadd.f32 %v7676_v58, %v4580_v43  ;;  %v4582_v63 = vpop.f32.mrb[1].mxu0  ;;  %v4784_v7 = vmax.f32 %v11214_v20, %v4775_v3  ;;  %v8956_v51 = vld [vmem:[%s12065_s4 + $0x364] ss:$16 sps:$4 sm:$0xff]   ;;  %v8954_v0 = vld [vmem:[%s12065_s4 + $0x360] ss:$16 sps:$4 sm:$0xff]  }
 0x476   :  { %v4583_v12 = vpop.f32.mrb[2].mxu0  ;;  %v8959_v19 = vld [vmem:[%s12065_s4 + $0x384] ss:$16 sps:$4 sm:$0xff]   ;;  %v8957_v55 = vld [vmem:[%s12065_s4 + $0x380] ss:$16 sps:$4 sm:$0xff]  }
 0x477   :  { %v4785_v22 = vmax.f32 %v11218_v30, %v4776_v17  ;;  %v4723_v34 = vmax.f32 %v7677_v21, 0.0  ;;  %v7679_v49 = vadd.f32 %v7678_v48, %v4583_v12  ;;  %v4585_v18 = vpop.f32.mrb[3].mxu0  ;;  %4813 = vrot.lane.b32.xlu1 %v4784_v7, %s9243_s14  ;;  %v4818_v30 = vld [vmem:[%s12066_s1] sm:$0xff]  ;;  %v12108_v21 = vmov 0  }
 0x478   :  { %v8962_v56 = vld [vmem:[%s12065_s4 + $0x3a4] ss:$16 sps:$4 sm:$0xff]   ;;  %v8960_v6 = vld [vmem:[%s12065_s4 + $0x3a0] ss:$16 sps:$4 sm:$0xff]  }
 0x479   :  { %v4759_v8 = vmax.f32 %v4723_v34, %v4732_v2  ;;  %v4724_v52 = vmax.f32 %v7679_v49, 0.0  ;;  %4817 = vst.msk [vmem:[#allocation2 + $0x20] sm:$0xff] %vm4791_vm0, %v4785_v22  ;;  %v8965_v46 = vld [vmem:[%s12065_s4 + $0x3c4] ss:$16 sps:$4 sm:$0xff]   ;;  %v8963_v58 = vld [vmem:[%s12065_s4 + $0x3c0] ss:$16 sps:$4 sm:$0xff]  }
 0x47a   :  { %v8968_v41 = vld [vmem:[%s12065_s4 + $0x3e4] ss:$16 sps:$4 sm:$0xff]   ;;  %v8966_v3 = vld [vmem:[%s12065_s4 + $0x3e0] ss:$16 sps:$4 sm:$0xff]  }
 0x47b   :  { %v4777_v20 = vmax.f32 %v4759_v8, %v11262_v28  ;;  %v4760_v14 = vmax.f32 %v4724_v52, %v4733_v15  ;;  %4807 = vrot.lane.b32.xlu1 %v4782_v38, %s9243_s14  ;;  %v8945_v38 = vld [vmem:[%s12065_s4 + $0x300] ss:$16 sps:$4 sm:$0xff]   ;;  %v8971_v31 = vld [vmem:[%s12065_s4 + $0x404] ss:$16 sps:$4 sm:$0xff]  }
 0x47c   :  { %v8969_v43 = vld [vmem:[%s12065_s4 + $0x400] ss:$16 sps:$4 sm:$0xff]   ;;  %v8974_v48 = vld [vmem:[%s12065_s4 + $0x424] ss:$16 sps:$4 sm:$0xff]  }
 0x47d   :  { %v4778_v47 = vmax.f32 %v4760_v14, %v11274_v13  ;;  %4792 = vst.msk [vmem:[#allocation2] sm:$0xff] %vm4791_vm0, %v4777_v20  ;;  %v8972_v17 = vld [vmem:[%s12065_s4 + $0x420] ss:$16 sps:$4 sm:$0xff]   ;;  %v8977_v63 = vld [vmem:[%s12065_s4 + $0x444] ss:$16 sps:$4 sm:$0xff]  }
 0x47e   :  { %v8975_v7 = vld [vmem:[%s12065_s4 + $0x440] ss:$16 sps:$4 sm:$0xff]   ;;  %v8980_v12 = vld [vmem:[%s12065_s4 + $0x464] ss:$16 sps:$4 sm:$0xff]  }
 0x47f   :  { %4794 = vrot.lane.b32.xlu0 %v4778_v47, %s9243_s14  ;;  %v8978_v2 = vld [vmem:[%s12065_s4 + $0x460] ss:$16 sps:$4 sm:$0xff]   ;;  %v8983_v22 = vld [vmem:[%s12065_s4 + $0x484] ss:$16 sps:$4 sm:$0xff]   ;;  %v8995_v47 = vld [vmem:[%s12065_s4 + $0xc] ss:$16 sps:$4 sm:$0xff]  }
 0x480   :  { %v8981_v34 = vld [vmem:[%s12065_s4 + $0x480] ss:$16 sps:$4 sm:$0xff]   ;;  %v8986_v49 = vld [vmem:[%s12065_s4 + $0x4a4] ss:$16 sps:$4 sm:$0xff]  }
 0x481   :  { %v8984_v18 = vld [vmem:[%s12065_s4 + $0x4a0] ss:$16 sps:$4 sm:$0xff]   ;;  %v8989_v15 = vld [vmem:[%s12065_s4 + $0x4c4] ss:$16 sps:$4 sm:$0xff]  }
 0x482   :  { %v8987_v8 = vld [vmem:[%s12065_s4 + $0x4c0] ss:$16 sps:$4 sm:$0xff]   ;;  %v8992_v52 = vld [vmem:[%s12065_s4 + $0x4e4] ss:$16 sps:$4 sm:$0xff]  }
 0x483   :  { %4820 = vrot.lane.b32.xlu0 %v4818_v30, %s9243_s14  ;;  %v8990_v20 = vld [vmem:[%s12065_s4 + $0x4e0] ss:$16 sps:$4 sm:$0xff]  }
 0x4d9   :  { %v4802_v42 = vpop.permute.xlu0 %4801 }
 0x4da   :  { %4804 = vst.msk [vmem:[#allocation2 + $0x8] sm:$0xff] %vm4797_vm1, %v4802_v42  ;;  %v8993_v42 = vld [vmem:[%s12065_s4 + $0x8] ss:$16 sps:$4 sm:$0xff]  }
 0x4e1   :  { %v4826_v45 = vld [vmem:[#allocation2 + $0x8] sm:$0xff] }
 0x4e2   :  { %v11347_v28 = vpack.c.bf16 %v4826_v45, %v4826_v45  ;;  %v8998_v45 = vld [vmem:[%s12065_s4 + $0x2c] ss:$16 sps:$4 sm:$0xff]  }
 0x4e4   :  { %5827 = vmatprep.mubr.bf16.mxu1 %v11347_v28 }
 0x4e9   :  { %v4814_v24 = vpop.permute.xlu1 %4813 }
 0x4ea   :  { %4816 = vst.msk [vmem:[#allocation2 + $0x18] sm:$0xff] %vm4797_vm1, %v4814_v24  ;;  %v8996_v24 = vld [vmem:[%s12065_s4 + $0x28] ss:$16 sps:$4 sm:$0xff]  }
 0x4ed   :  { %v4808_v13 = vpop.permute.xlu1 %4807 }
 0x4ee   :  { %4810 = vst.msk [vmem:[#allocation2 + $0x10] sm:$0xff] %vm4797_vm1, %v4808_v13  ;;  %v9001_v13 = vld [vmem:[%s12065_s4 + $0x4c] ss:$16 sps:$4 sm:$0xff]  }
 0x4f1   :  { %v4795_v26 = vpop.permute.xlu0 %4794  ;;  %v4828_v61 = vld [vmem:[#allocation2 + $0x18] sm:$0xff] }
 0x4f2   :  { %4798 = vst.msk [vmem:[#allocation2] sm:$0xff] %vm4797_vm1, %v4795_v26  ;;  %v11358_v53 = vpack.c.bf16 %v4828_v61, %v4828_v61  ;;  %v8999_v26 = vld [vmem:[%s12065_s4 + $0x48] ss:$16 sps:$4 sm:$0xff]   ;;  %v9007_v61 = vld [vmem:[%s12065_s4 + $0x8c] ss:$16 sps:$4 sm:$0xff]  }
 0x4f5   :  { %v4821_v27 = vpop.permute.xlu0 %4820  ;;  %v4827_v60 = vld [vmem:[#allocation2 + $0x10] sm:$0xff] }
 0x4f6   :  { %4824 = vst.msk [vmem:[#allocation2 + $0x20] sm:$0xff] %vm4823_vm2, %v4821_v27  ;;  %v11455_v29 = vpack.c.bf16 %v4827_v60, %v4827_v60  ;;  %v9004_v27 = vld [vmem:[%s12065_s4 + $0x6c] ss:$16 sps:$4 sm:$0xff]  }
 0x4f7   :  { %v9061_v60 = vld [vmem:[%s12065_s4 + $0x2cc] ss:$16 sps:$4 sm:$0xff]  }
 0x4f9   :  { %v4825_v1 = vld [vmem:[#allocation2] sm:$0xff] }
 0x4fa   :  { %v11353_v40 = vpack.c.bf16 %v4825_v1, %v4825_v1  ;;  %v9010_v1 = vld [vmem:[%s12065_s4 + $0xac] ss:$16 sps:$4 sm:$0xff]  }
 0x4fc   :  { %5828 = vmatmul.mubr.bf16.vlgmr.msra.gmra.mrb[140].mxu1 %v11353_v40 }
 0x4fd   :  { %5837 = vmatpush1.bf16.msra.mxu1 %v8921_v4  ;;  %5868 = vmatprep.mubr.bf16.mxu1 %v11358_v53  ;;  %v4829_v14 = vld [vmem:[#allocation2 + $0x20] sm:$0xff]  ;;  %v9005_v4 = vld [vmem:[%s12065_s4 + $0x88] ss:$16 sps:$4 sm:$0xff]  }
 0x4fe   :  { %5838 = vmatprep.subr.bf16.mxu1 %v8926_v59  ;;  %v11504_v30 = vpack.c.bf16 %v4829_v14, %v4829_v14  ;;  %v9008_v59 = vld [vmem:[%s12065_s4 + $0xa8] ss:$16 sps:$4 sm:$0xff]   ;;  %v9085_v14 = vld [vmem:[%s12065_s4 + $0x3cc] ss:$16 sps:$4 sm:$0xff]  }
 0x501   :  { %5839 = vmatpush1.bf16.msra.mxu1 %v8924_v50  ;;  %v9013_v50 = vld [vmem:[%s12065_s4 + $0xcc] ss:$16 sps:$4 sm:$0xff]  }
 0x502   :  { %5840 = vmatprep.subr.bf16.mxu1 %v8929_v11  ;;  %v9011_v11 = vld [vmem:[%s12065_s4 + $0xc8] ss:$16 sps:$4 sm:$0xff]  }
 0x505   :  { %5841 = vmatpush1.bf16.msra.mxu1 %v8927_v57  ;;  %v9016_v57 = vld [vmem:[%s12065_s4 + $0xec] ss:$16 sps:$4 sm:$0xff]  }
 0x506   :  { %5842 = vmatprep.subr.bf16.mxu1 %v8932_v16  ;;  %v9014_v16 = vld [vmem:[%s12065_s4 + $0xe8] ss:$16 sps:$4 sm:$0xff]  }
 0x509   :  { %5843 = vmatpush1.bf16.msra.mxu1 %v8930_v33  ;;  %v9019_v33 = vld [vmem:[%s12065_s4 + $0x10c] ss:$16 sps:$4 sm:$0xff]  }
 0x50a   :  { %5844 = vmatprep.subr.bf16.mxu1 %v8935_v5  ;;  %v9017_v5 = vld [vmem:[%s12065_s4 + $0x108] ss:$16 sps:$4 sm:$0xff]  }
 0x50d   :  { %5845 = vmatpush1.bf16.msra.mxu1 %v8933_v25  ;;  %v9022_v25 = vld [vmem:[%s12065_s4 + $0x12c] ss:$16 sps:$4 sm:$0xff]  }
 0x50e   :  { %5846 = vmatprep.subr.bf16.mxu1 %v8938_v62  ;;  %v9020_v62 = vld [vmem:[%s12065_s4 + $0x128] ss:$16 sps:$4 sm:$0xff]  }
 0x511   :  { %5847 = vmatpush1.bf16.msra.mxu1 %v8936_v23  ;;  %v9025_v23 = vld [vmem:[%s12065_s4 + $0x14c] ss:$16 sps:$4 sm:$0xff]  }
 0x512   :  { %5848 = vmatprep.subr.bf16.mxu1 %v8941_v37  ;;  %v9023_v37 = vld [vmem:[%s12065_s4 + $0x148] ss:$16 sps:$4 sm:$0xff]  }
 0x515   :  { %5849 = vmatpush1.bf16.msra.mxu1 %v8939_v32  ;;  %v9028_v32 = vld [vmem:[%s12065_s4 + $0x16c] ss:$16 sps:$4 sm:$0xff]  }
 0x516   :  { %5850 = vmatprep.subr.bf16.mxu1 %v8944_v54  ;;  %v9026_v54 = vld [vmem:[%s12065_s4 + $0x168] ss:$16 sps:$4 sm:$0xff]  }
 0x519   :  { %5851 = vmatpush1.bf16.msra.mxu1 %v8942_v9  ;;  %v9031_v9 = vld [vmem:[%s12065_s4 + $0x18c] ss:$16 sps:$4 sm:$0xff]  }
 0x51a   :  { %5852 = vmatprep.subr.bf16.mxu1 %v8947_v36  ;;  %v9029_v36 = vld [vmem:[%s12065_s4 + $0x188] ss:$16 sps:$4 sm:$0xff]  }
 0x51d   :  { %5853 = vmatpush1.bf16.msra.mxu1 %v8945_v38  ;;  %v9034_v38 = vld [vmem:[%s12065_s4 + $0x1ac] ss:$16 sps:$4 sm:$0xff]  }
 0x51e   :  { %5854 = vmatprep.subr.bf16.mxu1 %v8950_v44  ;;  %v9032_v44 = vld [vmem:[%s12065_s4 + $0x1a8] ss:$16 sps:$4 sm:$0xff]  }
 0x521   :  { %5855 = vmatpush1.bf16.msra.mxu1 %v8948_v10  ;;  %v9037_v10 = vld [vmem:[%s12065_s4 + $0x1cc] ss:$16 sps:$4 sm:$0xff]  }
 0x522   :  { %5856 = vmatprep.subr.bf16.mxu1 %v8953_v39  ;;  %v9035_v39 = vld [vmem:[%s12065_s4 + $0x1c8] ss:$16 sps:$4 sm:$0xff]  }
 0x525   :  { %5857 = vmatpush1.bf16.msra.mxu1 %v8951_v35  ;;  %v9040_v35 = vld [vmem:[%s12065_s4 + $0x1ec] ss:$16 sps:$4 sm:$0xff]  }
 0x526   :  { %5858 = vmatprep.subr.bf16.mxu1 %v8956_v51  ;;  %v9038_v51 = vld [vmem:[%s12065_s4 + $0x1e8] ss:$16 sps:$4 sm:$0xff]  }
 0x529   :  { %5859 = vmatpush1.bf16.msra.mxu1 %v8954_v0  ;;  %v9043_v0 = vld [vmem:[%s12065_s4 + $0x20c] ss:$16 sps:$4 sm:$0xff]  }
 0x52a   :  { %5860 = vmatprep.subr.bf16.mxu1 %v8959_v19  ;;  %v9041_v19 = vld [vmem:[%s12065_s4 + $0x208] ss:$16 sps:$4 sm:$0xff]  }
 0x52d   :  { %5861 = vmatpush1.bf16.msra.mxu1 %v8957_v55  ;;  %v9046_v55 = vld [vmem:[%s12065_s4 + $0x22c] ss:$16 sps:$4 sm:$0xff]  }
 0x52e   :  { %5862 = vmatprep.subr.bf16.mxu1 %v8962_v56  ;;  %v9044_v56 = vld [vmem:[%s12065_s4 + $0x228] ss:$16 sps:$4 sm:$0xff]  }
 0x531   :  { %5863 = vmatpush1.bf16.msra.mxu1 %v8960_v6  ;;  %v9049_v6 = vld [vmem:[%s12065_s4 + $0x24c] ss:$16 sps:$4 sm:$0xff]  }
 0x532   :  { %5864 = vmatprep.subr.bf16.mxu1 %v8965_v46  ;;  %v9047_v46 = vld [vmem:[%s12065_s4 + $0x248] ss:$16 sps:$4 sm:$0xff]  }
 0x535   :  { %5865 = vmatpush1.bf16.msra.mxu1 %v8963_v58  ;;  %v9055_v58 = vld [vmem:[%s12065_s4 + $0x28c] ss:$16 sps:$4 sm:$0xff]  }
 0x536   :  { %5866 = vmatprep.subr.bf16.mxu1 %v8968_v41  ;;  %v9053_v41 = vld [vmem:[%s12065_s4 + $0x288] ss:$16 sps:$4 sm:$0xff]  }
 0x539   :  { %5867 = vmatpush1.bf16.msra.mxu1 %v8966_v3  ;;  %v9058_v3 = vld [vmem:[%s12065_s4 + $0x2ac] ss:$16 sps:$4 sm:$0xff]  }
 0x53a   :  { %5877 = vmatprep.subr.bf16.mxu1 %v8971_v31  ;;  %v9056_v31 = vld [vmem:[%s12065_s4 + $0x2a8] ss:$16 sps:$4 sm:$0xff]  }
 0x53c   :  { %5869 = vmatmul.mubr.bf16.vlgmr.msra.gmra.mrb[140].mxu1 %v11455_v29 }
 0x53d   :  { %5878 = vmatpush1.bf16.msra.mxu1 %v8969_v43  ;;  %5909 = vmatprep.mubr.bf16.mxu1 %v12108_v21  ;;  %v9059_v43 = vld [vmem:[%s12065_s4 + $0x2c8] ss:$16 sps:$4 sm:$0xff]  }
 0x53e   :  { %5879 = vmatprep.subr.bf16.mxu1 %v8974_v48  ;;  %v9064_v48 = vld [vmem:[%s12065_s4 + $0x2ec] ss:$16 sps:$4 sm:$0xff]  }
 0x541   :  { %5880 = vmatpush1.bf16.msra.mxu1 %v8972_v17  ;;  %v9062_v17 = vld [vmem:[%s12065_s4 + $0x2e8] ss:$16 sps:$4 sm:$0xff]  }
 0x542   :  { %5881 = vmatprep.subr.bf16.mxu1 %v8977_v63  ;;  %v9067_v63 = vld [vmem:[%s12065_s4 + $0x30c] ss:$16 sps:$4 sm:$0xff]  }
 0x545   :  { %5882 = vmatpush1.bf16.msra.mxu1 %v8975_v7  ;;  %v9065_v7 = vld [vmem:[%s12065_s4 + $0x308] ss:$16 sps:$4 sm:$0xff]  }
 0x546   :  { %5883 = vmatprep.subr.bf16.mxu1 %v8980_v12  ;;  %v9070_v12 = vld [vmem:[%s12065_s4 + $0x32c] ss:$16 sps:$4 sm:$0xff]  }
 0x549   :  { %5884 = vmatpush1.bf16.msra.mxu1 %v8978_v2  ;;  %v9068_v2 = vld [vmem:[%s12065_s4 + $0x328] ss:$16 sps:$4 sm:$0xff]  }
 0x54a   :  { %5885 = vmatprep.subr.bf16.mxu1 %v8983_v22  ;;  %v9073_v22 = vld [vmem:[%s12065_s4 + $0x34c] ss:$16 sps:$4 sm:$0xff]  }
 0x54d   :  { %5886 = vmatpush1.bf16.msra.mxu1 %v8981_v34  ;;  %v9071_v34 = vld [vmem:[%s12065_s4 + $0x348] ss:$16 sps:$4 sm:$0xff]  }
 0x54e   :  { %5887 = vmatprep.subr.bf16.mxu1 %v8986_v49  ;;  %v9076_v49 = vld [vmem:[%s12065_s4 + $0x36c] ss:$16 sps:$4 sm:$0xff]  }
 0x551   :  { %5888 = vmatpush1.bf16.msra.mxu1 %v8984_v18  ;;  %v9074_v18 = vld [vmem:[%s12065_s4 + $0x368] ss:$16 sps:$4 sm:$0xff]  }
 0x552   :  { %5889 = vmatprep.subr.bf16.mxu1 %v8989_v15  ;;  %v9079_v15 = vld [vmem:[%s12065_s4 + $0x38c] ss:$16 sps:$4 sm:$0xff]  }
 0x555   :  { %5890 = vmatpush1.bf16.msra.mxu1 %v8987_v8  ;;  %v9077_v8 = vld [vmem:[%s12065_s4 + $0x388] ss:$16 sps:$4 sm:$0xff]  }
 0x556   :  { %5891 = vmatprep.subr.bf16.mxu1 %v8992_v52  ;;  %v9082_v52 = vld [vmem:[%s12065_s4 + $0x3ac] ss:$16 sps:$4 sm:$0xff]  }
 0x559   :  { %5892 = vmatpush1.bf16.msra.mxu1 %v8990_v20  ;;  %v9080_v20 = vld [vmem:[%s12065_s4 + $0x3a8] ss:$16 sps:$4 sm:$0xff]  }
 0x55a   :  { %5918 = vmatprep.subr.bf16.mxu1 %v8995_v47  ;;  %v9083_v47 = vld [vmem:[%s12065_s4 + $0x3c8] ss:$16 sps:$4 sm:$0xff]  }
 0x55c   :  { %5910 = vmatmul.mubr.bf16.vlgmr.msra.gmra.mrb[140].mxu1 %v11504_v30 }
 0x55d   :  { %5919 = vmatpush1.bf16.msra.mxu1 %v8993_v42  ;;  %5950 = vmatprep.mubr.bf16.mxu1 %v11347_v28  ;;  %v9002_v28 = vld [vmem:[%s12065_s4 + $0x68] ss:$16 sps:$4 sm:$0xff]   ;;  %v9088_v42 = vld [vmem:[%s12065_s4 + $0x3ec] ss:$16 sps:$4 sm:$0xff]  }
 0x55e   :  { %5920 = vmatprep.subr.bf16.mxu1 %v8998_v45  ;;  %v9086_v45 = vld [vmem:[%s12065_s4 + $0x3e8] ss:$16 sps:$4 sm:$0xff]  }
 0x561   :  { %5921 = vmatpush1.bf16.msra.mxu1 %v8996_v24  ;;  %v9091_v24 = vld [vmem:[%s12065_s4 + $0x40c] ss:$16 sps:$4 sm:$0xff]  }
 0x562   :  { %5922 = vmatprep.subr.bf16.mxu1 %v9001_v13  ;;  %v9089_v13 = vld [vmem:[%s12065_s4 + $0x408] ss:$16 sps:$4 sm:$0xff]  }
 0x565   :  { %5923 = vmatpush1.bf16.msra.mxu1 %v8999_v26  ;;  %v9094_v26 = vld [vmem:[%s12065_s4 + $0x42c] ss:$16 sps:$4 sm:$0xff]  }
 0x566   :  { %5924 = vmatprep.subr.bf16.mxu1 %v9004_v27  ;;  %v9092_v27 = vld [vmem:[%s12065_s4 + $0x428] ss:$16 sps:$4 sm:$0xff]  }
 0x569   :  { %5925 = vmatpush1.bf16.msra.mxu1 %v9002_v28  ;;  %v9097_v28 = vld [vmem:[%s12065_s4 + $0x44c] ss:$16 sps:$4 sm:$0xff]  }
 0x56a   :  { %5926 = vmatprep.subr.bf16.mxu1 %v9007_v61  ;;  %v9095_v61 = vld [vmem:[%s12065_s4 + $0x448] ss:$16 sps:$4 sm:$0xff]  }
 0x56d   :  { %5927 = vmatpush1.bf16.msra.mxu1 %v9005_v4  ;;  %v9103_v4 = vld [vmem:[%s12065_s4 + $0x48c] ss:$16 sps:$4 sm:$0xff]  }
 0x56e   :  { %5928 = vmatprep.subr.bf16.mxu1 %v9010_v1  ;;  %v9101_v1 = vld [vmem:[%s12065_s4 + $0x488] ss:$16 sps:$4 sm:$0xff]  }
 0x571   :  { %5929 = vmatpush1.bf16.msra.mxu1 %v9008_v59  ;;  %v9106_v59 = vld [vmem:[%s12065_s4 + $0x4ac] ss:$16 sps:$4 sm:$0xff]  }
 0x572   :  { %5930 = vmatprep.subr.bf16.mxu1 %v9013_v50  ;;  %v9104_v50 = vld [vmem:[%s12065_s4 + $0x4a8] ss:$16 sps:$4 sm:$0xff]  }
 0x575   :  { %5931 = vmatpush1.bf16.msra.mxu1 %v9011_v11  ;;  %v9109_v11 = vld [vmem:[%s12065_s4 + $0x4cc] ss:$16 sps:$4 sm:$0xff]  }
 0x576   :  { %5932 = vmatprep.subr.bf16.mxu1 %v9016_v57  ;;  %v9107_v57 = vld [vmem:[%s12065_s4 + $0x4c8] ss:$16 sps:$4 sm:$0xff]  }
 0x579   :  { %5933 = vmatpush1.bf16.msra.mxu1 %v9014_v16  ;;  %v9112_v16 = vld [vmem:[%s12065_s4 + $0x4ec] ss:$16 sps:$4 sm:$0xff]  }
 0x57a   :  { %5934 = vmatprep.subr.bf16.mxu1 %v9019_v33  ;;  %v9110_v33 = vld [vmem:[%s12065_s4 + $0x4e8] ss:$16 sps:$4 sm:$0xff]  }
 0x57d   :  { %5935 = vmatpush1.bf16.msra.mxu1 %v9017_v5  ;;  %v9115_v5 = vld [vmem:[%s12067_s5 + $0x4] ss:$12 sps:$4 sm:$0xff]  }
 0x57e   :  { %5936 = vmatprep.subr.bf16.mxu1 %v9022_v25  ;;  %v9113_v25 = vld [vmem:[%s12067_s5] ss:$12 sps:$4 sm:$0xff]  }
 0x581   :  { %5937 = vmatpush1.bf16.msra.mxu1 %v9020_v62  ;;  %v9118_v62 = vld [vmem:[%s12067_s5 + $0x1c] ss:$12 sps:$4 sm:$0xff]  }
 0x582   :  { %5938 = vmatprep.subr.bf16.mxu1 %v9025_v23  ;;  %v9116_v23 = vld [vmem:[%s12067_s5 + $0x18] ss:$12 sps:$4 sm:$0xff]  }
 0x585   :  { %5939 = vmatpush1.bf16.msra.mxu1 %v9023_v37  ;;  %v9121_v37 = vld [vmem:[%s12067_s5 + $0x34] ss:$12 sps:$4 sm:$0xff]  }
 0x586   :  { %5940 = vmatprep.subr.bf16.mxu1 %v9028_v32  ;;  %v9119_v32 = vld [vmem:[%s12067_s5 + $0x30] ss:$12 sps:$4 sm:$0xff]  }
 0x589   :  { %5941 = vmatpush1.bf16.msra.mxu1 %v9026_v54  ;;  %v9122_v54 = vld [vmem:[%s12067_s5 + $0x48] ss:$12 sps:$4 sm:$0xff]  }
 0x58a   :  { %5942 = vmatprep.subr.bf16.mxu1 %v9031_v9  ;;  %v9127_v9 = vld [vmem:[%s12067_s5 + $0x64] ss:$12 sps:$4 sm:$0xff]  }
 0x58d   :  { %5943 = vmatpush1.bf16.msra.mxu1 %v9029_v36  ;;  %v9125_v36 = vld [vmem:[%s12067_s5 + $0x60] ss:$12 sps:$4 sm:$0xff]  }
 0x58e   :  { %5944 = vmatprep.subr.bf16.mxu1 %v9034_v38  ;;  %v9130_v38 = vld [vmem:[%s12067_s5 + $0x7c] ss:$12 sps:$4 sm:$0xff]  }
 0x591   :  { %5945 = vmatpush1.bf16.msra.mxu1 %v9032_v44  ;;  %v9128_v44 = vld [vmem:[%s12067_s5 + $0x78] ss:$12 sps:$4 sm:$0xff]  }
 0x592   :  { %5946 = vmatprep.subr.bf16.mxu1 %v9037_v10  ;;  %v9133_v10 = vld [vmem:[%s12067_s5 + $0x94] ss:$12 sps:$4 sm:$0xff]  }
 0x595   :  { %5947 = vmatpush1.bf16.msra.mxu1 %v9035_v39  ;;  %v9131_v39 = vld [vmem:[%s12067_s5 + $0x90] ss:$12 sps:$4 sm:$0xff]  }
 0x596   :  { %5948 = vmatprep.subr.bf16.mxu1 %v9040_v35  ;;  %v9136_v35 = vld [vmem:[%s12067_s5 + $0xac] ss:$12 sps:$4 sm:$0xff]  }
 0x599   :  { %5949 = vmatpush1.bf16.msra.mxu1 %v9038_v51  ;;  %v9134_v51 = vld [vmem:[%s12067_s5 + $0xa8] ss:$12 sps:$4 sm:$0xff]  }
 0x59a   :  { %5959 = vmatprep.subr.bf16.mxu1 %v9043_v0  ;;  %v9139_v0 = vld [vmem:[%s12067_s5 + $0xc4] ss:$12 sps:$4 sm:$0xff]  }
 0x59c   :  { %5951 = vmatmul.mubr.bf16.vlgmr.msra.gmra.mrb[144].mxu1 %v11353_v40  ;;  %v9052_v40 = vld [vmem:[%s12065_s4 + $0x26c] ss:$16 sps:$4 sm:$0xff]  }
 0x59d   :  { %5960 = vmatpush1.bf16.msra.mxu1 %v9041_v19  ;;  %5991 = vmatprep.mubr.bf16.mxu1 %v11358_v53  ;;  %v9050_v53 = vld [vmem:[%s12065_s4 + $0x268] ss:$16 sps:$4 sm:$0xff]   ;;  %v9137_v19 = vld [vmem:[%s12067_s5 + $0xc0] ss:$12 sps:$4 sm:$0xff]  }
 0x59e   :  { %5961 = vmatprep.subr.bf16.mxu1 %v9046_v55  ;;  %v9142_v55 = vld [vmem:[%s12067_s5 + $0xdc] ss:$12 sps:$4 sm:$0xff]  }
 0x5a1   :  { %5962 = vmatpush1.bf16.msra.mxu1 %v9044_v56  ;;  %v9140_v56 = vld [vmem:[%s12067_s5 + $0xd8] ss:$12 sps:$4 sm:$0xff]  }
 0x5a2   :  { %5963 = vmatprep.subr.bf16.mxu1 %v9049_v6  ;;  %v9145_v6 = vld [vmem:[%s12067_s5 + $0xf4] ss:$12 sps:$4 sm:$0xff]  }
 0x5a5   :  { %5964 = vmatpush1.bf16.msra.mxu1 %v9047_v46  ;;  %v9143_v46 = vld [vmem:[%s12067_s5 + $0xf0] ss:$12 sps:$4 sm:$0xff]  }
 0x5a6   :  { %5965 = vmatprep.subr.bf16.mxu1 %v9052_v40  ;;  %v9148_v40 = vld [vmem:[%s12067_s5 + $0x10c] ss:$12 sps:$4 sm:$0xff]  }
 0x5a9   :  { %5966 = vmatpush1.bf16.msra.mxu1 %v9050_v53  ;;  %v9146_v53 = vld [vmem:[%s12067_s5 + $0x108] ss:$12 sps:$4 sm:$0xff]  }
 0x5aa   :  { %5967 = vmatprep.subr.bf16.mxu1 %v9055_v58  ;;  %v9151_v58 = vld [vmem:[%s12067_s5 + $0x124] ss:$12 sps:$4 sm:$0xff]  }
 0x5ad   :  { %5968 = vmatpush1.bf16.msra.mxu1 %v9053_v41  ;;  %v9149_v41 = vld [vmem:[%s12067_s5 + $0x120] ss:$12 sps:$4 sm:$0xff]  }
 0x5ae   :  { %5969 = vmatprep.subr.bf16.mxu1 %v9058_v3  ;;  %v9154_v3 = vld [vmem:[%s12067_s5 + $0x13c] ss:$12 sps:$4 sm:$0xff]  }
 0x5b1   :  { %5970 = vmatpush1.bf16.msra.mxu1 %v9056_v31  ;;  %v9152_v31 = vld [vmem:[%s12067_s5 + $0x138] ss:$12 sps:$4 sm:$0xff]  }
 0x5b2   :  { %5971 = vmatprep.subr.bf16.mxu1 %v9061_v60  ;;  %v9157_v60 = vld [vmem:[%s12067_s5 + $0x154] ss:$12 sps:$4 sm:$0xff]  }
 0x5b5   :  { %5972 = vmatpush1.bf16.msra.mxu1 %v9059_v43 }
 0x5b6   :  { %5973 = vmatprep.subr.bf16.mxu1 %v9064_v48 }
 0x5b9   :  { %5974 = vmatpush1.bf16.msra.mxu1 %v9062_v17 }
 0x5ba   :  { %5975 = vmatprep.subr.bf16.mxu1 %v9067_v63 }
 0x5bd   :  { %5976 = vmatpush1.bf16.msra.mxu1 %v9065_v7  ;;  %v9155_v7 = vld [vmem:[%s12067_s5 + $0x150] ss:$12 sps:$4 sm:$0xff]  }
 0x5be   :  { %5977 = vmatprep.subr.bf16.mxu1 %v9070_v12 }
 0x5c1   :  { %5978 = vmatpush1.bf16.msra.mxu1 %v9068_v2  ;;  %v9160_v2 = vld [vmem:[%s12067_s5 + $0x16c] ss:$12 sps:$4 sm:$0xff]  }
 0x5c2   :  { %5979 = vmatprep.subr.bf16.mxu1 %v9073_v22 }
 0x5c5   :  { %5980 = vmatpush1.bf16.msra.mxu1 %v9071_v34  ;;  %v9158_v34 = vld [vmem:[%s12067_s5 + $0x168] ss:$12 sps:$4 sm:$0xff]  }
 0x5c6   :  { %5981 = vmatprep.subr.bf16.mxu1 %v9076_v49 }
 0x5c9   :  { %5982 = vmatpush1.bf16.msra.mxu1 %v9074_v18  ;;  %v9163_v18 = vld [vmem:[%s12067_s5 + $0x184] ss:$12 sps:$4 sm:$0xff]  }
 0x5ca   :  { %5983 = vmatprep.subr.bf16.mxu1 %v9079_v15  ;;  %v9161_v15 = vld [vmem:[%s12067_s5 + $0x180] ss:$12 sps:$4 sm:$0xff]  }
 0x5cd   :  { %5984 = vmatpush1.bf16.msra.mxu1 %v9077_v8 }
 0x5ce   :  { %5985 = vmatprep.subr.bf16.mxu1 %v9082_v52  ;;  %v9166_v52 = vld [vmem:[%s12067_s5 + $0x19c] ss:$12 sps:$4 sm:$0xff]  }
 0x5d1   :  { %5986 = vmatpush1.bf16.msra.mxu1 %v9080_v20  ;;  %v9164_v20 = vld [vmem:[%s12067_s5 + $0x198] ss:$12 sps:$4 sm:$0xff]  }
 0x5d2   :  { %5987 = vmatprep.subr.bf16.mxu1 %v9085_v14  ;;  %v9169_v14 = vld [vmem:[%s12067_s5 + $0x1b4] ss:$12 sps:$4 sm:$0xff]  }
 0x5d5   :  { %5988 = vmatpush1.bf16.msra.mxu1 %v9083_v47  ;;  %v9167_v47 = vld [vmem:[%s12067_s5 + $0x1b0] ss:$12 sps:$4 sm:$0xff]  }
 0x5d6   :  { %5989 = vmatprep.subr.bf16.mxu1 %v9088_v42  ;;  %v9172_v42 = vld [vmem:[%s12067_s5 + $0x1cc] ss:$12 sps:$4 sm:$0xff]  }
 0x5d9   :  { %5990 = vmatpush1.bf16.msra.mxu1 %v9086_v45  ;;  %v9170_v45 = vld [vmem:[%s12067_s5 + $0x1c8] ss:$12 sps:$4 sm:$0xff]  }
 0x5da   :  { %6000 = vmatprep.subr.bf16.mxu1 %v9091_v24  ;;  %v9175_v24 = vld [vmem:[%s12067_s5 + $0x1e4] ss:$12 sps:$4 sm:$0xff]  }
 0x5dc   :  { %5992 = vmatmul.mubr.bf16.vlgmr.msra.gmra.mrb[144].mxu1 %v11455_v29  ;;  %v9100_v29 = vld [vmem:[%s12065_s4 + $0x46c] ss:$16 sps:$4 sm:$0xff]  }
 0x5dd   :  { %6001 = vmatpush1.bf16.msra.mxu1 %v9089_v13  ;;  %6032 = vmatprep.mubr.bf16.mxu1 %v12108_v21  ;;  %v9098_v21 = vld [vmem:[%s12065_s4 + $0x468] ss:$16 sps:$4 sm:$0xff]   ;;  %v9173_v13 = vld [vmem:[%s12067_s5 + $0x1e0] ss:$12 sps:$4 sm:$0xff]  }
 0x5de   :  { %6002 = vmatprep.subr.bf16.mxu1 %v9094_v26  ;;  %v9178_v26 = vld [vmem:[%s12067_s5 + $0x1fc] ss:$12 sps:$4 sm:$0xff]  }
 0x5e1   :  { %6003 = vmatpush1.bf16.msra.mxu1 %v9092_v27  ;;  %v9176_v27 = vld [vmem:[%s12067_s5 + $0x1f8] ss:$12 sps:$4 sm:$0xff]  }
 0x5e2   :  { %6004 = vmatprep.subr.bf16.mxu1 %v9097_v28  ;;  %v9181_v28 = vld [vmem:[%s12067_s5 + $0x214] ss:$12 sps:$4 sm:$0xff]  }
 0x5e5   :  { %6005 = vmatpush1.bf16.msra.mxu1 %v9095_v61  ;;  %v9179_v61 = vld [vmem:[%s12067_s5 + $0x210] ss:$12 sps:$4 sm:$0xff]  }
 0x5e6   :  { %6006 = vmatprep.subr.bf16.mxu1 %v9100_v29  ;;  %v9184_v29 = vld [vmem:[%s12067_s5 + $0x22c] ss:$12 sps:$4 sm:$0xff]  }
 0x5e9   :  { %6007 = vmatpush1.bf16.msra.mxu1 %v9098_v21  ;;  %v9182_v21 = vld [vmem:[%s12067_s5 + $0x228] ss:$12 sps:$4 sm:$0xff]  }
 0x5ea   :  { %6008 = vmatprep.subr.bf16.mxu1 %v9103_v4  ;;  %v9187_v4 = vld [vmem:[%s12067_s5 + $0x244] ss:$12 sps:$4 sm:$0xff]  }
 0x5ed   :  { %6009 = vmatpush1.bf16.msra.mxu1 %v9101_v1  ;;  %v9185_v1 = vld [vmem:[%s12067_s5 + $0x240] ss:$12 sps:$4 sm:$0xff]  }
 0x5ee   :  { %6010 = vmatprep.subr.bf16.mxu1 %v9106_v59  ;;  %v9190_v59 = vld [vmem:[%s12067_s5 + $0x25c] ss:$12 sps:$4 sm:$0xff]  }
 0x5f1   :  { %6011 = vmatpush1.bf16.msra.mxu1 %v9104_v50  ;;  %v9188_v50 = vld [vmem:[%s12067_s5 + $0x258] ss:$12 sps:$4 sm:$0xff]  }
 0x5f2   :  { %6012 = vmatprep.subr.bf16.mxu1 %v9109_v11  ;;  %v9193_v11 = vld [vmem:[%s12067_s5 + $0x274] ss:$12 sps:$4 sm:$0xff]  }
 0x5f5   :  { %6013 = vmatpush1.bf16.msra.mxu1 %v9107_v57  ;;  %v9191_v57 = vld [vmem:[%s12067_s5 + $0x270] ss:$12 sps:$4 sm:$0xff]  }
 0x5f6   :  { %6014 = vmatprep.subr.bf16.mxu1 %v9112_v16  ;;  %v9196_v16 = vld [vmem:[%s12067_s5 + $0x28c] ss:$12 sps:$4 sm:$0xff]  }
 0x5f9   :  { %6015 = vmatpush1.bf16.msra.mxu1 %v9110_v33  ;;  %v9194_v33 = vld [vmem:[%s12067_s5 + $0x288] ss:$12 sps:$4 sm:$0xff]  }
 0x5fa   :  { %6706 = vmatprep.subr.bf16.mxu1 %v9115_v5  ;;  %v9199_v5 = vld [vmem:[%s12067_s5 + $0x2a4] ss:$12 sps:$4 sm:$0xff]  }
 0x5fc   :  { %6033 = vmatmul.mubr.bf16.vlgmr.msra.gmra.mrb[144].mxu1 %v11504_v30  ;;  %v9124_v30 = vld [vmem:[%s12067_s5 + $0x4c] ss:$12 sps:$4 sm:$0xff]  }
 0x5fd   :  { %6707 = vmatpush1.bf16.msra.mxu1 %v9113_v25  ;;  %v9197_v25 = vld [vmem:[%s12067_s5 + $0x2a0] ss:$12 sps:$4 sm:$0xff]  }
 0x5fe   :  { %6708 = vmatprep.subr.bf16.mxu1 %v9118_v62  ;;  %v9202_v62 = vld [vmem:[%s12067_s5 + $0x2bc] ss:$12 sps:$4 sm:$0xff]  }
 0x601   :  { %6709 = vmatpush1.bf16.msra.mxu1 %v9116_v23  ;;  %v9200_v23 = vld [vmem:[%s12067_s5 + $0x2b8] ss:$12 sps:$4 sm:$0xff]  }
 0x602   :  { %6710 = vmatprep.subr.bf16.mxu1 %v9121_v37  ;;  %v9205_v37 = vld [vmem:[%s12067_s5 + $0x2d4] ss:$12 sps:$4 sm:$0xff]  }
 0x605   :  { %6711 = vmatpush1.bf16.msra.mxu1 %v9119_v32  ;;  %v9203_v32 = vld [vmem:[%s12067_s5 + $0x2d0] ss:$12 sps:$4 sm:$0xff]  }
 0x606   :  { %6712 = vmatprep.subr.bf16.mxu1 %v9124_v30  ;;  %v9208_v30 = vld [vmem:[%s12067_s5 + $0x2ec] ss:$12 sps:$4 sm:$0xff]  }
 0x609   :  { %6713 = vmatpush1.bf16.msra.mxu1 %v9122_v54  ;;  %v9206_v54 = vld [vmem:[%s12067_s5 + $0x2e8] ss:$12 sps:$4 sm:$0xff]  }
 0x60a   :  { %6714 = vmatprep.subr.bf16.mxu1 %v9127_v9  ;;  %v9209_v9 = vld [vmem:[%s12067_s5 + $0xc8] ss:$12 sps:$4 sm:$0xff]  }
 0x60d   :  { %6715 = vmatpush1.bf16.msra.mxu1 %v9125_v36 }
 0x60e   :  { %6716 = vmatprep.subr.bf16.mxu1 %v9130_v38 }
 0x611   :  { %6717 = vmatpush1.bf16.msra.mxu1 %v9128_v44 }
 0x612   :  { %6718 = vmatprep.subr.bf16.mxu1 %v9133_v10 }
 0x615   :  { %6719 = vmatpush1.bf16.msra.mxu1 %v9131_v39 }
 0x616   :  { %6720 = vmatprep.subr.bf16.mxu1 %v9136_v35 }
 0x619   :  { %6721 = vmatpush1.bf16.msra.mxu1 %v9134_v51 }
 0x61a   :  { %6722 = vmatprep.subr.bf16.mxu1 %v9139_v0  ;;  %v9210_v0 = vld [vmem:[%s12067_s5 + $0x8] ss:$12 sps:$4 sm:$0xff]  }
 0x61d   :  { %6723 = vmatpush1.bf16.msra.mxu1 %v9137_v19 }
 0x61e   :  { %6724 = vmatprep.subr.bf16.mxu1 %v9142_v55  ;;  %v9211_v55 = vld [vmem:[%s12067_s5 + $0xe0] ss:$12 sps:$4 sm:$0xff]  }
 0x621   :  { %6725 = vmatpush1.bf16.msra.mxu1 %v9140_v56  ;;  %v9212_v56 = vld [vmem:[%s12067_s5 + $0x20] ss:$12 sps:$4 sm:$0xff]  }
 0x622   :  { %6726 = vmatprep.subr.bf16.mxu1 %v9145_v6  ;;  %v9213_v6 = vld [vmem:[%s12067_s5 + $0xf8] ss:$12 sps:$4 sm:$0xff]  }
 0x625   :  { %6727 = vmatpush1.bf16.msra.mxu1 %v9143_v46  ;;  %v9214_v46 = vld [vmem:[%s12067_s5 + $0x38] ss:$12 sps:$4 sm:$0xff]  }
 0x626   :  { %6728 = vmatprep.subr.bf16.mxu1 %v9148_v40  ;;  %v9215_v40 = vld [vmem:[%s12067_s5 + $0x110] ss:$12 sps:$4 sm:$0xff]  }
 0x629   :  { %6729 = vmatpush1.bf16.msra.mxu1 %v9146_v53  ;;  %v9216_v53 = vld [vmem:[%s12067_s5 + $0x50] ss:$12 sps:$4 sm:$0xff]  }
 0x62a   :  { %6730 = vmatprep.subr.bf16.mxu1 %v9151_v58  ;;  %v9217_v58 = vld [vmem:[%s12067_s5 + $0x128] ss:$12 sps:$4 sm:$0xff]  }
 0x62d   :  { %6731 = vmatpush1.bf16.msra.mxu1 %v9149_v41  ;;  %v9218_v41 = vld [vmem:[%s12067_s5 + $0x68] ss:$12 sps:$4 sm:$0xff]  }
 0x62e   :  { %6732 = vmatprep.subr.bf16.mxu1 %v9154_v3  ;;  %v9219_v3 = vld [vmem:[%s12067_s5 + $0x140] ss:$12 sps:$4 sm:$0xff]  }
 0x62f   :  { %v5911_v43 = vpop.f32.mrb[140].mxu1 }
 0x630   :  { %v5913_v48 = vpop.f32.mrb[141].mxu1  ;;  %v6041_v49 = vmax.f32 %v5911_v43, 0.0  ;;  %v9222_v43 = vld [vmem:[%s12067_s5 + $0x98] ss:$12 sps:$4 sm:$0xff]  }
 0x631   :  { %v6042_v17 = vmax.f32 %v5913_v48, 0.0  ;;  %v5915_v63 = vpop.f32.mrb[142].mxu1  ;;  %6733 = vmatpush1.bf16.msra.mxu1 %v9152_v31  ;;  %v9220_v31 = vld [vmem:[%s12067_s5 + $0x80] ss:$12 sps:$4 sm:$0xff]   ;;  %v9223_v48 = vld [vmem:[%s12067_s5 + $0x170] ss:$12 sps:$4 sm:$0xff]  }
 0x632   :  { %v5916_v12 = vpop.f32.mrb[143].mxu1  ;;  %6734 = vmatprep.subr.bf16.mxu1 %v9157_v60  ;;  %v11855_v8 = vpack.c.bf16 %v6041_v49, %v6041_v49  ;;  %v9221_v60 = vld [vmem:[%s12067_s5 + $0x158] ss:$12 sps:$4 sm:$0xff]   ;;  %v9225_v63 = vld [vmem:[%s12067_s5 + $0x248] ss:$12 sps:$4 sm:$0xff]  }
 0x633   :  { %v11843_v22 = vpack.c.bf16 %v6042_v17, %v6042_v17  ;;  %v9224_v17 = vld [vmem:[%s12067_s5 + $0xb0] ss:$12 sps:$4 sm:$0xff]   ;;  %v9227_v12 = vld [vmem:[%s12067_s5 + $0x260] ss:$12 sps:$4 sm:$0xff]  }
 0x634   :  { %v9231_v49 = vld [vmem:[%s12067_s5 + $0x290] ss:$12 sps:$4 sm:$0xff]  }
 0x635   :  { %6735 = vmatpush1.bf16.msra.mxu1 %v9155_v7  ;;  %6738 = vmatprep.mubr.bf16.mxu1 %v11843_v22  ;;  %v9226_v7 = vld [vmem:[%s12067_s5 + $0x188] ss:$12 sps:$4 sm:$0xff]  }
 0x636   :  { %6736 = vmatprep.subr.bf16.mxu1 %v9160_v2  ;;  %v9228_v2 = vld [vmem:[%s12067_s5 + $0x1a0] ss:$12 sps:$4 sm:$0xff]  }
 0x639   :  { %6737 = vmatpush1.bf16.msra.mxu1 %v9158_v34  ;;  %v9230_v34 = vld [vmem:[%s12067_s5 + $0x1b8] ss:$12 sps:$4 sm:$0xff]  }
 0x63a   :  { %6747 = vmatprep.subr.bf16.mxu1 %v9163_v18  ;;  %v9232_v18 = vld [vmem:[%s12067_s5 + $0x1d0] ss:$12 sps:$4 sm:$0xff]  }
 0x63c   :  { %6739 = vmatmul.mubr.bf16.vlgmr.msra.gmra.mrb[148].mxu1 %v11855_v8 }
 0x63d   :  { %6748 = vmatpush1.bf16.msra.mxu1 %v9161_v15  ;;  %v9233_v15 = vld [vmem:[%s12067_s5 + $0x2a8] ss:$12 sps:$4 sm:$0xff]  }
 0x63e   :  { %6749 = vmatprep.subr.bf16.mxu1 %v9166_v52  ;;  %v9235_v52 = vld [vmem:[%s12067_s5 + $0x2c0] ss:$12 sps:$4 sm:$0xff]  }
 0x641   :  { %6750 = vmatpush1.bf16.msra.mxu1 %v9164_v20  ;;  %v9236_v20 = vld [vmem:[%s12067_s5 + $0x200] ss:$12 sps:$4 sm:$0xff]  }
 0x642   :  { %6751 = vmatprep.subr.bf16.mxu1 %v9169_v14  ;;  %v9237_v14 = vld [vmem:[%s12067_s5 + $0x2d8] ss:$12 sps:$4 sm:$0xff]  }
 0x645   :  { %6752 = vmatpush1.bf16.msra.mxu1 %v9167_v47  ;;  %v9238_v47 = vld [vmem:[%s12067_s5 + $0x218] ss:$12 sps:$4 sm:$0xff]  }
 0x646   :  { %6753 = vmatprep.subr.bf16.mxu1 %v9172_v42  ;;  %v9239_v42 = vld [vmem:[%s12067_s5 + $0x2f0] ss:$12 sps:$4 sm:$0xff]  }
 0x649   :  { %6754 = vmatpush1.bf16.msra.mxu1 %v9170_v45  ;;  %v9240_v45 = vld [vmem:[%s12067_s5 + $0x230] ss:$12 sps:$4 sm:$0xff]  }
 0x64a   :  { %6755 = vmatprep.subr.bf16.mxu1 %v9175_v24  ;;  %v6179_v24 = vlaneseq }
 0x64d   :  { %6756 = vmatpush1.bf16.msra.mxu1 %v9173_v13  ;;  %v6180_v13 = vshrl.u32 %v6179_v24, 7 }
 0x64e   :  { %6757 = vmatprep.subr.bf16.mxu1 %v9178_v26 }
 0x64f   :  { %v6181_v26 = vsub.s32 0, %v6180_v13 }
 0x651   :  { %6758 = vmatpush1.bf16.msra.mxu1 %v9176_v27  ;;  %v6177_v27 = vld [vmem:[%s12068_s6] sm:$0x7] }
 0x652   :  { %6759 = vmatprep.subr.bf16.mxu1 %v9181_v28  ;;  %v6185_v28 = vsub.s32 1, %v6180_v13 }
 0x655   :  { %6760 = vmatpush1.bf16.msra.mxu1 %v9179_v61  ;;  %v6182_v61 = vrot.slane %v6177_v27, %v6181_v26 }
 0x656   :  { %6761 = vmatprep.subr.bf16.mxu1 %v9184_v29  ;;  %v6186_v29 = vrot.slane %v6177_v27, %v6185_v28 }
 0x659   :  { %6762 = vmatpush1.bf16.msra.mxu1 %v9182_v21 }
 0x65a   :  { %6763 = vmatprep.subr.bf16.mxu1 %v9187_v4 }
 0x65d   :  { %6764 = vmatpush1.bf16.msra.mxu1 %v9185_v1 }
 0x65e   :  { %6765 = vmatprep.subr.bf16.mxu1 %v9190_v59 }
 0x661   :  { %6766 = vmatpush1.bf16.msra.mxu1 %v9188_v50 }
 0x662   :  { %6767 = vmatprep.subr.bf16.mxu1 %v9193_v11 }
 0x665   :  { %6768 = vmatpush1.bf16.msra.mxu1 %v9191_v57 }
 0x666   :  { %6769 = vmatprep.subr.bf16.mxu1 %v9196_v16 }
 0x669   :  { %6770 = vmatpush1.bf16.msra.mxu1 %v9194_v33 }
 0x66a   :  { %6771 = vmatprep.subr.bf16.mxu1 %v9199_v5 }
 0x66d   :  { %6772 = vmatpush1.bf16.msra.mxu1 %v9197_v25 }
 0x66e   :  { %6773 = vmatprep.subr.bf16.mxu1 %v9202_v62  ;;  %v6189_v62 = vsub.s32 2, %v6180_v13 }
 0x671   :  { %6774 = vmatpush1.bf16.msra.mxu1 %v9200_v23  ;;  %v6190_v23 = vrot.slane %v6177_v27, %v6189_v62 }
 0x672   :  { %6775 = vmatprep.subr.bf16.mxu1 %v9205_v37 }
 0x675   :  { %6776 = vmatpush1.bf16.msra.mxu1 %v9203_v32 }
 0x676   :  { %6777 = vmatprep.subr.bf16.mxu1 %v9208_v30 }
 0x679   :  { %6778 = vmatpush1.bf16.msra.mxu1 %v9206_v54 }
 0x67a   :  { %7600 = vmatprep.subr.bf16.mxu1 %v9209_v9 }
 0x6cf   :  { %v6034_v36 = vpop.f32.mrb[144].mxu1 }
 0x6d0   :  { %v6043_v38 = vmax.f32 %v6034_v36, 0.0  ;;  %v6036_v44 = vpop.f32.mrb[145].mxu1 }
 0x6d1   :  { %v6044_v10 = vmax.f32 %v6036_v44, 0.0  ;;  %v6038_v39 = vpop.f32.mrb[146].mxu1 }
 0x6d2   :  { %v6039_v35 = vpop.f32.mrb[147].mxu1  ;;  %v11954_v19 = vpack.c.bf16 %v6043_v38, %v6043_v38 }
 0x6d3   :  { %v6048_v51 = vpack.c.bf16 %v6044_v10, %v6044_v10 }
 0x6d5   :  { %6779 = vmatprep.mubr.bf16.mxu1 %v6048_v51 }
 0x6d6   :  { %6780 = vmatmul.mubr.bf16.vlgmr.msra.gmra.mrb[148].mxu1 %v11954_v19 }
 0x6d7   :  { %7601 = vmatpush3.bf16.msra.mxu1 %v9210_v0  ;;  %6820 = vmatprep.mubr.bf16.mxu1 %v11843_v22  ;;  %v9229_v22 = vld [vmem:[%s12067_s5 + $0x278] ss:$12 sps:$4 sm:$0xff]  }
 0x6d8   :  { %7602 = vmatprep.subr.bf16.mxu1 %v9211_v55 }
 0x6db   :  { %7603 = vmatpush3.bf16.msra.mxu1 %v9212_v56 }
 0x6dc   :  { %7604 = vmatprep.subr.bf16.mxu1 %v9213_v6 }
 0x6df   :  { %7605 = vmatpush3.bf16.msra.mxu1 %v9214_v46 }
 0x6e0   :  { %7606 = vmatprep.subr.bf16.mxu1 %v9215_v40 }
 0x6e3   :  { %7607 = vmatpush3.bf16.msra.mxu1 %v9216_v53 }
 0x6e4   :  { %7608 = vmatprep.subr.bf16.mxu1 %v9217_v58 }
 0x6e7   :  { %7609 = vmatpush3.bf16.msra.mxu1 %v9218_v41 }
 0x6e8   :  { %7610 = vmatprep.subr.bf16.mxu1 %v9219_v3 }
 0x6eb   :  { %7611 = vmatpush3.bf16.msra.mxu1 %v9220_v31 }
 0x6ec   :  { %7612 = vmatprep.subr.bf16.mxu1 %v9221_v60 }
 0x6ef   :  { %7613 = vmatpush3.bf16.msra.mxu1 %v9222_v43 }
 0x6f0   :  { %7614 = vmatprep.subr.bf16.mxu1 %v9223_v48 }
 0x6f3   :  { %7615 = vmatpush3.bf16.msra.mxu1 %v9224_v17 }
 0x6f4   :  { %7622 = vmatprep.subr.bf16.mxu1 %v9225_v63 }
 0x6f6   :  { %6821 = vmatmul.mubr.bf16.vlgmr.msra.gmra.mrb[152].mxu1 %v11855_v8  ;;  %v9234_v8 = vld [vmem:[%s12067_s5 + $0x1e8] ss:$12 sps:$4 sm:$0xff]  }
 0x6f7   :  { %7623 = vmatpush3.bf16.msra.mxu1 %v9226_v7  ;;  %6860 = vmatprep.mubr.bf16.mxu1 %v6048_v51 }
 0x6f8   :  { %7624 = vmatprep.subr.bf16.mxu1 %v9227_v12 }
 0x6fb   :  { %7625 = vmatpush3.bf16.msra.mxu1 %v9228_v2 }
 0x6fc   :  { %7626 = vmatprep.subr.bf16.mxu1 %v9229_v22 }
 0x6ff   :  { %7627 = vmatpush3.bf16.msra.mxu1 %v9230_v34 }
 0x700   :  { %7628 = vmatprep.subr.bf16.mxu1 %v9231_v49 }
 0x703   :  { %7629 = vmatpush3.bf16.msra.mxu1 %v9232_v18 }
 0x704   :  { %7630 = vmatprep.subr.bf16.mxu1 %v9233_v15 }
 0x707   :  { %7631 = vmatpush3.bf16.msra.mxu1 %v9234_v8 }
 0x708   :  { %7632 = vmatprep.subr.bf16.mxu1 %v9235_v52 }
 0x70b   :  { %7633 = vmatpush3.bf16.msra.mxu1 %v9236_v20 }
 0x70c   :  { %7634 = vmatprep.subr.bf16.mxu1 %v9237_v14 }
 0x70f   :  { %7635 = vmatpush3.bf16.msra.mxu1 %v9238_v47 }
 0x710   :  { %7636 = vmatprep.subr.bf16.mxu1 %v9239_v42 }
 0x713   :  { %7637 = vmatpush3.bf16.msra.mxu1 %v9240_v45 }
 0x716   :  { %6861 = vmatmul.mubr.bf16.vlgmr.msra.gmra.mrb[156].mxu1 %v11954_v19 }
 0x7a9   :  { %v6781_v21 = vpop.f32.mrb[148].mxu1 }
 0x7aa   :  { %v7782_v4 = vadd.f32 %v6781_v21, %v6182_v61  ;;  %v6783_v1 = vpop.f32.mrb[149].mxu1 }
 0x7ab   :  { %v7783_v59 = vadd.f32 %v6783_v1, %v6186_v29  ;;  %v6785_v50 = vpop.f32.mrb[150].mxu1 }
 0x7ac   :  { %6868 = vst [vmem:[%s12069_s7] sm:$0xff] %v7782_v4  ;;  %v6786_v11 = vpop.f32.mrb[151].mxu1 }
 0x7ad   :  { %6869 = vst [vmem:[%s12069_s7 + $0x8] sm:$0xff] %v7783_v59 }
 0x7c9   :  { %v7616_v57 = vpop.f32.mrb[152].mxu1 }
 0x7ca   :  { %v7617_v16 = vpop.f32.mrb[153].mxu1 }
 0x7cb   :  { %v7618_v33 = vadd.f32 %v7617_v16, %v7616_v57  ;;  %v7619_v5 = vpop.f32.mrb[154].mxu1 }
 0x7cc   :  { %v7620_v25 = vpop.f32.mrb[155].mxu1 }
 0x7cd   :  { %v6823_v30 = vadd.f32 %v7618_v33, %v6190_v23 }
 0x7e9   :  { %v7638_v37 = vpop.f32.mrb[156].mxu1 }
 0x7ea   :  { %v7639_v32 = vpop.f32.mrb[157].mxu1 }
 0x7eb   :  { %v7640_v54 = vadd.f32 %v7639_v32, %v7638_v37  ;;  %v7641_v9 = vpop.f32.mrb[158].mxu1 }
 0x7ec   :  { %v7642_v36 = vpop.f32.mrb[159].mxu1 }
 0x7ed   :  { %v6863_v38 = vadd.f32 %v7640_v54, %v6823_v30 }
 0x7ef   :  { %6870 = vst [vmem:[%s12069_s7 + $0x10] sm:$0xff] %v6863_v38 }

</bundles_post_ra>
